<compile_context>
chip_gen: v5e
topology: v5e:2x2
jax: 0.10.0
libtpu: 0.0.40
codegen_flags: <defaults>
</compile_context>

<pallas_src>
import numpy as np
import jax
import jax.numpy as jnp
from jax.experimental import pallas as pl
from jax.experimental.pallas import tpu as pltpu

GRID_SIZE = 5
SPLINE_ORDER = 3
N_BASES = GRID_SIZE + SPLINE_ORDER            # 8 basis functions per input feature
GRID_LEN = GRID_SIZE + 2 * SPLINE_ORDER + 1   # 12 grid knots per input feature

_H = 2.0 / GRID_SIZE
_GRID_1D = (np.arange(-SPLINE_ORDER, GRID_SIZE + SPLINE_ORDER + 1) * _H - 1.0
            ).astype(np.float32)              # 12 uniform knots on [-2.2, 2.2]
_KNOTS = tuple(float(v) for v in _GRID_1D)    # compile-time constants for the kernel
_H32 = float(_GRID_1D[1] - _GRID_1D[0])


# ---------------------------------------------------------------------------
# Kernel
# ---------------------------------------------------------------------------
def _bspline_bases(x):
    """Cubic B-spline bases on the uniform grid, grid folded into constants.

    x: (TB, in) f32.  Returns a list of N_BASES arrays of shape (TB, in).
    All Cox-de Boor denominators are the constant k*h, so there are no divides.
    """
    bases = [((x >= _KNOTS[j]) & (x < _KNOTS[j + 1])).astype(jnp.float32)
             for j in range(GRID_LEN - 1)]
    for k in range(1, SPLINE_ORDER + 1):
        inv = 1.0 / (k * _H32)
        nxt = []
        for j in range(len(bases) - 1):
            left = (x - _KNOTS[j]) * inv * bases[j]
            right = (_KNOTS[j + k + 1] - x) * inv * bases[j + 1]
            nxt.append(left + right)
        bases = nxt
    return bases


def _kan_layer(x, w):
    """Fused efficient-kan KANLinear: one matmul for base + spline paths.

    x: (TB, in); w: ((N_BASES+1)*in, out) = [base_w; spline_w reshaped].
    """
    feats = [x * jax.nn.sigmoid(x)] + _bspline_bases(x)   # SiLU base + 8 spline bases
    cat = jnp.concatenate(feats, axis=-1)                 # (TB, (N_BASES+1)*in)
    return jnp.dot(cat, w, preferred_element_type=jnp.float32)


def ka_kernel(x_ref,
              w1, b1, w2, b2, w3, b3, w4, b4,
              kw1, kw2,
              out_ref):
    h = x_ref[...]
    h = jnp.maximum(jnp.dot(h, w1[...], preferred_element_type=jnp.float32) + b1[...], 0.0)
    h = jnp.maximum(jnp.dot(h, w2[...], preferred_element_type=jnp.float32) + b2[...], 0.0)
    h = jnp.maximum(jnp.dot(h, w3[...], preferred_element_type=jnp.float32) + b3[...], 0.0)
    h = jnp.maximum(jnp.dot(h, w4[...], preferred_element_type=jnp.float32) + b4[...], 0.0)
    h = _kan_layer(h, kw1[...])   # KANLinear 64 -> 4
    h = _kan_layer(h, kw2[...])   # KANLinear 4 -> 16
    out_ref[...] = jax.nn.sigmoid(h)


# ---------------------------------------------------------------------------
# Wrapper
# ---------------------------------------------------------------------------
def _pad2(a, rows, cols):
    r, c = a.shape
    return jnp.pad(a, ((0, rows - r), (0, cols - c)))


def _prepare_weights(params):
    """Zero-pad encoder widths to lane multiples and fuse KAN base+spline weights."""
    w1 = _pad2(params["w1"], 256, 512); b1 = _pad2(params["b1"], 1, 512)
    w2 = _pad2(params["w2"], 512, 256); b2 = _pad2(params["b2"], 1, 256)
    w3 = _pad2(params["w3"], 256, 128); b3 = _pad2(params["b3"], 1, 128)
    w4 = _pad2(params["w4"], 128, 64);  b4 = _pad2(params["b4"], 1, 64)
    # Fused KAN weights: rows [0:in] = base_w, rows [in:] = spline_w (N_BASES, in, out)
    # flattened row-major so basis k occupies rows [in + k*in : in + (k+1)*in].
    kw1 = jnp.concatenate(
        [params["kan1_base_w"], params["kan1_spline_w"].reshape(N_BASES * 64, 4)], axis=0)
    kw2 = jnp.concatenate(
        [params["kan2_base_w"], params["kan2_spline_w"].reshape(N_BASES * 4, 16)], axis=0)
    return [w1, b1, w2, b2, w3, b3, w4, b4, kw1, kw2]


def ka_forward(x, params):
    B = x.shape[0]
    # Largest batch tile that fits comfortably in every generation's scoped VMEM
    # (v5e 16 MiB default, v7x 64 MiB physical); small batches use a single tile.
    TB = B if B <= 512 else 512
    flat = _prepare_weights(params)

    in_specs = [pl.BlockSpec((TB, 256), lambda i: (i, 0))]
    for p in flat:
        shp = tuple(p.shape)
        in_specs.append(pl.BlockSpec(shp, lambda i, _n=len(shp): (0,) * _n))
    out_spec = pl.BlockSpec((TB, 16), lambda i: (i, 0))

    weight_bytes = sum(int(np.prod(p.shape)) * 4 for p in flat)
    flops = 2 * B * (256 * 512 + 512 * 256 + 256 * 128 + 128 * 64
                     + (N_BASES + 1) * 64 * 4 + (N_BASES + 1) * 4 * 16)
    cost = pl.CostEstimate(
        flops=flops,
        transcendentals=B * (64 + 4 + 16),
        bytes_accessed=weight_bytes + 4 * B * (256 + 16),
    )

    return pl.pallas_call(
        ka_kernel,
        out_shape=jax.ShapeDtypeStruct((B, 16), jnp.float32),
        grid=(pl.cdiv(B, TB),),
        in_specs=in_specs,
        out_specs=out_spec,
        compiler_params=pltpu.CompilerParams(
            dimension_semantics=("parallel",)),
        cost_estimate=cost,
    )(x, *flat)


# ---------------------------------------------------------------------------
# Deterministic parameter init (synthetic)
# ---------------------------------------------------------------------------
def init_params(key):
    keys = jax.random.split(key, 6)

    def linear(k, fan_in, fan_out):
        kw, kb = jax.random.split(k)
        bound = 1.0 / np.sqrt(fan_in)
        w = jax.random.uniform(kw, (fan_in, fan_out), jnp.float32, -bound, bound)
        b = jax.random.uniform(kb, (1, fan_out), jnp.float32, -bound, bound)
        return w, b

    def kan_layer(k, fan_in, fan_out):
        kb, ks, kc = jax.random.split(k, 3)
        bound = 1.0 / np.sqrt(fan_in)
        base_w = jax.random.uniform(kb, (fan_in, fan_out), jnp.float32, -bound, bound)
        spline_w = 0.1 * jax.random.normal(ks, (fan_out, fan_in, N_BASES), jnp.float32)
        scaler = jax.random.uniform(kc, (fan_out, fan_in), jnp.float32, -bound, bound)
        scaled = spline_w * scaler[:, :, None]            # fold in standalone spline scaler
        spline_w_t = jnp.transpose(scaled, (2, 1, 0))     # (N_BASES, in, out)
        grid = jnp.tile(jnp.asarray(_GRID_1D)[:, None], (1, fan_in))  # (GRID_LEN, in)
        return base_w, spline_w_t, grid

    p = {}
    p["w1"], p["b1"] = linear(keys[0], 256, 500)
    p["w2"], p["b2"] = linear(keys[1], 500, 250)
    p["w3"], p["b3"] = linear(keys[2], 250, 120)
    p["w4"], p["b4"] = linear(keys[3], 120, 64)
    p["kan1_base_w"], p["kan1_spline_w"], p["kan1_grid"] = kan_layer(keys[4], 64, 4)
    p["kan2_base_w"], p["kan2_spline_w"], p["kan2_grid"] = kan_layer(keys[5], 4, 16)
    return p


# ---------------------------------------------------------------------------
# Pure-JAX reference (efficient-kan style, 3-D b_splines + einsum, unpadded weights)
# ---------------------------------------------------------------------------
def ka_reference(x, params):
    hp = jax.lax.Precision.HIGHEST

    def lin(h, w, b):
        return jnp.maximum(jnp.dot(h, w, precision=hp) + b, 0.0)

    h = lin(x, params["w1"], params["b1"])
    h = lin(h, params["w2"], params["b2"])
    h = lin(h, params["w3"], params["b3"])
    h = lin(h, params["w4"], params["b4"])

    def kan(h, base_w, spline_w_t, grid):
        g = grid.T                           # (in, GRID_LEN)
        xg = h[:, :, None]                   # (B, in, 1)
        bases = ((xg >= g[None, :, :-1]) & (xg < g[None, :, 1:])).astype(h.dtype)
        for k in range(1, SPLINE_ORDER + 1):
            bases = ((xg - g[None, :, :-(k + 1)])
                     / (g[None, :, k:-1] - g[None, :, :-(k + 1)]) * bases[:, :, :-1]
                     + (g[None, :, k + 1:] - xg)
                     / (g[None, :, k + 1:] - g[None, :, 1:-k]) * bases[:, :, 1:])
        base_out = jnp.dot(h * jax.nn.sigmoid(h), base_w, precision=hp)
        spline_out = jnp.einsum("bik,kio->bo", bases, spline_w_t, precision=hp)
        return base_out + spline_out

    h = kan(h, params["kan1_base_w"], params["kan1_spline_w"], params["kan1_grid"])
    h = kan(h, params["kan2_base_w"], params["kan2_spline_w"], params["kan2_grid"])
    return jax.nn.sigmoid(h)


if __name__ == "__main__":
    key = jax.random.PRNGKey(0)
    k_param, k_x = jax.random.split(key)
    params = init_params(k_param)

    B = 2
    x = jax.random.normal(k_x, (B, 256), jnp.float32)

    out = ka_forward(x, params)
    out = jax.block_until_ready(out)

    ref = jax.block_until_ready(ka_reference(x, params))
    assert out.shape == (B, 16) and out.dtype == jnp.float32
    np.testing.assert_allclose(np.asarray(out), np.asarray(ref), rtol=2e-2, atol=2e-2)

    print("KERNEL_OK")
</pallas_src>

<mosaic_0001>
module attributes {stable_mosaic.version = 11 : i64} {
  func.func @ka_kernel(%arg0: i32, %arg1: memref<2x256xf32, #tpu.memory_space<vmem>>, %arg2: memref<256x512xf32, #tpu.memory_space<vmem>>, %arg3: memref<1x512xf32, #tpu.memory_space<vmem>>, %arg4: memref<512x256xf32, #tpu.memory_space<vmem>>, %arg5: memref<1x256xf32, #tpu.memory_space<vmem>>, %arg6: memref<256x128xf32, #tpu.memory_space<vmem>>, %arg7: memref<1x128xf32, #tpu.memory_space<vmem>>, %arg8: memref<128x64xf32, #tpu.memory_space<vmem>>, %arg9: memref<1x64xf32, #tpu.memory_space<vmem>>, %arg10: memref<576x4xf32, #tpu.memory_space<vmem>>, %arg11: memref<36x16xf32, #tpu.memory_space<vmem>>, %arg12: memref<2x16xf32, #tpu.memory_space<vmem>>) attributes {dimension_semantics = [#tpu.dimension_semantics<parallel>], iteration_bounds = array<i64: 1>, scalar_prefetch = 0 : i64, scratch_operands = 0 : i64, tpu.core_type = #tpu.core_type<tc>, window_params = [{transform_indices = @transform_0, window_bounds = array<i64: 2, 256>}, {pipeline_mode = #tpu.pipeline_mode<synchronous>, transform_indices = @transform_1, window_bounds = array<i64: 256, 512>}, {pipeline_mode = #tpu.pipeline_mode<synchronous>, transform_indices = @transform_2, window_bounds = array<i64: 1, 512>}, {pipeline_mode = #tpu.pipeline_mode<synchronous>, transform_indices = @transform_3, window_bounds = array<i64: 512, 256>}, {pipeline_mode = #tpu.pipeline_mode<synchronous>, transform_indices = @transform_4, window_bounds = array<i64: 1, 256>}, {pipeline_mode = #tpu.pipeline_mode<synchronous>, transform_indices = @transform_5, window_bounds = array<i64: 256, 128>}, {pipeline_mode = #tpu.pipeline_mode<synchronous>, transform_indices = @transform_6, window_bounds = array<i64: 1, 128>}, {pipeline_mode = #tpu.pipeline_mode<synchronous>, transform_indices = @transform_7, window_bounds = array<i64: 128, 64>}, {pipeline_mode = #tpu.pipeline_mode<synchronous>, transform_indices = @transform_8, window_bounds = array<i64: 1, 64>}, {pipeline_mode = #tpu.pipeline_mode<synchronous>, transform_indices = @transform_9, window_bounds = array<i64: 576, 4>}, {pipeline_mode = #tpu.pipeline_mode<synchronous>, transform_indices = @transform_10, window_bounds = array<i64: 36, 16>}, {transform_indices = @transform_11, window_bounds = array<i64: 2, 16>}]} {
    %c0 = arith.constant 0 : index
    %c0_0 = arith.constant 0 : index
    %0 = vector.load %arg1[%c0, %c0_0] : memref<2x256xf32, #tpu.memory_space<vmem>>, vector<2x256xf32>
    %c0_1 = arith.constant 0 : index
    %c0_2 = arith.constant 0 : index
    %1 = vector.load %arg2[%c0_1, %c0_2] : memref<256x512xf32, #tpu.memory_space<vmem>>, vector<256x512xf32>
    %cst = arith.constant dense<0.000000e+00> : vector<2x512xf32>
    %2 = tpu.matmul %0, %1, %cst {dimension_numbers = #tpu.dot_dimension_numbers<[1], [0], [0], [1], [0, 0, 1, 1], [], []>} : vector<2x256xf32>, vector<256x512xf32>, vector<2x512xf32> -> vector<2x512xf32>
    %c0_3 = arith.constant 0 : index
    %c0_4 = arith.constant 0 : index
    %3 = vector.load %arg3[%c0_3, %c0_4] : memref<1x512xf32, #tpu.memory_space<vmem>>, vector<1x512xf32>
    %4 = vector.broadcast %3 : vector<1x512xf32> to vector<2x512xf32>
    %5 = arith.addf %2, %4 : vector<2x512xf32>
    %cst_5 = arith.constant 0.000000e+00 : f32
    %6 = vector.broadcast %cst_5 : f32 to vector<2x512xf32>
    %7 = arith.maximumf %5, %6 : vector<2x512xf32>
    %c0_6 = arith.constant 0 : index
    %c0_7 = arith.constant 0 : index
    %8 = vector.load %arg4[%c0_6, %c0_7] : memref<512x256xf32, #tpu.memory_space<vmem>>, vector<512x256xf32>
    %cst_8 = arith.constant dense<0.000000e+00> : vector<2x256xf32>
    %9 = tpu.matmul %7, %8, %cst_8 {dimension_numbers = #tpu.dot_dimension_numbers<[1], [0], [0], [1], [0, 0, 1, 1], [], []>} : vector<2x512xf32>, vector<512x256xf32>, vector<2x256xf32> -> vector<2x256xf32>
    %c0_9 = arith.constant 0 : index
    %c0_10 = arith.constant 0 : index
    %10 = vector.load %arg5[%c0_9, %c0_10] : memref<1x256xf32, #tpu.memory_space<vmem>>, vector<1x256xf32>
    %11 = vector.broadcast %10 : vector<1x256xf32> to vector<2x256xf32>
    %12 = arith.addf %9, %11 : vector<2x256xf32>
    %cst_11 = arith.constant 0.000000e+00 : f32
    %13 = vector.broadcast %cst_11 : f32 to vector<2x256xf32>
    %14 = arith.maximumf %12, %13 : vector<2x256xf32>
    %c0_12 = arith.constant 0 : index
    %c0_13 = arith.constant 0 : index
    %15 = vector.load %arg6[%c0_12, %c0_13] : memref<256x128xf32, #tpu.memory_space<vmem>>, vector<256x128xf32>
    %cst_14 = arith.constant dense<0.000000e+00> : vector<2x128xf32>
    %16 = tpu.matmul %14, %15, %cst_14 {dimension_numbers = #tpu.dot_dimension_numbers<[1], [0], [0], [1], [0, 0, 1, 1], [], []>} : vector<2x256xf32>, vector<256x128xf32>, vector<2x128xf32> -> vector<2x128xf32>
    %c0_15 = arith.constant 0 : index
    %c0_16 = arith.constant 0 : index
    %17 = vector.load %arg7[%c0_15, %c0_16] : memref<1x128xf32, #tpu.memory_space<vmem>>, vector<1x128xf32>
    %18 = vector.broadcast %17 : vector<1x128xf32> to vector<2x128xf32>
    %19 = arith.addf %16, %18 : vector<2x128xf32>
    %cst_17 = arith.constant 0.000000e+00 : f32
    %20 = vector.broadcast %cst_17 : f32 to vector<2x128xf32>
    %21 = arith.maximumf %19, %20 : vector<2x128xf32>
    %c0_18 = arith.constant 0 : index
    %c0_19 = arith.constant 0 : index
    %22 = vector.load %arg8[%c0_18, %c0_19] : memref<128x64xf32, #tpu.memory_space<vmem>>, vector<128x64xf32>
    %cst_20 = arith.constant dense<0.000000e+00> : vector<2x64xf32>
    %23 = tpu.matmul %21, %22, %cst_20 {dimension_numbers = #tpu.dot_dimension_numbers<[1], [0], [0], [1], [0, 0, 1, 1], [], []>} : vector<2x128xf32>, vector<128x64xf32>, vector<2x64xf32> -> vector<2x64xf32>
    %c0_21 = arith.constant 0 : index
    %c0_22 = arith.constant 0 : index
    %24 = vector.load %arg9[%c0_21, %c0_22] : memref<1x64xf32, #tpu.memory_space<vmem>>, vector<1x64xf32>
    %25 = vector.broadcast %24 : vector<1x64xf32> to vector<2x64xf32>
    %26 = arith.addf %23, %25 : vector<2x64xf32>
    %cst_23 = arith.constant 0.000000e+00 : f32
    %27 = vector.broadcast %cst_23 : f32 to vector<2x64xf32>
    %28 = arith.maximumf %26, %27 : vector<2x64xf32>
    %c0_24 = arith.constant 0 : index
    %c0_25 = arith.constant 0 : index
    %29 = vector.load %arg10[%c0_24, %c0_25] : memref<576x4xf32, #tpu.memory_space<vmem>>, vector<576x4xf32>
    %30 = arith.negf %28 : vector<2x64xf32>
    %31 = math.exp %30 : vector<2x64xf32>
    %cst_26 = arith.constant 1.000000e+00 : f32
    %32 = vector.broadcast %cst_26 : f32 to vector<2x64xf32>
    %33 = arith.addf %32, %31 : vector<2x64xf32>
    %34 = arith.divf %32, %33 : vector<2x64xf32>
    %35 = arith.mulf %28, %34 : vector<2x64xf32>
    %cst_27 = arith.constant -2.200000e+00 : f32
    %36 = vector.broadcast %cst_27 : f32 to vector<2x64xf32>
    %37 = arith.cmpf oge, %28, %36 : vector<2x64xf32>
    %cst_28 = arith.constant -1.800000e+00 : f32
    %38 = vector.broadcast %cst_28 : f32 to vector<2x64xf32>
    %39 = arith.cmpf olt, %28, %38 : vector<2x64xf32>
    %40 = arith.andi %37, %39 : vector<2x64xi1>
    %41 = arith.extui %40 : vector<2x64xi1> to vector<2x64xi32>
    %42 = arith.sitofp %41 : vector<2x64xi32> to vector<2x64xf32>
    %cst_29 = arith.constant -1.800000e+00 : f32
    %43 = vector.broadcast %cst_29 : f32 to vector<2x64xf32>
    %44 = arith.cmpf oge, %28, %43 : vector<2x64xf32>
    %cst_30 = arith.constant -1.400000e+00 : f32
    %45 = vector.broadcast %cst_30 : f32 to vector<2x64xf32>
    %46 = arith.cmpf olt, %28, %45 : vector<2x64xf32>
    %47 = arith.andi %44, %46 : vector<2x64xi1>
    %48 = arith.extui %47 : vector<2x64xi1> to vector<2x64xi32>
    %49 = arith.sitofp %48 : vector<2x64xi32> to vector<2x64xf32>
    %cst_31 = arith.constant -1.400000e+00 : f32
    %50 = vector.broadcast %cst_31 : f32 to vector<2x64xf32>
    %51 = arith.cmpf oge, %28, %50 : vector<2x64xf32>
    %cst_32 = arith.constant -1.000000e+00 : f32
    %52 = vector.broadcast %cst_32 : f32 to vector<2x64xf32>
    %53 = arith.cmpf olt, %28, %52 : vector<2x64xf32>
    %54 = arith.andi %51, %53 : vector<2x64xi1>
    %55 = arith.extui %54 : vector<2x64xi1> to vector<2x64xi32>
    %56 = arith.sitofp %55 : vector<2x64xi32> to vector<2x64xf32>
    %cst_33 = arith.constant -1.000000e+00 : f32
    %57 = vector.broadcast %cst_33 : f32 to vector<2x64xf32>
    %58 = arith.cmpf oge, %28, %57 : vector<2x64xf32>
    %cst_34 = arith.constant -6.000000e-01 : f32
    %59 = vector.broadcast %cst_34 : f32 to vector<2x64xf32>
    %60 = arith.cmpf olt, %28, %59 : vector<2x64xf32>
    %61 = arith.andi %58, %60 : vector<2x64xi1>
    %62 = arith.extui %61 : vector<2x64xi1> to vector<2x64xi32>
    %63 = arith.sitofp %62 : vector<2x64xi32> to vector<2x64xf32>
    %cst_35 = arith.constant -6.000000e-01 : f32
    %64 = vector.broadcast %cst_35 : f32 to vector<2x64xf32>
    %65 = arith.cmpf oge, %28, %64 : vector<2x64xf32>
    %cst_36 = arith.constant -2.000000e-01 : f32
    %66 = vector.broadcast %cst_36 : f32 to vector<2x64xf32>
    %67 = arith.cmpf olt, %28, %66 : vector<2x64xf32>
    %68 = arith.andi %65, %67 : vector<2x64xi1>
    %69 = arith.extui %68 : vector<2x64xi1> to vector<2x64xi32>
    %70 = arith.sitofp %69 : vector<2x64xi32> to vector<2x64xf32>
    %cst_37 = arith.constant -2.000000e-01 : f32
    %71 = vector.broadcast %cst_37 : f32 to vector<2x64xf32>
    %72 = arith.cmpf oge, %28, %71 : vector<2x64xf32>
    %cst_38 = arith.constant 2.000000e-01 : f32
    %73 = vector.broadcast %cst_38 : f32 to vector<2x64xf32>
    %74 = arith.cmpf olt, %28, %73 : vector<2x64xf32>
    %75 = arith.andi %72, %74 : vector<2x64xi1>
    %76 = arith.extui %75 : vector<2x64xi1> to vector<2x64xi32>
    %77 = arith.sitofp %76 : vector<2x64xi32> to vector<2x64xf32>
    %cst_39 = arith.constant 2.000000e-01 : f32
    %78 = vector.broadcast %cst_39 : f32 to vector<2x64xf32>
    %79 = arith.cmpf oge, %28, %78 : vector<2x64xf32>
    %cst_40 = arith.constant 6.000000e-01 : f32
    %80 = vector.broadcast %cst_40 : f32 to vector<2x64xf32>
    %81 = arith.cmpf olt, %28, %80 : vector<2x64xf32>
    %82 = arith.andi %79, %81 : vector<2x64xi1>
    %83 = arith.extui %82 : vector<2x64xi1> to vector<2x64xi32>
    %84 = arith.sitofp %83 : vector<2x64xi32> to vector<2x64xf32>
    %cst_41 = arith.constant 6.000000e-01 : f32
    %85 = vector.broadcast %cst_41 : f32 to vector<2x64xf32>
    %86 = arith.cmpf oge, %28, %85 : vector<2x64xf32>
    %cst_42 = arith.constant 1.000000e+00 : f32
    %87 = vector.broadcast %cst_42 : f32 to vector<2x64xf32>
    %88 = arith.cmpf olt, %28, %87 : vector<2x64xf32>
    %89 = arith.andi %86, %88 : vector<2x64xi1>
    %90 = arith.extui %89 : vector<2x64xi1> to vector<2x64xi32>
    %91 = arith.sitofp %90 : vector<2x64xi32> to vector<2x64xf32>
    %cst_43 = arith.constant 1.000000e+00 : f32
    %92 = vector.broadcast %cst_43 : f32 to vector<2x64xf32>
    %93 = arith.cmpf oge, %28, %92 : vector<2x64xf32>
    %cst_44 = arith.constant 1.400000e+00 : f32
    %94 = vector.broadcast %cst_44 : f32 to vector<2x64xf32>
    %95 = arith.cmpf olt, %28, %94 : vector<2x64xf32>
    %96 = arith.andi %93, %95 : vector<2x64xi1>
    %97 = arith.extui %96 : vector<2x64xi1> to vector<2x64xi32>
    %98 = arith.sitofp %97 : vector<2x64xi32> to vector<2x64xf32>
    %cst_45 = arith.constant 1.400000e+00 : f32
    %99 = vector.broadcast %cst_45 : f32 to vector<2x64xf32>
    %100 = arith.cmpf oge, %28, %99 : vector<2x64xf32>
    %cst_46 = arith.constant 1.800000e+00 : f32
    %101 = vector.broadcast %cst_46 : f32 to vector<2x64xf32>
    %102 = arith.cmpf olt, %28, %101 : vector<2x64xf32>
    %103 = arith.andi %100, %102 : vector<2x64xi1>
    %104 = arith.extui %103 : vector<2x64xi1> to vector<2x64xi32>
    %105 = arith.sitofp %104 : vector<2x64xi32> to vector<2x64xf32>
    %cst_47 = arith.constant 1.800000e+00 : f32
    %106 = vector.broadcast %cst_47 : f32 to vector<2x64xf32>
    %107 = arith.cmpf oge, %28, %106 : vector<2x64xf32>
    %cst_48 = arith.constant 2.200000e+00 : f32
    %108 = vector.broadcast %cst_48 : f32 to vector<2x64xf32>
    %109 = arith.cmpf olt, %28, %108 : vector<2x64xf32>
    %110 = arith.andi %107, %109 : vector<2x64xi1>
    %111 = arith.extui %110 : vector<2x64xi1> to vector<2x64xi32>
    %112 = arith.sitofp %111 : vector<2x64xi32> to vector<2x64xf32>
    %cst_49 = arith.constant -2.200000e+00 : f32
    %113 = vector.broadcast %cst_49 : f32 to vector<2x64xf32>
    %114 = arith.subf %28, %113 : vector<2x64xf32>
    %cst_50 = arith.constant 2.49999952 : f32
    %115 = vector.broadcast %cst_50 : f32 to vector<2x64xf32>
    %116 = arith.mulf %114, %115 : vector<2x64xf32>
    %117 = arith.mulf %116, %42 : vector<2x64xf32>
    %cst_51 = arith.constant -1.400000e+00 : f32
    %118 = vector.broadcast %cst_51 : f32 to vector<2x64xf32>
    %119 = arith.subf %118, %28 : vector<2x64xf32>
    %cst_52 = arith.constant 2.49999952 : f32
    %120 = vector.broadcast %cst_52 : f32 to vector<2x64xf32>
    %121 = arith.mulf %119, %120 : vector<2x64xf32>
    %122 = arith.mulf %121, %49 : vector<2x64xf32>
    %123 = arith.addf %117, %122 : vector<2x64xf32>
    %cst_53 = arith.constant -1.800000e+00 : f32
    %124 = vector.broadcast %cst_53 : f32 to vector<2x64xf32>
    %125 = arith.subf %28, %124 : vector<2x64xf32>
    %cst_54 = arith.constant 2.49999952 : f32
    %126 = vector.broadcast %cst_54 : f32 to vector<2x64xf32>
    %127 = arith.mulf %125, %126 : vector<2x64xf32>
    %128 = arith.mulf %127, %49 : vector<2x64xf32>
    %cst_55 = arith.constant -1.000000e+00 : f32
    %129 = vector.broadcast %cst_55 : f32 to vector<2x64xf32>
    %130 = arith.subf %129, %28 : vector<2x64xf32>
    %cst_56 = arith.constant 2.49999952 : f32
    %131 = vector.broadcast %cst_56 : f32 to vector<2x64xf32>
    %132 = arith.mulf %130, %131 : vector<2x64xf32>
    %133 = arith.mulf %132, %56 : vector<2x64xf32>
    %134 = arith.addf %128, %133 : vector<2x64xf32>
    %cst_57 = arith.constant -1.400000e+00 : f32
    %135 = vector.broadcast %cst_57 : f32 to vector<2x64xf32>
    %136 = arith.subf %28, %135 : vector<2x64xf32>
    %cst_58 = arith.constant 2.49999952 : f32
    %137 = vector.broadcast %cst_58 : f32 to vector<2x64xf32>
    %138 = arith.mulf %136, %137 : vector<2x64xf32>
    %139 = arith.mulf %138, %56 : vector<2x64xf32>
    %cst_59 = arith.constant -6.000000e-01 : f32
    %140 = vector.broadcast %cst_59 : f32 to vector<2x64xf32>
    %141 = arith.subf %140, %28 : vector<2x64xf32>
    %cst_60 = arith.constant 2.49999952 : f32
    %142 = vector.broadcast %cst_60 : f32 to vector<2x64xf32>
    %143 = arith.mulf %141, %142 : vector<2x64xf32>
    %144 = arith.mulf %143, %63 : vector<2x64xf32>
    %145 = arith.addf %139, %144 : vector<2x64xf32>
    %cst_61 = arith.constant -1.000000e+00 : f32
    %146 = vector.broadcast %cst_61 : f32 to vector<2x64xf32>
    %147 = arith.subf %28, %146 : vector<2x64xf32>
    %cst_62 = arith.constant 2.49999952 : f32
    %148 = vector.broadcast %cst_62 : f32 to vector<2x64xf32>
    %149 = arith.mulf %147, %148 : vector<2x64xf32>
    %150 = arith.mulf %149, %63 : vector<2x64xf32>
    %cst_63 = arith.constant -2.000000e-01 : f32
    %151 = vector.broadcast %cst_63 : f32 to vector<2x64xf32>
    %152 = arith.subf %151, %28 : vector<2x64xf32>
    %cst_64 = arith.constant 2.49999952 : f32
    %153 = vector.broadcast %cst_64 : f32 to vector<2x64xf32>
    %154 = arith.mulf %152, %153 : vector<2x64xf32>
    %155 = arith.mulf %154, %70 : vector<2x64xf32>
    %156 = arith.addf %150, %155 : vector<2x64xf32>
    %cst_65 = arith.constant -6.000000e-01 : f32
    %157 = vector.broadcast %cst_65 : f32 to vector<2x64xf32>
    %158 = arith.subf %28, %157 : vector<2x64xf32>
    %cst_66 = arith.constant 2.49999952 : f32
    %159 = vector.broadcast %cst_66 : f32 to vector<2x64xf32>
    %160 = arith.mulf %158, %159 : vector<2x64xf32>
    %161 = arith.mulf %160, %70 : vector<2x64xf32>
    %cst_67 = arith.constant 2.000000e-01 : f32
    %162 = vector.broadcast %cst_67 : f32 to vector<2x64xf32>
    %163 = arith.subf %162, %28 : vector<2x64xf32>
    %cst_68 = arith.constant 2.49999952 : f32
    %164 = vector.broadcast %cst_68 : f32 to vector<2x64xf32>
    %165 = arith.mulf %163, %164 : vector<2x64xf32>
    %166 = arith.mulf %165, %77 : vector<2x64xf32>
    %167 = arith.addf %161, %166 : vector<2x64xf32>
    %cst_69 = arith.constant -2.000000e-01 : f32
    %168 = vector.broadcast %cst_69 : f32 to vector<2x64xf32>
    %169 = arith.subf %28, %168 : vector<2x64xf32>
    %cst_70 = arith.constant 2.49999952 : f32
    %170 = vector.broadcast %cst_70 : f32 to vector<2x64xf32>
    %171 = arith.mulf %169, %170 : vector<2x64xf32>
    %172 = arith.mulf %171, %77 : vector<2x64xf32>
    %cst_71 = arith.constant 6.000000e-01 : f32
    %173 = vector.broadcast %cst_71 : f32 to vector<2x64xf32>
    %174 = arith.subf %173, %28 : vector<2x64xf32>
    %cst_72 = arith.constant 2.49999952 : f32
    %175 = vector.broadcast %cst_72 : f32 to vector<2x64xf32>
    %176 = arith.mulf %174, %175 : vector<2x64xf32>
    %177 = arith.mulf %176, %84 : vector<2x64xf32>
    %178 = arith.addf %172, %177 : vector<2x64xf32>
    %cst_73 = arith.constant 2.000000e-01 : f32
    %179 = vector.broadcast %cst_73 : f32 to vector<2x64xf32>
    %180 = arith.subf %28, %179 : vector<2x64xf32>
    %cst_74 = arith.constant 2.49999952 : f32
    %181 = vector.broadcast %cst_74 : f32 to vector<2x64xf32>
    %182 = arith.mulf %180, %181 : vector<2x64xf32>
    %183 = arith.mulf %182, %84 : vector<2x64xf32>
    %cst_75 = arith.constant 1.000000e+00 : f32
    %184 = vector.broadcast %cst_75 : f32 to vector<2x64xf32>
    %185 = arith.subf %184, %28 : vector<2x64xf32>
    %cst_76 = arith.constant 2.49999952 : f32
    %186 = vector.broadcast %cst_76 : f32 to vector<2x64xf32>
    %187 = arith.mulf %185, %186 : vector<2x64xf32>
    %188 = arith.mulf %187, %91 : vector<2x64xf32>
    %189 = arith.addf %183, %188 : vector<2x64xf32>
    %cst_77 = arith.constant 6.000000e-01 : f32
    %190 = vector.broadcast %cst_77 : f32 to vector<2x64xf32>
    %191 = arith.subf %28, %190 : vector<2x64xf32>
    %cst_78 = arith.constant 2.49999952 : f32
    %192 = vector.broadcast %cst_78 : f32 to vector<2x64xf32>
    %193 = arith.mulf %191, %192 : vector<2x64xf32>
    %194 = arith.mulf %193, %91 : vector<2x64xf32>
    %cst_79 = arith.constant 1.400000e+00 : f32
    %195 = vector.broadcast %cst_79 : f32 to vector<2x64xf32>
    %196 = arith.subf %195, %28 : vector<2x64xf32>
    %cst_80 = arith.constant 2.49999952 : f32
    %197 = vector.broadcast %cst_80 : f32 to vector<2x64xf32>
    %198 = arith.mulf %196, %197 : vector<2x64xf32>
    %199 = arith.mulf %198, %98 : vector<2x64xf32>
    %200 = arith.addf %194, %199 : vector<2x64xf32>
    %cst_81 = arith.constant 1.000000e+00 : f32
    %201 = vector.broadcast %cst_81 : f32 to vector<2x64xf32>
    %202 = arith.subf %28, %201 : vector<2x64xf32>
    %cst_82 = arith.constant 2.49999952 : f32
    %203 = vector.broadcast %cst_82 : f32 to vector<2x64xf32>
    %204 = arith.mulf %202, %203 : vector<2x64xf32>
    %205 = arith.mulf %204, %98 : vector<2x64xf32>
    %cst_83 = arith.constant 1.800000e+00 : f32
    %206 = vector.broadcast %cst_83 : f32 to vector<2x64xf32>
    %207 = arith.subf %206, %28 : vector<2x64xf32>
    %cst_84 = arith.constant 2.49999952 : f32
    %208 = vector.broadcast %cst_84 : f32 to vector<2x64xf32>
    %209 = arith.mulf %207, %208 : vector<2x64xf32>
    %210 = arith.mulf %209, %105 : vector<2x64xf32>
    %211 = arith.addf %205, %210 : vector<2x64xf32>
    %cst_85 = arith.constant 1.400000e+00 : f32
    %212 = vector.broadcast %cst_85 : f32 to vector<2x64xf32>
    %213 = arith.subf %28, %212 : vector<2x64xf32>
    %cst_86 = arith.constant 2.49999952 : f32
    %214 = vector.broadcast %cst_86 : f32 to vector<2x64xf32>
    %215 = arith.mulf %213, %214 : vector<2x64xf32>
    %216 = arith.mulf %215, %105 : vector<2x64xf32>
    %cst_87 = arith.constant 2.200000e+00 : f32
    %217 = vector.broadcast %cst_87 : f32 to vector<2x64xf32>
    %218 = arith.subf %217, %28 : vector<2x64xf32>
    %cst_88 = arith.constant 2.49999952 : f32
    %219 = vector.broadcast %cst_88 : f32 to vector<2x64xf32>
    %220 = arith.mulf %218, %219 : vector<2x64xf32>
    %221 = arith.mulf %220, %112 : vector<2x64xf32>
    %222 = arith.addf %216, %221 : vector<2x64xf32>
    %cst_89 = arith.constant -2.200000e+00 : f32
    %223 = vector.broadcast %cst_89 : f32 to vector<2x64xf32>
    %224 = arith.subf %28, %223 : vector<2x64xf32>
    %cst_90 = arith.constant 1.24999976 : f32
    %225 = vector.broadcast %cst_90 : f32 to vector<2x64xf32>
    %226 = arith.mulf %224, %225 : vector<2x64xf32>
    %227 = arith.mulf %226, %123 : vector<2x64xf32>
    %cst_91 = arith.constant -1.000000e+00 : f32
    %228 = vector.broadcast %cst_91 : f32 to vector<2x64xf32>
    %229 = arith.subf %228, %28 : vector<2x64xf32>
    %cst_92 = arith.constant 1.24999976 : f32
    %230 = vector.broadcast %cst_92 : f32 to vector<2x64xf32>
    %231 = arith.mulf %229, %230 : vector<2x64xf32>
    %232 = arith.mulf %231, %134 : vector<2x64xf32>
    %233 = arith.addf %227, %232 : vector<2x64xf32>
    %cst_93 = arith.constant -1.800000e+00 : f32
    %234 = vector.broadcast %cst_93 : f32 to vector<2x64xf32>
    %235 = arith.subf %28, %234 : vector<2x64xf32>
    %cst_94 = arith.constant 1.24999976 : f32
    %236 = vector.broadcast %cst_94 : f32 to vector<2x64xf32>
    %237 = arith.mulf %235, %236 : vector<2x64xf32>
    %238 = arith.mulf %237, %134 : vector<2x64xf32>
    %cst_95 = arith.constant -6.000000e-01 : f32
    %239 = vector.broadcast %cst_95 : f32 to vector<2x64xf32>
    %240 = arith.subf %239, %28 : vector<2x64xf32>
    %cst_96 = arith.constant 1.24999976 : f32
    %241 = vector.broadcast %cst_96 : f32 to vector<2x64xf32>
    %242 = arith.mulf %240, %241 : vector<2x64xf32>
    %243 = arith.mulf %242, %145 : vector<2x64xf32>
    %244 = arith.addf %238, %243 : vector<2x64xf32>
    %cst_97 = arith.constant -1.400000e+00 : f32
    %245 = vector.broadcast %cst_97 : f32 to vector<2x64xf32>
    %246 = arith.subf %28, %245 : vector<2x64xf32>
    %cst_98 = arith.constant 1.24999976 : f32
    %247 = vector.broadcast %cst_98 : f32 to vector<2x64xf32>
    %248 = arith.mulf %246, %247 : vector<2x64xf32>
    %249 = arith.mulf %248, %145 : vector<2x64xf32>
    %cst_99 = arith.constant -2.000000e-01 : f32
    %250 = vector.broadcast %cst_99 : f32 to vector<2x64xf32>
    %251 = arith.subf %250, %28 : vector<2x64xf32>
    %cst_100 = arith.constant 1.24999976 : f32
    %252 = vector.broadcast %cst_100 : f32 to vector<2x64xf32>
    %253 = arith.mulf %251, %252 : vector<2x64xf32>
    %254 = arith.mulf %253, %156 : vector<2x64xf32>
    %255 = arith.addf %249, %254 : vector<2x64xf32>
    %cst_101 = arith.constant -1.000000e+00 : f32
    %256 = vector.broadcast %cst_101 : f32 to vector<2x64xf32>
    %257 = arith.subf %28, %256 : vector<2x64xf32>
    %cst_102 = arith.constant 1.24999976 : f32
    %258 = vector.broadcast %cst_102 : f32 to vector<2x64xf32>
    %259 = arith.mulf %257, %258 : vector<2x64xf32>
    %260 = arith.mulf %259, %156 : vector<2x64xf32>
    %cst_103 = arith.constant 2.000000e-01 : f32
    %261 = vector.broadcast %cst_103 : f32 to vector<2x64xf32>
    %262 = arith.subf %261, %28 : vector<2x64xf32>
    %cst_104 = arith.constant 1.24999976 : f32
    %263 = vector.broadcast %cst_104 : f32 to vector<2x64xf32>
    %264 = arith.mulf %262, %263 : vector<2x64xf32>
    %265 = arith.mulf %264, %167 : vector<2x64xf32>
    %266 = arith.addf %260, %265 : vector<2x64xf32>
    %cst_105 = arith.constant -6.000000e-01 : f32
    %267 = vector.broadcast %cst_105 : f32 to vector<2x64xf32>
    %268 = arith.subf %28, %267 : vector<2x64xf32>
    %cst_106 = arith.constant 1.24999976 : f32
    %269 = vector.broadcast %cst_106 : f32 to vector<2x64xf32>
    %270 = arith.mulf %268, %269 : vector<2x64xf32>
    %271 = arith.mulf %270, %167 : vector<2x64xf32>
    %cst_107 = arith.constant 6.000000e-01 : f32
    %272 = vector.broadcast %cst_107 : f32 to vector<2x64xf32>
    %273 = arith.subf %272, %28 : vector<2x64xf32>
    %cst_108 = arith.constant 1.24999976 : f32
    %274 = vector.broadcast %cst_108 : f32 to vector<2x64xf32>
    %275 = arith.mulf %273, %274 : vector<2x64xf32>
    %276 = arith.mulf %275, %178 : vector<2x64xf32>
    %277 = arith.addf %271, %276 : vector<2x64xf32>
    %cst_109 = arith.constant -2.000000e-01 : f32
    %278 = vector.broadcast %cst_109 : f32 to vector<2x64xf32>
    %279 = arith.subf %28, %278 : vector<2x64xf32>
    %cst_110 = arith.constant 1.24999976 : f32
    %280 = vector.broadcast %cst_110 : f32 to vector<2x64xf32>
    %281 = arith.mulf %279, %280 : vector<2x64xf32>
    %282 = arith.mulf %281, %178 : vector<2x64xf32>
    %cst_111 = arith.constant 1.000000e+00 : f32
    %283 = vector.broadcast %cst_111 : f32 to vector<2x64xf32>
    %284 = arith.subf %283, %28 : vector<2x64xf32>
    %cst_112 = arith.constant 1.24999976 : f32
    %285 = vector.broadcast %cst_112 : f32 to vector<2x64xf32>
    %286 = arith.mulf %284, %285 : vector<2x64xf32>
    %287 = arith.mulf %286, %189 : vector<2x64xf32>
    %288 = arith.addf %282, %287 : vector<2x64xf32>
    %cst_113 = arith.constant 2.000000e-01 : f32
    %289 = vector.broadcast %cst_113 : f32 to vector<2x64xf32>
    %290 = arith.subf %28, %289 : vector<2x64xf32>
    %cst_114 = arith.constant 1.24999976 : f32
    %291 = vector.broadcast %cst_114 : f32 to vector<2x64xf32>
    %292 = arith.mulf %290, %291 : vector<2x64xf32>
    %293 = arith.mulf %292, %189 : vector<2x64xf32>
    %cst_115 = arith.constant 1.400000e+00 : f32
    %294 = vector.broadcast %cst_115 : f32 to vector<2x64xf32>
    %295 = arith.subf %294, %28 : vector<2x64xf32>
    %cst_116 = arith.constant 1.24999976 : f32
    %296 = vector.broadcast %cst_116 : f32 to vector<2x64xf32>
    %297 = arith.mulf %295, %296 : vector<2x64xf32>
    %298 = arith.mulf %297, %200 : vector<2x64xf32>
    %299 = arith.addf %293, %298 : vector<2x64xf32>
    %cst_117 = arith.constant 6.000000e-01 : f32
    %300 = vector.broadcast %cst_117 : f32 to vector<2x64xf32>
    %301 = arith.subf %28, %300 : vector<2x64xf32>
    %cst_118 = arith.constant 1.24999976 : f32
    %302 = vector.broadcast %cst_118 : f32 to vector<2x64xf32>
    %303 = arith.mulf %301, %302 : vector<2x64xf32>
    %304 = arith.mulf %303, %200 : vector<2x64xf32>
    %cst_119 = arith.constant 1.800000e+00 : f32
    %305 = vector.broadcast %cst_119 : f32 to vector<2x64xf32>
    %306 = arith.subf %305, %28 : vector<2x64xf32>
    %cst_120 = arith.constant 1.24999976 : f32
    %307 = vector.broadcast %cst_120 : f32 to vector<2x64xf32>
    %308 = arith.mulf %306, %307 : vector<2x64xf32>
    %309 = arith.mulf %308, %211 : vector<2x64xf32>
    %310 = arith.addf %304, %309 : vector<2x64xf32>
    %cst_121 = arith.constant 1.000000e+00 : f32
    %311 = vector.broadcast %cst_121 : f32 to vector<2x64xf32>
    %312 = arith.subf %28, %311 : vector<2x64xf32>
    %cst_122 = arith.constant 1.24999976 : f32
    %313 = vector.broadcast %cst_122 : f32 to vector<2x64xf32>
    %314 = arith.mulf %312, %313 : vector<2x64xf32>
    %315 = arith.mulf %314, %211 : vector<2x64xf32>
    %cst_123 = arith.constant 2.200000e+00 : f32
    %316 = vector.broadcast %cst_123 : f32 to vector<2x64xf32>
    %317 = arith.subf %316, %28 : vector<2x64xf32>
    %cst_124 = arith.constant 1.24999976 : f32
    %318 = vector.broadcast %cst_124 : f32 to vector<2x64xf32>
    %319 = arith.mulf %317, %318 : vector<2x64xf32>
    %320 = arith.mulf %319, %222 : vector<2x64xf32>
    %321 = arith.addf %315, %320 : vector<2x64xf32>
    %cst_125 = arith.constant -2.200000e+00 : f32
    %322 = vector.broadcast %cst_125 : f32 to vector<2x64xf32>
    %323 = arith.subf %28, %322 : vector<2x64xf32>
    %cst_126 = arith.constant 0.833333134 : f32
    %324 = vector.broadcast %cst_126 : f32 to vector<2x64xf32>
    %325 = arith.mulf %323, %324 : vector<2x64xf32>
    %326 = arith.mulf %325, %233 : vector<2x64xf32>
    %cst_127 = arith.constant -6.000000e-01 : f32
    %327 = vector.broadcast %cst_127 : f32 to vector<2x64xf32>
    %328 = arith.subf %327, %28 : vector<2x64xf32>
    %cst_128 = arith.constant 0.833333134 : f32
    %329 = vector.broadcast %cst_128 : f32 to vector<2x64xf32>
    %330 = arith.mulf %328, %329 : vector<2x64xf32>
    %331 = arith.mulf %330, %244 : vector<2x64xf32>
    %332 = arith.addf %326, %331 : vector<2x64xf32>
    %cst_129 = arith.constant -1.800000e+00 : f32
    %333 = vector.broadcast %cst_129 : f32 to vector<2x64xf32>
    %334 = arith.subf %28, %333 : vector<2x64xf32>
    %cst_130 = arith.constant 0.833333134 : f32
    %335 = vector.broadcast %cst_130 : f32 to vector<2x64xf32>
    %336 = arith.mulf %334, %335 : vector<2x64xf32>
    %337 = arith.mulf %336, %244 : vector<2x64xf32>
    %cst_131 = arith.constant -2.000000e-01 : f32
    %338 = vector.broadcast %cst_131 : f32 to vector<2x64xf32>
    %339 = arith.subf %338, %28 : vector<2x64xf32>
    %cst_132 = arith.constant 0.833333134 : f32
    %340 = vector.broadcast %cst_132 : f32 to vector<2x64xf32>
    %341 = arith.mulf %339, %340 : vector<2x64xf32>
    %342 = arith.mulf %341, %255 : vector<2x64xf32>
    %343 = arith.addf %337, %342 : vector<2x64xf32>
    %cst_133 = arith.constant -1.400000e+00 : f32
    %344 = vector.broadcast %cst_133 : f32 to vector<2x64xf32>
    %345 = arith.subf %28, %344 : vector<2x64xf32>
    %cst_134 = arith.constant 0.833333134 : f32
    %346 = vector.broadcast %cst_134 : f32 to vector<2x64xf32>
    %347 = arith.mulf %345, %346 : vector<2x64xf32>
    %348 = arith.mulf %347, %255 : vector<2x64xf32>
    %cst_135 = arith.constant 2.000000e-01 : f32
    %349 = vector.broadcast %cst_135 : f32 to vector<2x64xf32>
    %350 = arith.subf %349, %28 : vector<2x64xf32>
    %cst_136 = arith.constant 0.833333134 : f32
    %351 = vector.broadcast %cst_136 : f32 to vector<2x64xf32>
    %352 = arith.mulf %350, %351 : vector<2x64xf32>
    %353 = arith.mulf %352, %266 : vector<2x64xf32>
    %354 = arith.addf %348, %353 : vector<2x64xf32>
    %cst_137 = arith.constant -1.000000e+00 : f32
    %355 = vector.broadcast %cst_137 : f32 to vector<2x64xf32>
    %356 = arith.subf %28, %355 : vector<2x64xf32>
    %cst_138 = arith.constant 0.833333134 : f32
    %357 = vector.broadcast %cst_138 : f32 to vector<2x64xf32>
    %358 = arith.mulf %356, %357 : vector<2x64xf32>
    %359 = arith.mulf %358, %266 : vector<2x64xf32>
    %cst_139 = arith.constant 6.000000e-01 : f32
    %360 = vector.broadcast %cst_139 : f32 to vector<2x64xf32>
    %361 = arith.subf %360, %28 : vector<2x64xf32>
    %cst_140 = arith.constant 0.833333134 : f32
    %362 = vector.broadcast %cst_140 : f32 to vector<2x64xf32>
    %363 = arith.mulf %361, %362 : vector<2x64xf32>
    %364 = arith.mulf %363, %277 : vector<2x64xf32>
    %365 = arith.addf %359, %364 : vector<2x64xf32>
    %cst_141 = arith.constant -6.000000e-01 : f32
    %366 = vector.broadcast %cst_141 : f32 to vector<2x64xf32>
    %367 = arith.subf %28, %366 : vector<2x64xf32>
    %cst_142 = arith.constant 0.833333134 : f32
    %368 = vector.broadcast %cst_142 : f32 to vector<2x64xf32>
    %369 = arith.mulf %367, %368 : vector<2x64xf32>
    %370 = arith.mulf %369, %277 : vector<2x64xf32>
    %cst_143 = arith.constant 1.000000e+00 : f32
    %371 = vector.broadcast %cst_143 : f32 to vector<2x64xf32>
    %372 = arith.subf %371, %28 : vector<2x64xf32>
    %cst_144 = arith.constant 0.833333134 : f32
    %373 = vector.broadcast %cst_144 : f32 to vector<2x64xf32>
    %374 = arith.mulf %372, %373 : vector<2x64xf32>
    %375 = arith.mulf %374, %288 : vector<2x64xf32>
    %376 = arith.addf %370, %375 : vector<2x64xf32>
    %cst_145 = arith.constant -2.000000e-01 : f32
    %377 = vector.broadcast %cst_145 : f32 to vector<2x64xf32>
    %378 = arith.subf %28, %377 : vector<2x64xf32>
    %cst_146 = arith.constant 0.833333134 : f32
    %379 = vector.broadcast %cst_146 : f32 to vector<2x64xf32>
    %380 = arith.mulf %378, %379 : vector<2x64xf32>
    %381 = arith.mulf %380, %288 : vector<2x64xf32>
    %cst_147 = arith.constant 1.400000e+00 : f32
    %382 = vector.broadcast %cst_147 : f32 to vector<2x64xf32>
    %383 = arith.subf %382, %28 : vector<2x64xf32>
    %cst_148 = arith.constant 0.833333134 : f32
    %384 = vector.broadcast %cst_148 : f32 to vector<2x64xf32>
    %385 = arith.mulf %383, %384 : vector<2x64xf32>
    %386 = arith.mulf %385, %299 : vector<2x64xf32>
    %387 = arith.addf %381, %386 : vector<2x64xf32>
    %cst_149 = arith.constant 2.000000e-01 : f32
    %388 = vector.broadcast %cst_149 : f32 to vector<2x64xf32>
    %389 = arith.subf %28, %388 : vector<2x64xf32>
    %cst_150 = arith.constant 0.833333134 : f32
    %390 = vector.broadcast %cst_150 : f32 to vector<2x64xf32>
    %391 = arith.mulf %389, %390 : vector<2x64xf32>
    %392 = arith.mulf %391, %299 : vector<2x64xf32>
    %cst_151 = arith.constant 1.800000e+00 : f32
    %393 = vector.broadcast %cst_151 : f32 to vector<2x64xf32>
    %394 = arith.subf %393, %28 : vector<2x64xf32>
    %cst_152 = arith.constant 0.833333134 : f32
    %395 = vector.broadcast %cst_152 : f32 to vector<2x64xf32>
    %396 = arith.mulf %394, %395 : vector<2x64xf32>
    %397 = arith.mulf %396, %310 : vector<2x64xf32>
    %398 = arith.addf %392, %397 : vector<2x64xf32>
    %cst_153 = arith.constant 6.000000e-01 : f32
    %399 = vector.broadcast %cst_153 : f32 to vector<2x64xf32>
    %400 = arith.subf %28, %399 : vector<2x64xf32>
    %cst_154 = arith.constant 0.833333134 : f32
    %401 = vector.broadcast %cst_154 : f32 to vector<2x64xf32>
    %402 = arith.mulf %400, %401 : vector<2x64xf32>
    %403 = arith.mulf %402, %310 : vector<2x64xf32>
    %cst_155 = arith.constant 2.200000e+00 : f32
    %404 = vector.broadcast %cst_155 : f32 to vector<2x64xf32>
    %405 = arith.subf %404, %28 : vector<2x64xf32>
    %cst_156 = arith.constant 0.833333134 : f32
    %406 = vector.broadcast %cst_156 : f32 to vector<2x64xf32>
    %407 = arith.mulf %405, %406 : vector<2x64xf32>
    %408 = arith.mulf %407, %321 : vector<2x64xf32>
    %409 = arith.addf %403, %408 : vector<2x64xf32>
    %410 = tpu.concatenate %35, %332, %343, %354, %365, %376, %387, %398, %409 in 1 : vector<2x64xf32>, vector<2x64xf32>, vector<2x64xf32>, vector<2x64xf32>, vector<2x64xf32>, vector<2x64xf32>, vector<2x64xf32>, vector<2x64xf32>, vector<2x64xf32> -> vector<2x576xf32>
    %cst_157 = arith.constant dense<0.000000e+00> : vector<2x4xf32>
    %411 = tpu.matmul %410, %29, %cst_157 {dimension_numbers = #tpu.dot_dimension_numbers<[1], [0], [0], [1], [0, 0, 1, 1], [], []>} : vector<2x576xf32>, vector<576x4xf32>, vector<2x4xf32> -> vector<2x4xf32>
    %c0_158 = arith.constant 0 : index
    %c0_159 = arith.constant 0 : index
    %412 = vector.load %arg11[%c0_158, %c0_159] : memref<36x16xf32, #tpu.memory_space<vmem>>, vector<36x16xf32>
    %413 = arith.negf %411 : vector<2x4xf32>
    %414 = math.exp %413 : vector<2x4xf32>
    %cst_160 = arith.constant 1.000000e+00 : f32
    %415 = vector.broadcast %cst_160 : f32 to vector<2x4xf32>
    %416 = arith.addf %415, %414 : vector<2x4xf32>
    %417 = arith.divf %415, %416 : vector<2x4xf32>
    %418 = arith.mulf %411, %417 : vector<2x4xf32>
    %cst_161 = arith.constant -2.200000e+00 : f32
    %419 = vector.broadcast %cst_161 : f32 to vector<2x4xf32>
    %420 = arith.cmpf oge, %411, %419 : vector<2x4xf32>
    %cst_162 = arith.constant -1.800000e+00 : f32
    %421 = vector.broadcast %cst_162 : f32 to vector<2x4xf32>
    %422 = arith.cmpf olt, %411, %421 : vector<2x4xf32>
    %423 = arith.andi %420, %422 : vector<2x4xi1>
    %424 = arith.extui %423 : vector<2x4xi1> to vector<2x4xi32>
    %425 = arith.sitofp %424 : vector<2x4xi32> to vector<2x4xf32>
    %cst_163 = arith.constant -1.800000e+00 : f32
    %426 = vector.broadcast %cst_163 : f32 to vector<2x4xf32>
    %427 = arith.cmpf oge, %411, %426 : vector<2x4xf32>
    %cst_164 = arith.constant -1.400000e+00 : f32
    %428 = vector.broadcast %cst_164 : f32 to vector<2x4xf32>
    %429 = arith.cmpf olt, %411, %428 : vector<2x4xf32>
    %430 = arith.andi %427, %429 : vector<2x4xi1>
    %431 = arith.extui %430 : vector<2x4xi1> to vector<2x4xi32>
    %432 = arith.sitofp %431 : vector<2x4xi32> to vector<2x4xf32>
    %cst_165 = arith.constant -1.400000e+00 : f32
    %433 = vector.broadcast %cst_165 : f32 to vector<2x4xf32>
    %434 = arith.cmpf oge, %411, %433 : vector<2x4xf32>
    %cst_166 = arith.constant -1.000000e+00 : f32
    %435 = vector.broadcast %cst_166 : f32 to vector<2x4xf32>
    %436 = arith.cmpf olt, %411, %435 : vector<2x4xf32>
    %437 = arith.andi %434, %436 : vector<2x4xi1>
    %438 = arith.extui %437 : vector<2x4xi1> to vector<2x4xi32>
    %439 = arith.sitofp %438 : vector<2x4xi32> to vector<2x4xf32>
    %cst_167 = arith.constant -1.000000e+00 : f32
    %440 = vector.broadcast %cst_167 : f32 to vector<2x4xf32>
    %441 = arith.cmpf oge, %411, %440 : vector<2x4xf32>
    %cst_168 = arith.constant -6.000000e-01 : f32
    %442 = vector.broadcast %cst_168 : f32 to vector<2x4xf32>
    %443 = arith.cmpf olt, %411, %442 : vector<2x4xf32>
    %444 = arith.andi %441, %443 : vector<2x4xi1>
    %445 = arith.extui %444 : vector<2x4xi1> to vector<2x4xi32>
    %446 = arith.sitofp %445 : vector<2x4xi32> to vector<2x4xf32>
    %cst_169 = arith.constant -6.000000e-01 : f32
    %447 = vector.broadcast %cst_169 : f32 to vector<2x4xf32>
    %448 = arith.cmpf oge, %411, %447 : vector<2x4xf32>
    %cst_170 = arith.constant -2.000000e-01 : f32
    %449 = vector.broadcast %cst_170 : f32 to vector<2x4xf32>
    %450 = arith.cmpf olt, %411, %449 : vector<2x4xf32>
    %451 = arith.andi %448, %450 : vector<2x4xi1>
    %452 = arith.extui %451 : vector<2x4xi1> to vector<2x4xi32>
    %453 = arith.sitofp %452 : vector<2x4xi32> to vector<2x4xf32>
    %cst_171 = arith.constant -2.000000e-01 : f32
    %454 = vector.broadcast %cst_171 : f32 to vector<2x4xf32>
    %455 = arith.cmpf oge, %411, %454 : vector<2x4xf32>
    %cst_172 = arith.constant 2.000000e-01 : f32
    %456 = vector.broadcast %cst_172 : f32 to vector<2x4xf32>
    %457 = arith.cmpf olt, %411, %456 : vector<2x4xf32>
    %458 = arith.andi %455, %457 : vector<2x4xi1>
    %459 = arith.extui %458 : vector<2x4xi1> to vector<2x4xi32>
    %460 = arith.sitofp %459 : vector<2x4xi32> to vector<2x4xf32>
    %cst_173 = arith.constant 2.000000e-01 : f32
    %461 = vector.broadcast %cst_173 : f32 to vector<2x4xf32>
    %462 = arith.cmpf oge, %411, %461 : vector<2x4xf32>
    %cst_174 = arith.constant 6.000000e-01 : f32
    %463 = vector.broadcast %cst_174 : f32 to vector<2x4xf32>
    %464 = arith.cmpf olt, %411, %463 : vector<2x4xf32>
    %465 = arith.andi %462, %464 : vector<2x4xi1>
    %466 = arith.extui %465 : vector<2x4xi1> to vector<2x4xi32>
    %467 = arith.sitofp %466 : vector<2x4xi32> to vector<2x4xf32>
    %cst_175 = arith.constant 6.000000e-01 : f32
    %468 = vector.broadcast %cst_175 : f32 to vector<2x4xf32>
    %469 = arith.cmpf oge, %411, %468 : vector<2x4xf32>
    %cst_176 = arith.constant 1.000000e+00 : f32
    %470 = vector.broadcast %cst_176 : f32 to vector<2x4xf32>
    %471 = arith.cmpf olt, %411, %470 : vector<2x4xf32>
    %472 = arith.andi %469, %471 : vector<2x4xi1>
    %473 = arith.extui %472 : vector<2x4xi1> to vector<2x4xi32>
    %474 = arith.sitofp %473 : vector<2x4xi32> to vector<2x4xf32>
    %cst_177 = arith.constant 1.000000e+00 : f32
    %475 = vector.broadcast %cst_177 : f32 to vector<2x4xf32>
    %476 = arith.cmpf oge, %411, %475 : vector<2x4xf32>
    %cst_178 = arith.constant 1.400000e+00 : f32
    %477 = vector.broadcast %cst_178 : f32 to vector<2x4xf32>
    %478 = arith.cmpf olt, %411, %477 : vector<2x4xf32>
    %479 = arith.andi %476, %478 : vector<2x4xi1>
    %480 = arith.extui %479 : vector<2x4xi1> to vector<2x4xi32>
    %481 = arith.sitofp %480 : vector<2x4xi32> to vector<2x4xf32>
    %cst_179 = arith.constant 1.400000e+00 : f32
    %482 = vector.broadcast %cst_179 : f32 to vector<2x4xf32>
    %483 = arith.cmpf oge, %411, %482 : vector<2x4xf32>
    %cst_180 = arith.constant 1.800000e+00 : f32
    %484 = vector.broadcast %cst_180 : f32 to vector<2x4xf32>
    %485 = arith.cmpf olt, %411, %484 : vector<2x4xf32>
    %486 = arith.andi %483, %485 : vector<2x4xi1>
    %487 = arith.extui %486 : vector<2x4xi1> to vector<2x4xi32>
    %488 = arith.sitofp %487 : vector<2x4xi32> to vector<2x4xf32>
    %cst_181 = arith.constant 1.800000e+00 : f32
    %489 = vector.broadcast %cst_181 : f32 to vector<2x4xf32>
    %490 = arith.cmpf oge, %411, %489 : vector<2x4xf32>
    %cst_182 = arith.constant 2.200000e+00 : f32
    %491 = vector.broadcast %cst_182 : f32 to vector<2x4xf32>
    %492 = arith.cmpf olt, %411, %491 : vector<2x4xf32>
    %493 = arith.andi %490, %492 : vector<2x4xi1>
    %494 = arith.extui %493 : vector<2x4xi1> to vector<2x4xi32>
    %495 = arith.sitofp %494 : vector<2x4xi32> to vector<2x4xf32>
    %cst_183 = arith.constant -2.200000e+00 : f32
    %496 = vector.broadcast %cst_183 : f32 to vector<2x4xf32>
    %497 = arith.subf %411, %496 : vector<2x4xf32>
    %cst_184 = arith.constant 2.49999952 : f32
    %498 = vector.broadcast %cst_184 : f32 to vector<2x4xf32>
    %499 = arith.mulf %497, %498 : vector<2x4xf32>
    %500 = arith.mulf %499, %425 : vector<2x4xf32>
    %cst_185 = arith.constant -1.400000e+00 : f32
    %501 = vector.broadcast %cst_185 : f32 to vector<2x4xf32>
    %502 = arith.subf %501, %411 : vector<2x4xf32>
    %cst_186 = arith.constant 2.49999952 : f32
    %503 = vector.broadcast %cst_186 : f32 to vector<2x4xf32>
    %504 = arith.mulf %502, %503 : vector<2x4xf32>
    %505 = arith.mulf %504, %432 : vector<2x4xf32>
    %506 = arith.addf %500, %505 : vector<2x4xf32>
    %cst_187 = arith.constant -1.800000e+00 : f32
    %507 = vector.broadcast %cst_187 : f32 to vector<2x4xf32>
    %508 = arith.subf %411, %507 : vector<2x4xf32>
    %cst_188 = arith.constant 2.49999952 : f32
    %509 = vector.broadcast %cst_188 : f32 to vector<2x4xf32>
    %510 = arith.mulf %508, %509 : vector<2x4xf32>
    %511 = arith.mulf %510, %432 : vector<2x4xf32>
    %cst_189 = arith.constant -1.000000e+00 : f32
    %512 = vector.broadcast %cst_189 : f32 to vector<2x4xf32>
    %513 = arith.subf %512, %411 : vector<2x4xf32>
    %cst_190 = arith.constant 2.49999952 : f32
    %514 = vector.broadcast %cst_190 : f32 to vector<2x4xf32>
    %515 = arith.mulf %513, %514 : vector<2x4xf32>
    %516 = arith.mulf %515, %439 : vector<2x4xf32>
    %517 = arith.addf %511, %516 : vector<2x4xf32>
    %cst_191 = arith.constant -1.400000e+00 : f32
    %518 = vector.broadcast %cst_191 : f32 to vector<2x4xf32>
    %519 = arith.subf %411, %518 : vector<2x4xf32>
    %cst_192 = arith.constant 2.49999952 : f32
    %520 = vector.broadcast %cst_192 : f32 to vector<2x4xf32>
    %521 = arith.mulf %519, %520 : vector<2x4xf32>
    %522 = arith.mulf %521, %439 : vector<2x4xf32>
    %cst_193 = arith.constant -6.000000e-01 : f32
    %523 = vector.broadcast %cst_193 : f32 to vector<2x4xf32>
    %524 = arith.subf %523, %411 : vector<2x4xf32>
    %cst_194 = arith.constant 2.49999952 : f32
    %525 = vector.broadcast %cst_194 : f32 to vector<2x4xf32>
    %526 = arith.mulf %524, %525 : vector<2x4xf32>
    %527 = arith.mulf %526, %446 : vector<2x4xf32>
    %528 = arith.addf %522, %527 : vector<2x4xf32>
    %cst_195 = arith.constant -1.000000e+00 : f32
    %529 = vector.broadcast %cst_195 : f32 to vector<2x4xf32>
    %530 = arith.subf %411, %529 : vector<2x4xf32>
    %cst_196 = arith.constant 2.49999952 : f32
    %531 = vector.broadcast %cst_196 : f32 to vector<2x4xf32>
    %532 = arith.mulf %530, %531 : vector<2x4xf32>
    %533 = arith.mulf %532, %446 : vector<2x4xf32>
    %cst_197 = arith.constant -2.000000e-01 : f32
    %534 = vector.broadcast %cst_197 : f32 to vector<2x4xf32>
    %535 = arith.subf %534, %411 : vector<2x4xf32>
    %cst_198 = arith.constant 2.49999952 : f32
    %536 = vector.broadcast %cst_198 : f32 to vector<2x4xf32>
    %537 = arith.mulf %535, %536 : vector<2x4xf32>
    %538 = arith.mulf %537, %453 : vector<2x4xf32>
    %539 = arith.addf %533, %538 : vector<2x4xf32>
    %cst_199 = arith.constant -6.000000e-01 : f32
    %540 = vector.broadcast %cst_199 : f32 to vector<2x4xf32>
    %541 = arith.subf %411, %540 : vector<2x4xf32>
    %cst_200 = arith.constant 2.49999952 : f32
    %542 = vector.broadcast %cst_200 : f32 to vector<2x4xf32>
    %543 = arith.mulf %541, %542 : vector<2x4xf32>
    %544 = arith.mulf %543, %453 : vector<2x4xf32>
    %cst_201 = arith.constant 2.000000e-01 : f32
    %545 = vector.broadcast %cst_201 : f32 to vector<2x4xf32>
    %546 = arith.subf %545, %411 : vector<2x4xf32>
    %cst_202 = arith.constant 2.49999952 : f32
    %547 = vector.broadcast %cst_202 : f32 to vector<2x4xf32>
    %548 = arith.mulf %546, %547 : vector<2x4xf32>
    %549 = arith.mulf %548, %460 : vector<2x4xf32>
    %550 = arith.addf %544, %549 : vector<2x4xf32>
    %cst_203 = arith.constant -2.000000e-01 : f32
    %551 = vector.broadcast %cst_203 : f32 to vector<2x4xf32>
    %552 = arith.subf %411, %551 : vector<2x4xf32>
    %cst_204 = arith.constant 2.49999952 : f32
    %553 = vector.broadcast %cst_204 : f32 to vector<2x4xf32>
    %554 = arith.mulf %552, %553 : vector<2x4xf32>
    %555 = arith.mulf %554, %460 : vector<2x4xf32>
    %cst_205 = arith.constant 6.000000e-01 : f32
    %556 = vector.broadcast %cst_205 : f32 to vector<2x4xf32>
    %557 = arith.subf %556, %411 : vector<2x4xf32>
    %cst_206 = arith.constant 2.49999952 : f32
    %558 = vector.broadcast %cst_206 : f32 to vector<2x4xf32>
    %559 = arith.mulf %557, %558 : vector<2x4xf32>
    %560 = arith.mulf %559, %467 : vector<2x4xf32>
    %561 = arith.addf %555, %560 : vector<2x4xf32>
    %cst_207 = arith.constant 2.000000e-01 : f32
    %562 = vector.broadcast %cst_207 : f32 to vector<2x4xf32>
    %563 = arith.subf %411, %562 : vector<2x4xf32>
    %cst_208 = arith.constant 2.49999952 : f32
    %564 = vector.broadcast %cst_208 : f32 to vector<2x4xf32>
    %565 = arith.mulf %563, %564 : vector<2x4xf32>
    %566 = arith.mulf %565, %467 : vector<2x4xf32>
    %cst_209 = arith.constant 1.000000e+00 : f32
    %567 = vector.broadcast %cst_209 : f32 to vector<2x4xf32>
    %568 = arith.subf %567, %411 : vector<2x4xf32>
    %cst_210 = arith.constant 2.49999952 : f32
    %569 = vector.broadcast %cst_210 : f32 to vector<2x4xf32>
    %570 = arith.mulf %568, %569 : vector<2x4xf32>
    %571 = arith.mulf %570, %474 : vector<2x4xf32>
    %572 = arith.addf %566, %571 : vector<2x4xf32>
    %cst_211 = arith.constant 6.000000e-01 : f32
    %573 = vector.broadcast %cst_211 : f32 to vector<2x4xf32>
    %574 = arith.subf %411, %573 : vector<2x4xf32>
    %cst_212 = arith.constant 2.49999952 : f32
    %575 = vector.broadcast %cst_212 : f32 to vector<2x4xf32>
    %576 = arith.mulf %574, %575 : vector<2x4xf32>
    %577 = arith.mulf %576, %474 : vector<2x4xf32>
    %cst_213 = arith.constant 1.400000e+00 : f32
    %578 = vector.broadcast %cst_213 : f32 to vector<2x4xf32>
    %579 = arith.subf %578, %411 : vector<2x4xf32>
    %cst_214 = arith.constant 2.49999952 : f32
    %580 = vector.broadcast %cst_214 : f32 to vector<2x4xf32>
    %581 = arith.mulf %579, %580 : vector<2x4xf32>
    %582 = arith.mulf %581, %481 : vector<2x4xf32>
    %583 = arith.addf %577, %582 : vector<2x4xf32>
    %cst_215 = arith.constant 1.000000e+00 : f32
    %584 = vector.broadcast %cst_215 : f32 to vector<2x4xf32>
    %585 = arith.subf %411, %584 : vector<2x4xf32>
    %cst_216 = arith.constant 2.49999952 : f32
    %586 = vector.broadcast %cst_216 : f32 to vector<2x4xf32>
    %587 = arith.mulf %585, %586 : vector<2x4xf32>
    %588 = arith.mulf %587, %481 : vector<2x4xf32>
    %cst_217 = arith.constant 1.800000e+00 : f32
    %589 = vector.broadcast %cst_217 : f32 to vector<2x4xf32>
    %590 = arith.subf %589, %411 : vector<2x4xf32>
    %cst_218 = arith.constant 2.49999952 : f32
    %591 = vector.broadcast %cst_218 : f32 to vector<2x4xf32>
    %592 = arith.mulf %590, %591 : vector<2x4xf32>
    %593 = arith.mulf %592, %488 : vector<2x4xf32>
    %594 = arith.addf %588, %593 : vector<2x4xf32>
    %cst_219 = arith.constant 1.400000e+00 : f32
    %595 = vector.broadcast %cst_219 : f32 to vector<2x4xf32>
    %596 = arith.subf %411, %595 : vector<2x4xf32>
    %cst_220 = arith.constant 2.49999952 : f32
    %597 = vector.broadcast %cst_220 : f32 to vector<2x4xf32>
    %598 = arith.mulf %596, %597 : vector<2x4xf32>
    %599 = arith.mulf %598, %488 : vector<2x4xf32>
    %cst_221 = arith.constant 2.200000e+00 : f32
    %600 = vector.broadcast %cst_221 : f32 to vector<2x4xf32>
    %601 = arith.subf %600, %411 : vector<2x4xf32>
    %cst_222 = arith.constant 2.49999952 : f32
    %602 = vector.broadcast %cst_222 : f32 to vector<2x4xf32>
    %603 = arith.mulf %601, %602 : vector<2x4xf32>
    %604 = arith.mulf %603, %495 : vector<2x4xf32>
    %605 = arith.addf %599, %604 : vector<2x4xf32>
    %cst_223 = arith.constant -2.200000e+00 : f32
    %606 = vector.broadcast %cst_223 : f32 to vector<2x4xf32>
    %607 = arith.subf %411, %606 : vector<2x4xf32>
    %cst_224 = arith.constant 1.24999976 : f32
    %608 = vector.broadcast %cst_224 : f32 to vector<2x4xf32>
    %609 = arith.mulf %607, %608 : vector<2x4xf32>
    %610 = arith.mulf %609, %506 : vector<2x4xf32>
    %cst_225 = arith.constant -1.000000e+00 : f32
    %611 = vector.broadcast %cst_225 : f32 to vector<2x4xf32>
    %612 = arith.subf %611, %411 : vector<2x4xf32>
    %cst_226 = arith.constant 1.24999976 : f32
    %613 = vector.broadcast %cst_226 : f32 to vector<2x4xf32>
    %614 = arith.mulf %612, %613 : vector<2x4xf32>
    %615 = arith.mulf %614, %517 : vector<2x4xf32>
    %616 = arith.addf %610, %615 : vector<2x4xf32>
    %cst_227 = arith.constant -1.800000e+00 : f32
    %617 = vector.broadcast %cst_227 : f32 to vector<2x4xf32>
    %618 = arith.subf %411, %617 : vector<2x4xf32>
    %cst_228 = arith.constant 1.24999976 : f32
    %619 = vector.broadcast %cst_228 : f32 to vector<2x4xf32>
    %620 = arith.mulf %618, %619 : vector<2x4xf32>
    %621 = arith.mulf %620, %517 : vector<2x4xf32>
    %cst_229 = arith.constant -6.000000e-01 : f32
    %622 = vector.broadcast %cst_229 : f32 to vector<2x4xf32>
    %623 = arith.subf %622, %411 : vector<2x4xf32>
    %cst_230 = arith.constant 1.24999976 : f32
    %624 = vector.broadcast %cst_230 : f32 to vector<2x4xf32>
    %625 = arith.mulf %623, %624 : vector<2x4xf32>
    %626 = arith.mulf %625, %528 : vector<2x4xf32>
    %627 = arith.addf %621, %626 : vector<2x4xf32>
    %cst_231 = arith.constant -1.400000e+00 : f32
    %628 = vector.broadcast %cst_231 : f32 to vector<2x4xf32>
    %629 = arith.subf %411, %628 : vector<2x4xf32>
    %cst_232 = arith.constant 1.24999976 : f32
    %630 = vector.broadcast %cst_232 : f32 to vector<2x4xf32>
    %631 = arith.mulf %629, %630 : vector<2x4xf32>
    %632 = arith.mulf %631, %528 : vector<2x4xf32>
    %cst_233 = arith.constant -2.000000e-01 : f32
    %633 = vector.broadcast %cst_233 : f32 to vector<2x4xf32>
    %634 = arith.subf %633, %411 : vector<2x4xf32>
    %cst_234 = arith.constant 1.24999976 : f32
    %635 = vector.broadcast %cst_234 : f32 to vector<2x4xf32>
    %636 = arith.mulf %634, %635 : vector<2x4xf32>
    %637 = arith.mulf %636, %539 : vector<2x4xf32>
    %638 = arith.addf %632, %637 : vector<2x4xf32>
    %cst_235 = arith.constant -1.000000e+00 : f32
    %639 = vector.broadcast %cst_235 : f32 to vector<2x4xf32>
    %640 = arith.subf %411, %639 : vector<2x4xf32>
    %cst_236 = arith.constant 1.24999976 : f32
    %641 = vector.broadcast %cst_236 : f32 to vector<2x4xf32>
    %642 = arith.mulf %640, %641 : vector<2x4xf32>
    %643 = arith.mulf %642, %539 : vector<2x4xf32>
    %cst_237 = arith.constant 2.000000e-01 : f32
    %644 = vector.broadcast %cst_237 : f32 to vector<2x4xf32>
    %645 = arith.subf %644, %411 : vector<2x4xf32>
    %cst_238 = arith.constant 1.24999976 : f32
    %646 = vector.broadcast %cst_238 : f32 to vector<2x4xf32>
    %647 = arith.mulf %645, %646 : vector<2x4xf32>
    %648 = arith.mulf %647, %550 : vector<2x4xf32>
    %649 = arith.addf %643, %648 : vector<2x4xf32>
    %cst_239 = arith.constant -6.000000e-01 : f32
    %650 = vector.broadcast %cst_239 : f32 to vector<2x4xf32>
    %651 = arith.subf %411, %650 : vector<2x4xf32>
    %cst_240 = arith.constant 1.24999976 : f32
    %652 = vector.broadcast %cst_240 : f32 to vector<2x4xf32>
    %653 = arith.mulf %651, %652 : vector<2x4xf32>
    %654 = arith.mulf %653, %550 : vector<2x4xf32>
    %cst_241 = arith.constant 6.000000e-01 : f32
    %655 = vector.broadcast %cst_241 : f32 to vector<2x4xf32>
    %656 = arith.subf %655, %411 : vector<2x4xf32>
    %cst_242 = arith.constant 1.24999976 : f32
    %657 = vector.broadcast %cst_242 : f32 to vector<2x4xf32>
    %658 = arith.mulf %656, %657 : vector<2x4xf32>
    %659 = arith.mulf %658, %561 : vector<2x4xf32>
    %660 = arith.addf %654, %659 : vector<2x4xf32>
    %cst_243 = arith.constant -2.000000e-01 : f32
    %661 = vector.broadcast %cst_243 : f32 to vector<2x4xf32>
    %662 = arith.subf %411, %661 : vector<2x4xf32>
    %cst_244 = arith.constant 1.24999976 : f32
    %663 = vector.broadcast %cst_244 : f32 to vector<2x4xf32>
    %664 = arith.mulf %662, %663 : vector<2x4xf32>
    %665 = arith.mulf %664, %561 : vector<2x4xf32>
    %cst_245 = arith.constant 1.000000e+00 : f32
    %666 = vector.broadcast %cst_245 : f32 to vector<2x4xf32>
    %667 = arith.subf %666, %411 : vector<2x4xf32>
    %cst_246 = arith.constant 1.24999976 : f32
    %668 = vector.broadcast %cst_246 : f32 to vector<2x4xf32>
    %669 = arith.mulf %667, %668 : vector<2x4xf32>
    %670 = arith.mulf %669, %572 : vector<2x4xf32>
    %671 = arith.addf %665, %670 : vector<2x4xf32>
    %cst_247 = arith.constant 2.000000e-01 : f32
    %672 = vector.broadcast %cst_247 : f32 to vector<2x4xf32>
    %673 = arith.subf %411, %672 : vector<2x4xf32>
    %cst_248 = arith.constant 1.24999976 : f32
    %674 = vector.broadcast %cst_248 : f32 to vector<2x4xf32>
    %675 = arith.mulf %673, %674 : vector<2x4xf32>
    %676 = arith.mulf %675, %572 : vector<2x4xf32>
    %cst_249 = arith.constant 1.400000e+00 : f32
    %677 = vector.broadcast %cst_249 : f32 to vector<2x4xf32>
    %678 = arith.subf %677, %411 : vector<2x4xf32>
    %cst_250 = arith.constant 1.24999976 : f32
    %679 = vector.broadcast %cst_250 : f32 to vector<2x4xf32>
    %680 = arith.mulf %678, %679 : vector<2x4xf32>
    %681 = arith.mulf %680, %583 : vector<2x4xf32>
    %682 = arith.addf %676, %681 : vector<2x4xf32>
    %cst_251 = arith.constant 6.000000e-01 : f32
    %683 = vector.broadcast %cst_251 : f32 to vector<2x4xf32>
    %684 = arith.subf %411, %683 : vector<2x4xf32>
    %cst_252 = arith.constant 1.24999976 : f32
    %685 = vector.broadcast %cst_252 : f32 to vector<2x4xf32>
    %686 = arith.mulf %684, %685 : vector<2x4xf32>
    %687 = arith.mulf %686, %583 : vector<2x4xf32>
    %cst_253 = arith.constant 1.800000e+00 : f32
    %688 = vector.broadcast %cst_253 : f32 to vector<2x4xf32>
    %689 = arith.subf %688, %411 : vector<2x4xf32>
    %cst_254 = arith.constant 1.24999976 : f32
    %690 = vector.broadcast %cst_254 : f32 to vector<2x4xf32>
    %691 = arith.mulf %689, %690 : vector<2x4xf32>
    %692 = arith.mulf %691, %594 : vector<2x4xf32>
    %693 = arith.addf %687, %692 : vector<2x4xf32>
    %cst_255 = arith.constant 1.000000e+00 : f32
    %694 = vector.broadcast %cst_255 : f32 to vector<2x4xf32>
    %695 = arith.subf %411, %694 : vector<2x4xf32>
    %cst_256 = arith.constant 1.24999976 : f32
    %696 = vector.broadcast %cst_256 : f32 to vector<2x4xf32>
    %697 = arith.mulf %695, %696 : vector<2x4xf32>
    %698 = arith.mulf %697, %594 : vector<2x4xf32>
    %cst_257 = arith.constant 2.200000e+00 : f32
    %699 = vector.broadcast %cst_257 : f32 to vector<2x4xf32>
    %700 = arith.subf %699, %411 : vector<2x4xf32>
    %cst_258 = arith.constant 1.24999976 : f32
    %701 = vector.broadcast %cst_258 : f32 to vector<2x4xf32>
    %702 = arith.mulf %700, %701 : vector<2x4xf32>
    %703 = arith.mulf %702, %605 : vector<2x4xf32>
    %704 = arith.addf %698, %703 : vector<2x4xf32>
    %cst_259 = arith.constant -2.200000e+00 : f32
    %705 = vector.broadcast %cst_259 : f32 to vector<2x4xf32>
    %706 = arith.subf %411, %705 : vector<2x4xf32>
    %cst_260 = arith.constant 0.833333134 : f32
    %707 = vector.broadcast %cst_260 : f32 to vector<2x4xf32>
    %708 = arith.mulf %706, %707 : vector<2x4xf32>
    %709 = arith.mulf %708, %616 : vector<2x4xf32>
    %cst_261 = arith.constant -6.000000e-01 : f32
    %710 = vector.broadcast %cst_261 : f32 to vector<2x4xf32>
    %711 = arith.subf %710, %411 : vector<2x4xf32>
    %cst_262 = arith.constant 0.833333134 : f32
    %712 = vector.broadcast %cst_262 : f32 to vector<2x4xf32>
    %713 = arith.mulf %711, %712 : vector<2x4xf32>
    %714 = arith.mulf %713, %627 : vector<2x4xf32>
    %715 = arith.addf %709, %714 : vector<2x4xf32>
    %cst_263 = arith.constant -1.800000e+00 : f32
    %716 = vector.broadcast %cst_263 : f32 to vector<2x4xf32>
    %717 = arith.subf %411, %716 : vector<2x4xf32>
    %cst_264 = arith.constant 0.833333134 : f32
    %718 = vector.broadcast %cst_264 : f32 to vector<2x4xf32>
    %719 = arith.mulf %717, %718 : vector<2x4xf32>
    %720 = arith.mulf %719, %627 : vector<2x4xf32>
    %cst_265 = arith.constant -2.000000e-01 : f32
    %721 = vector.broadcast %cst_265 : f32 to vector<2x4xf32>
    %722 = arith.subf %721, %411 : vector<2x4xf32>
    %cst_266 = arith.constant 0.833333134 : f32
    %723 = vector.broadcast %cst_266 : f32 to vector<2x4xf32>
    %724 = arith.mulf %722, %723 : vector<2x4xf32>
    %725 = arith.mulf %724, %638 : vector<2x4xf32>
    %726 = arith.addf %720, %725 : vector<2x4xf32>
    %cst_267 = arith.constant -1.400000e+00 : f32
    %727 = vector.broadcast %cst_267 : f32 to vector<2x4xf32>
    %728 = arith.subf %411, %727 : vector<2x4xf32>
    %cst_268 = arith.constant 0.833333134 : f32
    %729 = vector.broadcast %cst_268 : f32 to vector<2x4xf32>
    %730 = arith.mulf %728, %729 : vector<2x4xf32>
    %731 = arith.mulf %730, %638 : vector<2x4xf32>
    %cst_269 = arith.constant 2.000000e-01 : f32
    %732 = vector.broadcast %cst_269 : f32 to vector<2x4xf32>
    %733 = arith.subf %732, %411 : vector<2x4xf32>
    %cst_270 = arith.constant 0.833333134 : f32
    %734 = vector.broadcast %cst_270 : f32 to vector<2x4xf32>
    %735 = arith.mulf %733, %734 : vector<2x4xf32>
    %736 = arith.mulf %735, %649 : vector<2x4xf32>
    %737 = arith.addf %731, %736 : vector<2x4xf32>
    %cst_271 = arith.constant -1.000000e+00 : f32
    %738 = vector.broadcast %cst_271 : f32 to vector<2x4xf32>
    %739 = arith.subf %411, %738 : vector<2x4xf32>
    %cst_272 = arith.constant 0.833333134 : f32
    %740 = vector.broadcast %cst_272 : f32 to vector<2x4xf32>
    %741 = arith.mulf %739, %740 : vector<2x4xf32>
    %742 = arith.mulf %741, %649 : vector<2x4xf32>
    %cst_273 = arith.constant 6.000000e-01 : f32
    %743 = vector.broadcast %cst_273 : f32 to vector<2x4xf32>
    %744 = arith.subf %743, %411 : vector<2x4xf32>
    %cst_274 = arith.constant 0.833333134 : f32
    %745 = vector.broadcast %cst_274 : f32 to vector<2x4xf32>
    %746 = arith.mulf %744, %745 : vector<2x4xf32>
    %747 = arith.mulf %746, %660 : vector<2x4xf32>
    %748 = arith.addf %742, %747 : vector<2x4xf32>
    %cst_275 = arith.constant -6.000000e-01 : f32
    %749 = vector.broadcast %cst_275 : f32 to vector<2x4xf32>
    %750 = arith.subf %411, %749 : vector<2x4xf32>
    %cst_276 = arith.constant 0.833333134 : f32
    %751 = vector.broadcast %cst_276 : f32 to vector<2x4xf32>
    %752 = arith.mulf %750, %751 : vector<2x4xf32>
    %753 = arith.mulf %752, %660 : vector<2x4xf32>
    %cst_277 = arith.constant 1.000000e+00 : f32
    %754 = vector.broadcast %cst_277 : f32 to vector<2x4xf32>
    %755 = arith.subf %754, %411 : vector<2x4xf32>
    %cst_278 = arith.constant 0.833333134 : f32
    %756 = vector.broadcast %cst_278 : f32 to vector<2x4xf32>
    %757 = arith.mulf %755, %756 : vector<2x4xf32>
    %758 = arith.mulf %757, %671 : vector<2x4xf32>
    %759 = arith.addf %753, %758 : vector<2x4xf32>
    %cst_279 = arith.constant -2.000000e-01 : f32
    %760 = vector.broadcast %cst_279 : f32 to vector<2x4xf32>
    %761 = arith.subf %411, %760 : vector<2x4xf32>
    %cst_280 = arith.constant 0.833333134 : f32
    %762 = vector.broadcast %cst_280 : f32 to vector<2x4xf32>
    %763 = arith.mulf %761, %762 : vector<2x4xf32>
    %764 = arith.mulf %763, %671 : vector<2x4xf32>
    %cst_281 = arith.constant 1.400000e+00 : f32
    %765 = vector.broadcast %cst_281 : f32 to vector<2x4xf32>
    %766 = arith.subf %765, %411 : vector<2x4xf32>
    %cst_282 = arith.constant 0.833333134 : f32
    %767 = vector.broadcast %cst_282 : f32 to vector<2x4xf32>
    %768 = arith.mulf %766, %767 : vector<2x4xf32>
    %769 = arith.mulf %768, %682 : vector<2x4xf32>
    %770 = arith.addf %764, %769 : vector<2x4xf32>
    %cst_283 = arith.constant 2.000000e-01 : f32
    %771 = vector.broadcast %cst_283 : f32 to vector<2x4xf32>
    %772 = arith.subf %411, %771 : vector<2x4xf32>
    %cst_284 = arith.constant 0.833333134 : f32
    %773 = vector.broadcast %cst_284 : f32 to vector<2x4xf32>
    %774 = arith.mulf %772, %773 : vector<2x4xf32>
    %775 = arith.mulf %774, %682 : vector<2x4xf32>
    %cst_285 = arith.constant 1.800000e+00 : f32
    %776 = vector.broadcast %cst_285 : f32 to vector<2x4xf32>
    %777 = arith.subf %776, %411 : vector<2x4xf32>
    %cst_286 = arith.constant 0.833333134 : f32
    %778 = vector.broadcast %cst_286 : f32 to vector<2x4xf32>
    %779 = arith.mulf %777, %778 : vector<2x4xf32>
    %780 = arith.mulf %779, %693 : vector<2x4xf32>
    %781 = arith.addf %775, %780 : vector<2x4xf32>
    %cst_287 = arith.constant 6.000000e-01 : f32
    %782 = vector.broadcast %cst_287 : f32 to vector<2x4xf32>
    %783 = arith.subf %411, %782 : vector<2x4xf32>
    %cst_288 = arith.constant 0.833333134 : f32
    %784 = vector.broadcast %cst_288 : f32 to vector<2x4xf32>
    %785 = arith.mulf %783, %784 : vector<2x4xf32>
    %786 = arith.mulf %785, %693 : vector<2x4xf32>
    %cst_289 = arith.constant 2.200000e+00 : f32
    %787 = vector.broadcast %cst_289 : f32 to vector<2x4xf32>
    %788 = arith.subf %787, %411 : vector<2x4xf32>
    %cst_290 = arith.constant 0.833333134 : f32
    %789 = vector.broadcast %cst_290 : f32 to vector<2x4xf32>
    %790 = arith.mulf %788, %789 : vector<2x4xf32>
    %791 = arith.mulf %790, %704 : vector<2x4xf32>
    %792 = arith.addf %786, %791 : vector<2x4xf32>
    %793 = tpu.concatenate %418, %715, %726, %737, %748, %759, %770, %781, %792 in 1 : vector<2x4xf32>, vector<2x4xf32>, vector<2x4xf32>, vector<2x4xf32>, vector<2x4xf32>, vector<2x4xf32>, vector<2x4xf32>, vector<2x4xf32>, vector<2x4xf32> -> vector<2x36xf32>
    %cst_291 = arith.constant dense<0.000000e+00> : vector<2x16xf32>
    %794 = tpu.matmul %793, %412, %cst_291 {dimension_numbers = #tpu.dot_dimension_numbers<[1], [0], [0], [1], [0, 0, 1, 1], [], []>} : vector<2x36xf32>, vector<36x16xf32>, vector<2x16xf32> -> vector<2x16xf32>
    %795 = arith.negf %794 : vector<2x16xf32>
    %796 = math.exp %795 : vector<2x16xf32>
    %cst_292 = arith.constant 1.000000e+00 : f32
    %797 = vector.broadcast %cst_292 : f32 to vector<2x16xf32>
    %798 = arith.addf %797, %796 : vector<2x16xf32>
    %799 = arith.divf %797, %798 : vector<2x16xf32>
    %c0_293 = arith.constant 0 : index
    %c0_294 = arith.constant 0 : index
    %800 = vector.load %arg12[%c0_293, %c0_294] : memref<2x16xf32, #tpu.memory_space<vmem>>, vector<2x16xf32>
    tpu.vector_store %arg12[%c0_293, %c0_294], %799 {strides = array<i32>} : memref<2x16xf32, #tpu.memory_space<vmem>>, vector<2x16xf32>,
    return
  }
  func.func @transform_0(%arg0: i32) -> (i32, i32) {
    %c0_i32 = arith.constant 0 : i32
    %c0_i32_0 = arith.constant 0 : i32
    return %arg0, %c0_i32 : i32, i32
  }
  func.func @transform_1(%arg0: i32) -> (i32, i32) {
    %c0_i32 = arith.constant 0 : i32
    %c0_i32_0 = arith.constant 0 : i32
    %c0_i32_1 = arith.constant 0 : i32
    return %c0_i32, %c0_i32_0 : i32, i32
  }
  func.func @transform_2(%arg0: i32) -> (i32, i32) {
    %c0_i32 = arith.constant 0 : i32
    %c0_i32_0 = arith.constant 0 : i32
    %c0_i32_1 = arith.constant 0 : i32
    return %c0_i32, %c0_i32_0 : i32, i32
  }
  func.func @transform_3(%arg0: i32) -> (i32, i32) {
    %c0_i32 = arith.constant 0 : i32
    %c0_i32_0 = arith.constant 0 : i32
    %c0_i32_1 = arith.constant 0 : i32
    return %c0_i32, %c0_i32_0 : i32, i32
  }
  func.func @transform_4(%arg0: i32) -> (i32, i32) {
    %c0_i32 = arith.constant 0 : i32
    %c0_i32_0 = arith.constant 0 : i32
    %c0_i32_1 = arith.constant 0 : i32
    return %c0_i32, %c0_i32_0 : i32, i32
  }
  func.func @transform_5(%arg0: i32) -> (i32, i32) {
    %c0_i32 = arith.constant 0 : i32
    %c0_i32_0 = arith.constant 0 : i32
    %c0_i32_1 = arith.constant 0 : i32
    return %c0_i32, %c0_i32_0 : i32, i32
  }
  func.func @transform_6(%arg0: i32) -> (i32, i32) {
    %c0_i32 = arith.constant 0 : i32
    %c0_i32_0 = arith.constant 0 : i32
    %c0_i32_1 = arith.constant 0 : i32
    return %c0_i32, %c0_i32_0 : i32, i32
  }
  func.func @transform_7(%arg0: i32) -> (i32, i32) {
    %c0_i32 = arith.constant 0 : i32
    %c0_i32_0 = arith.constant 0 : i32
    %c0_i32_1 = arith.constant 0 : i32
    return %c0_i32, %c0_i32_0 : i32, i32
  }
  func.func @transform_8(%arg0: i32) -> (i32, i32) {
    %c0_i32 = arith.constant 0 : i32
    %c0_i32_0 = arith.constant 0 : i32
    %c0_i32_1 = arith.constant 0 : i32
    return %c0_i32, %c0_i32_0 : i32, i32
  }
  func.func @transform_9(%arg0: i32) -> (i32, i32) {
    %c0_i32 = arith.constant 0 : i32
    %c0_i32_0 = arith.constant 0 : i32
    %c0_i32_1 = arith.constant 0 : i32
    return %c0_i32, %c0_i32_0 : i32, i32
  }
  func.func @transform_10(%arg0: i32) -> (i32, i32) {
    %c0_i32 = arith.constant 0 : i32
    %c0_i32_0 = arith.constant 0 : i32
    %c0_i32_1 = arith.constant 0 : i32
    return %c0_i32, %c0_i32_0 : i32, i32
  }
  func.func @transform_11(%arg0: i32) -> (i32, i32) {
    %c0_i32 = arith.constant 0 : i32
    %c0_i32_0 = arith.constant 0 : i32
    return %arg0, %c0_i32 : i32, i32
  }
}

</mosaic_0001>

<bundles_post_ra>
// kernel: tpu_custom_call.1
= control target key start
LH: loop header
LB: loop body
LE: loop exit
PB: predicated region body
PF: predicated region fallthrough
CT: control target
= control target key end

     0   :  { %16 = vsyncpa [#allocation3], 0  ;;  %s2518_s0 = inlined_call_operand.vmem [shape: f32[2,256], index: 0, kind: input, shape index: {}]   ;;  %s2519_s1 = inlined_call_operand.hbm [shape: f32[256,512], index: 1, kind: input, shape index: {}]   ;;  %s2520_s2 = inlined_call_operand.vmem [shape: f32[1,512], index: 2, kind: input, shape index: {}]   ;;  %s2521_s3 = inlined_call_operand.hbm [shape: f32[512,256], index: 3, kind: input, shape index: {}]   ;;  %s2522_s4 = inlined_call_operand.vmem [shape: f32[1,256], index: 4, kind: input, shape index: {}]   ;;  %s2523_s5 = inlined_call_operand.vmem [shape: f32[256,128], index: 5, kind: input, shape index: {}]   ;;  %s2524_s6 = inlined_call_operand.vmem [shape: f32[1,128], index: 6, kind: input, shape index: {}]   ;;  %s2525_s7 = inlined_call_operand.vmem [shape: f32[128,64], index: 7, kind: input, shape index: {}]   ;;  %s2526_s8 = inlined_call_operand.vmem [shape: f32[1,64], index: 8, kind: input, shape index: {}]   ;;  %s2527_s9 = inlined_call_operand.vmem [shape: f32[576,4], index: 9, kind: input, shape index: {}]   ;;  %s2528_s10 = inlined_call_operand.vmem [shape: f32[36,16], index: 10, kind: input, shape index: {}]   ;;  %s2529_s11 = inlined_call_operand.hbm [shape: f32[2,16], index: 11, kind: output, shape index: {}]  }
   0x1   :  { %17 = vsyncpa [#allocation6], 0 }
   0x2   :  { %18 = vsyncpa [#allocation4], 0  ;;  %s25_s19 = sshll.u32 %s2519_s1, 4  ;;  %s1730_s20 = smov [#allocation2]   ;;  %s26_s19 = int_to_ptr.hbm [resolvable:$true] %s25_s19 }
   0x3   :  { %s27_s21 = sshll.u32 %s1730_s20, 4  ;;  %s40_s24 = sshll.u32 %s2521_s3, 4  ;;  %s28_s21 = int_to_ptr.vmem [resolvable:$true] %s27_s21  ;;  %s41_s24 = int_to_ptr.hbm [resolvable:$true] %s40_s24 }
   0x4   :  { %s1731_s25 = smov 512   ;;  %s1732_s26 = smov 32  }
   0x5   :  { %33 = dma.hbm_to_vmem [thread:$0]  %s26_s19, 16384, %s28_s21, [#allocation3], %s1731_s25, %s1731_s25, %s1732_s26  }
   0x6   :  { %s1733_s27 = smov [#allocation5]   ;;  %s1734_s29 = smov 256  }
   0x7   :  { %s42_s28 = sshll.u32 %s1733_s27, 4  ;;  %s1735_s30 = smov 16   ;;  %s43_s28 = int_to_ptr.vmem [resolvable:$true] %s42_s28 }
   0x8   :  { %48 = dma.hbm_to_vmem [thread:$0]  %s41_s24, 16384, %s43_s28, [#allocation6], %s1734_s29, %s1734_s29, %s1735_s30  }
   0x9   :  { %1724 = dma.done.wait [#allocation3], 16384  }
   0xa   :  { %1725 = vsyncadd [#allocation3], 4294950912 }
   0xb   :  { %1726 = dma.done.wait [#allocation6], 16384  }
   0xc   :  { %1727 = vsyncadd [#allocation6], 4294950912  ;;  %v132_v0 = vld [vmem:[#allocation2 + $0x1e0] sm:$0xff]  ;;  %v133_v1 = vld [vmem:[#allocation2 + $0x1e8] sm:$0xff]  ;;  %s1740_s20 = smov 12   ;;  %s1742_s21 = smov 20  }
   0xd   :  { %v128_v2 = vld [vmem:[#allocation2 + $0x1c0] sm:$0xff]  ;;  %216 = vmatpush.msra.mxu0 %v132_v0  ;;  %256 = vmatpush.msra.mxu2 %v133_v1  ;;  %v129_v4 = vld [vmem:[#allocation2 + $0x1c8] sm:$0xff]  ;;  %v134_v62 = vld [vmem:[#allocation2 + $0x1f0] sm:$0xff]  ;;  %s1743_s22 = smov 24   ;;  %s1559_s3 = sshll.u32 %s2529_s11, 4  ;;  %s1560_s3 = int_to_ptr.hbm [resolvable:$true] %s1559_s3 }
   0xe   :  { %v196_v3 = vld [vmem:[#allocation2 + $0x3e0] sm:$0xff]  ;;  %v197_v5 = vld [vmem:[#allocation2 + $0x3e8] sm:$0xff]  ;;  %v135_v63 = vld [vmem:[#allocation2 + $0x1f8] sm:$0xff] }
   0xf   :  { %236 = vmatpush.msra.mxu1 %v196_v3  ;;  %276 = vmatpush.msra.mxu3 %v197_v5  ;;  %v124_v6 = vld [vmem:[#allocation2 + $0x1a0] sm:$0xff]  ;;  %v125_v8 = vld [vmem:[#allocation2 + $0x1a8] sm:$0xff]  ;;  %v198_v3 = vld [vmem:[#allocation2 + $0x3f0] sm:$0xff] }
  0x10   :  { %v192_v7 = vld [vmem:[#allocation2 + $0x3c0] sm:$0xff]  ;;  %217 = vmatpush.msra.mxu0 %v128_v2  ;;  %257 = vmatpush.msra.mxu2 %v129_v4  ;;  %v193_v9 = vld [vmem:[#allocation2 + $0x3c8] sm:$0xff]  ;;  %v130_v2 = vld [vmem:[#allocation2 + $0x1d0] sm:$0xff] }
  0x11   :  { %v188_v10 = vld [vmem:[#allocation2 + $0x3a0] sm:$0xff]  ;;  %237 = vmatpush.msra.mxu1 %v192_v7  ;;  %277 = vmatpush.msra.mxu3 %v193_v9  ;;  %v121_v12 = vld [vmem:[#allocation2 + $0x188] sm:$0xff]  ;;  %v71_v4 = vld [vmem:[%s2518_s0] sm:$0xf]  ;;  %s1737_s0 = smov 64  }
  0x12   :  { %v120_v11 = vld [vmem:[#allocation2 + $0x180] sm:$0xff]  ;;  %v189_v13 = vld [vmem:[#allocation2 + $0x3a8] sm:$0xff]  ;;  %218 = vmatpush.msra.mxu0 %v124_v6  ;;  %258 = vmatpush.msra.mxu2 %v125_v8  ;;  %v131_v5 = vld [vmem:[#allocation2 + $0x1d8] sm:$0xff]  ;;  %211 = vst [vmem:[#allocation1] ss:$4 sm:$0xff] %v71_v4 }
  0x13   :  { %v184_v14 = vld [vmem:[#allocation2 + $0x380] sm:$0xff]  ;;  %v185_v15 = vld [vmem:[#allocation2 + $0x388] sm:$0xff]  ;;  %238 = vmatpush.msra.mxu1 %v188_v10  ;;  %278 = vmatpush.msra.mxu3 %v189_v13  ;;  %v199_v6 = vld [vmem:[#allocation2 + $0x3f8] sm:$0xff] }
  0x14   :  { %v116_v16 = vld [vmem:[#allocation2 + $0x160] sm:$0xff]  ;;  %v117_v17 = vld [vmem:[#allocation2 + $0x168] sm:$0xff]  ;;  %219 = vmatpush.msra.mxu0 %v120_v11  ;;  %259 = vmatpush.msra.mxu2 %v121_v12  ;;  %v126_v7 = vld [vmem:[#allocation2 + $0x1b0] sm:$0xff] }
  0x15   :  { %v180_v18 = vld [vmem:[#allocation2 + $0x360] sm:$0xff]  ;;  %v181_v19 = vld [vmem:[#allocation2 + $0x368] sm:$0xff]  ;;  %239 = vmatpush.msra.mxu1 %v184_v14  ;;  %279 = vmatpush.msra.mxu3 %v185_v15  ;;  %v194_v8 = vld [vmem:[#allocation2 + $0x3d0] sm:$0xff] }
  0x16   :  { %v112_v20 = vld [vmem:[#allocation2 + $0x140] sm:$0xff]  ;;  %v113_v21 = vld [vmem:[#allocation2 + $0x148] sm:$0xff]  ;;  %220 = vmatpush.msra.mxu0 %v116_v16  ;;  %260 = vmatpush.msra.mxu2 %v117_v17  ;;  %v127_v9 = vld [vmem:[#allocation2 + $0x1b8] sm:$0xff] }
  0x17   :  { %v176_v22 = vld [vmem:[#allocation2 + $0x340] sm:$0xff]  ;;  %v177_v23 = vld [vmem:[#allocation2 + $0x348] sm:$0xff]  ;;  %240 = vmatpush.msra.mxu1 %v180_v18  ;;  %280 = vmatpush.msra.mxu3 %v181_v19  ;;  %v195_v10 = vld [vmem:[#allocation2 + $0x3d8] sm:$0xff] }
  0x18   :  { %v108_v24 = vld [vmem:[#allocation2 + $0x120] sm:$0xff]  ;;  %v109_v25 = vld [vmem:[#allocation2 + $0x128] sm:$0xff]  ;;  %221 = vmatpush.msra.mxu0 %v112_v20  ;;  %261 = vmatpush.msra.mxu2 %v113_v21  ;;  %v122_v11 = vld [vmem:[#allocation2 + $0x190] sm:$0xff] }
  0x19   :  { %v172_v26 = vld [vmem:[#allocation2 + $0x320] sm:$0xff]  ;;  %v173_v27 = vld [vmem:[#allocation2 + $0x328] sm:$0xff]  ;;  %241 = vmatpush.msra.mxu1 %v176_v22  ;;  %281 = vmatpush.msra.mxu3 %v177_v23  ;;  %v190_v12 = vld [vmem:[#allocation2 + $0x3b0] sm:$0xff] }
  0x1a   :  { %v104_v28 = vld [vmem:[#allocation2 + $0x100] sm:$0xff]  ;;  %v105_v29 = vld [vmem:[#allocation2 + $0x108] sm:$0xff]  ;;  %222 = vmatpush.msra.mxu0 %v108_v24  ;;  %262 = vmatpush.msra.mxu2 %v109_v25  ;;  %v123_v13 = vld [vmem:[#allocation2 + $0x198] sm:$0xff] }
  0x1b   :  { %v168_v30 = vld [vmem:[#allocation2 + $0x300] sm:$0xff]  ;;  %v169_v31 = vld [vmem:[#allocation2 + $0x308] sm:$0xff]  ;;  %242 = vmatpush.msra.mxu1 %v172_v26  ;;  %282 = vmatpush.msra.mxu3 %v173_v27  ;;  %v191_v14 = vld [vmem:[#allocation2 + $0x3b8] sm:$0xff] }
  0x1c   :  { %v100_v32 = vld [vmem:[#allocation2 + $0xe0] sm:$0xff]  ;;  %v101_v33 = vld [vmem:[#allocation2 + $0xe8] sm:$0xff]  ;;  %223 = vmatpush.msra.mxu0 %v104_v28  ;;  %263 = vmatpush.msra.mxu2 %v105_v29  ;;  %v118_v15 = vld [vmem:[#allocation2 + $0x170] sm:$0xff] }
  0x1d   :  { %v164_v34 = vld [vmem:[#allocation2 + $0x2e0] sm:$0xff]  ;;  %v165_v35 = vld [vmem:[#allocation2 + $0x2e8] sm:$0xff]  ;;  %243 = vmatpush.msra.mxu1 %v168_v30  ;;  %283 = vmatpush.msra.mxu3 %v169_v31  ;;  %v186_v16 = vld [vmem:[#allocation2 + $0x390] sm:$0xff] }
  0x1e   :  { %v96_v36 = vld [vmem:[#allocation2 + $0xc0] sm:$0xff]  ;;  %v97_v37 = vld [vmem:[#allocation2 + $0xc8] sm:$0xff]  ;;  %224 = vmatpush.msra.mxu0 %v100_v32  ;;  %264 = vmatpush.msra.mxu2 %v101_v33  ;;  %v119_v17 = vld [vmem:[#allocation2 + $0x178] sm:$0xff] }
  0x1f   :  { %v160_v38 = vld [vmem:[#allocation2 + $0x2c0] sm:$0xff]  ;;  %v161_v39 = vld [vmem:[#allocation2 + $0x2c8] sm:$0xff]  ;;  %244 = vmatpush.msra.mxu1 %v164_v34  ;;  %284 = vmatpush.msra.mxu3 %v165_v35  ;;  %v187_v18 = vld [vmem:[#allocation2 + $0x398] sm:$0xff] }
  0x20   :  { %v92_v40 = vld [vmem:[#allocation2 + $0xa0] sm:$0xff]  ;;  %v93_v41 = vld [vmem:[#allocation2 + $0xa8] sm:$0xff]  ;;  %225 = vmatpush.msra.mxu0 %v96_v36  ;;  %265 = vmatpush.msra.mxu2 %v97_v37  ;;  %v114_v19 = vld [vmem:[#allocation2 + $0x150] sm:$0xff] }
  0x21   :  { %v156_v42 = vld [vmem:[#allocation2 + $0x2a0] sm:$0xff]  ;;  %v157_v43 = vld [vmem:[#allocation2 + $0x2a8] sm:$0xff]  ;;  %245 = vmatpush.msra.mxu1 %v160_v38  ;;  %285 = vmatpush.msra.mxu3 %v161_v39  ;;  %v182_v20 = vld [vmem:[#allocation2 + $0x370] sm:$0xff] }
  0x22   :  { %v88_v44 = vld [vmem:[#allocation2 + $0x80] sm:$0xff]  ;;  %v89_v45 = vld [vmem:[#allocation2 + $0x88] sm:$0xff]  ;;  %226 = vmatpush.msra.mxu0 %v92_v40  ;;  %266 = vmatpush.msra.mxu2 %v93_v41  ;;  %v115_v21 = vld [vmem:[#allocation2 + $0x158] sm:$0xff] }
  0x23   :  { %v152_v46 = vld [vmem:[#allocation2 + $0x280] sm:$0xff]  ;;  %v153_v47 = vld [vmem:[#allocation2 + $0x288] sm:$0xff]  ;;  %246 = vmatpush.msra.mxu1 %v156_v42  ;;  %286 = vmatpush.msra.mxu3 %v157_v43  ;;  %v183_v22 = vld [vmem:[#allocation2 + $0x378] sm:$0xff] }
  0x24   :  { %v84_v48 = vld [vmem:[#allocation2 + $0x60] sm:$0xff]  ;;  %v85_v49 = vld [vmem:[#allocation2 + $0x68] sm:$0xff]  ;;  %227 = vmatpush.msra.mxu0 %v88_v44  ;;  %267 = vmatpush.msra.mxu2 %v89_v45  ;;  %v110_v23 = vld [vmem:[#allocation2 + $0x130] sm:$0xff] }
  0x25   :  { %v148_v50 = vld [vmem:[#allocation2 + $0x260] sm:$0xff]  ;;  %v149_v51 = vld [vmem:[#allocation2 + $0x268] sm:$0xff]  ;;  %247 = vmatpush.msra.mxu1 %v152_v46  ;;  %287 = vmatpush.msra.mxu3 %v153_v47  ;;  %v178_v24 = vld [vmem:[#allocation2 + $0x350] sm:$0xff] }
  0x26   :  { %v80_v52 = vld [vmem:[#allocation2 + $0x40] sm:$0xff]  ;;  %v81_v53 = vld [vmem:[#allocation2 + $0x48] sm:$0xff]  ;;  %228 = vmatpush.msra.mxu0 %v84_v48  ;;  %268 = vmatpush.msra.mxu2 %v85_v49  ;;  %v111_v25 = vld [vmem:[#allocation2 + $0x138] sm:$0xff] }
  0x27   :  { %v144_v54 = vld [vmem:[#allocation2 + $0x240] sm:$0xff]  ;;  %v145_v55 = vld [vmem:[#allocation2 + $0x248] sm:$0xff]  ;;  %248 = vmatpush.msra.mxu1 %v148_v50  ;;  %288 = vmatpush.msra.mxu3 %v149_v51  ;;  %v179_v26 = vld [vmem:[#allocation2 + $0x358] sm:$0xff] }
  0x28   :  { %v76_v56 = vld [vmem:[#allocation2 + $0x20] sm:$0xff]  ;;  %v77_v57 = vld [vmem:[#allocation2 + $0x28] sm:$0xff]  ;;  %229 = vmatpush.msra.mxu0 %v80_v52  ;;  %269 = vmatpush.msra.mxu2 %v81_v53  ;;  %v106_v27 = vld [vmem:[#allocation2 + $0x110] sm:$0xff] }
  0x29   :  { %v140_v58 = vld [vmem:[#allocation2 + $0x220] sm:$0xff]  ;;  %v141_v59 = vld [vmem:[#allocation2 + $0x228] sm:$0xff]  ;;  %249 = vmatpush.msra.mxu1 %v144_v54  ;;  %289 = vmatpush.msra.mxu3 %v145_v55  ;;  %v174_v28 = vld [vmem:[#allocation2 + $0x330] sm:$0xff] }
  0x2a   :  { %v72_v60 = vld [vmem:[#allocation2] sm:$0xff]  ;;  %v73_v61 = vld [vmem:[#allocation2 + $0x8] sm:$0xff]  ;;  %230 = vmatpush.msra.mxu0 %v76_v56  ;;  %270 = vmatpush.msra.mxu2 %v77_v57  ;;  %v107_v29 = vld [vmem:[#allocation2 + $0x118] sm:$0xff] }
  0x2b   :  { %250 = vmatpush.msra.mxu1 %v140_v58  ;;  %290 = vmatpush.msra.mxu3 %v141_v59  ;;  %v136_v0 = vld [vmem:[#allocation2 + $0x200] sm:$0xff]  ;;  %v137_v1 = vld [vmem:[#allocation2 + $0x208] sm:$0xff]  ;;  %v175_v30 = vld [vmem:[#allocation2 + $0x338] sm:$0xff] }
  0x2c   :  { %231 = vmatpush.msra.mxu0 %v72_v60  ;;  %271 = vmatpush.msra.mxu2 %v73_v61  ;;  %v1816_v31 = vld.sshfl [vmem:[#allocation1] sm:$0xff pattern:$0x73625140]  ;;  %v102_v32 = vld [vmem:[#allocation2 + $0xf0] sm:$0xff] }
  0x2d   :  { %251 = vmatpush.msra.mxu1 %v136_v0  ;;  %291 = vmatpush.msra.mxu3 %v137_v1  ;;  %v170_v33 = vld [vmem:[#allocation2 + $0x310] sm:$0xff]  ;;  %v103_v34 = vld [vmem:[#allocation2 + $0xf8] sm:$0xff]  ;;  %v1818_v36 = vld.sshfl [vmem:[#allocation1 + $0x8] sm:$0xff pattern:$0x73625140] }
  0x2e   :  { %296 = vmatpush.msrb.mxu0 %v134_v62  ;;  %336 = vmatpush.msrb.mxu2 %v135_v63  ;;  %v171_v35 = vld [vmem:[#allocation2 + $0x318] sm:$0xff]  ;;  %v98_v37 = vld [vmem:[#allocation2 + $0xd0] sm:$0xff] }
  0x2f   :  { %316 = vmatpush.msrb.mxu1 %v198_v3  ;;  %356 = vmatpush.msrb.mxu3 %v199_v6  ;;  %v166_v38 = vld [vmem:[#allocation2 + $0x2f0] sm:$0xff]  ;;  %v99_v39 = vld [vmem:[#allocation2 + $0xd8] sm:$0xff] }
  0x30   :  { %297 = vmatpush.msrb.mxu0 %v130_v2  ;;  %337 = vmatpush.msrb.mxu2 %v131_v5  ;;  %v167_v40 = vld [vmem:[#allocation2 + $0x2f8] sm:$0xff]  ;;  %v162_v41 = vld [vmem:[#allocation2 + $0x2d0] sm:$0xff] }
  0x31   :  { %317 = vmatpush.msrb.mxu1 %v194_v8  ;;  %357 = vmatpush.msrb.mxu3 %v195_v10  ;;  %v94_v42 = vld [vmem:[#allocation2 + $0xb0] sm:$0xff]  ;;  %v95_v43 = vld [vmem:[#allocation2 + $0xb8] sm:$0xff]  ;;  %v440_v8 = vld [vmem:[#allocation5 + $0x1e0] sm:$0xff] }
  0x32   :  { %298 = vmatpush.msrb.mxu0 %v126_v7  ;;  %338 = vmatpush.msrb.mxu2 %v127_v9  ;;  %v163_v44 = vld [vmem:[#allocation2 + $0x2d8] sm:$0xff]  ;;  %v90_v45 = vld [vmem:[#allocation2 + $0x90] sm:$0xff]  ;;  %v408_v7 = vld [vmem:[#allocation5 + $0xe0] sm:$0xff] }
  0x33   :  { %318 = vmatpush.msrb.mxu1 %v190_v12  ;;  %358 = vmatpush.msrb.mxu3 %v191_v14  ;;  %v158_v46 = vld [vmem:[#allocation2 + $0x2b0] sm:$0xff]  ;;  %v91_v47 = vld [vmem:[#allocation2 + $0x98] sm:$0xff]  ;;  %v472_v9 = vld [vmem:[#allocation5 + $0x2e0] sm:$0xff] }
  0x34   :  { %299 = vmatpush.msrb.mxu0 %v122_v11  ;;  %339 = vmatpush.msrb.mxu2 %v123_v13  ;;  %v159_v48 = vld [vmem:[#allocation2 + $0x2b8] sm:$0xff]  ;;  %v86_v49 = vld [vmem:[#allocation2 + $0x70] sm:$0xff]  ;;  %v504_v10 = vld [vmem:[#allocation5 + $0x3e0] sm:$0xff] }
  0x35   :  { %319 = vmatpush.msrb.mxu1 %v186_v16  ;;  %359 = vmatpush.msrb.mxu3 %v187_v18  ;;  %v154_v50 = vld [vmem:[#allocation2 + $0x290] sm:$0xff]  ;;  %v87_v51 = vld [vmem:[#allocation2 + $0x78] sm:$0xff]  ;;  %v436_v16 = vld [vmem:[#allocation5 + $0x1c0] sm:$0xff] }
  0x36   :  { %300 = vmatpush.msrb.mxu0 %v118_v15  ;;  %340 = vmatpush.msrb.mxu2 %v119_v17  ;;  %v155_v52 = vld [vmem:[#allocation2 + $0x298] sm:$0xff]  ;;  %v82_v53 = vld [vmem:[#allocation2 + $0x50] sm:$0xff]  ;;  %v404_v15 = vld [vmem:[#allocation5 + $0xc0] sm:$0xff] }
  0x37   :  { %320 = vmatpush.msrb.mxu1 %v182_v20  ;;  %360 = vmatpush.msrb.mxu3 %v183_v22  ;;  %v150_v54 = vld [vmem:[#allocation2 + $0x270] sm:$0xff]  ;;  %v83_v55 = vld [vmem:[#allocation2 + $0x58] sm:$0xff]  ;;  %v468_v17 = vld [vmem:[#allocation5 + $0x2c0] sm:$0xff] }
  0x38   :  { %301 = vmatpush.msrb.mxu0 %v114_v19  ;;  %341 = vmatpush.msrb.mxu2 %v115_v21  ;;  %v151_v56 = vld [vmem:[#allocation2 + $0x278] sm:$0xff]  ;;  %v78_v57 = vld [vmem:[#allocation2 + $0x30] sm:$0xff]  ;;  %v500_v18 = vld [vmem:[#allocation5 + $0x3c0] sm:$0xff] }
  0x39   :  { %321 = vmatpush.msrb.mxu1 %v178_v24  ;;  %361 = vmatpush.msrb.mxu3 %v179_v26  ;;  %v146_v58 = vld [vmem:[#allocation2 + $0x250] sm:$0xff]  ;;  %v79_v59 = vld [vmem:[#allocation2 + $0x38] sm:$0xff]  ;;  %v432_v24 = vld [vmem:[#allocation5 + $0x1a0] sm:$0xff] }
  0x3a   :  { %302 = vmatpush.msrb.mxu0 %v110_v23  ;;  %342 = vmatpush.msrb.mxu2 %v111_v25  ;;  %v147_v60 = vld [vmem:[#allocation2 + $0x258] sm:$0xff]  ;;  %v74_v61 = vld [vmem:[#allocation2 + $0x10] sm:$0xff]  ;;  %v400_v23 = vld [vmem:[#allocation5 + $0xa0] sm:$0xff] }
  0x3b   :  { %322 = vmatpush.msrb.mxu1 %v174_v28  ;;  %362 = vmatpush.msrb.mxu3 %v175_v30  ;;  %v142_v62 = vld [vmem:[#allocation2 + $0x230] sm:$0xff]  ;;  %v75_v63 = vld [vmem:[#allocation2 + $0x18] sm:$0xff]  ;;  %v464_v25 = vld [vmem:[#allocation5 + $0x2a0] sm:$0xff] }
  0x3c   :  { %303 = vmatpush.msrb.mxu0 %v106_v27  ;;  %343 = vmatpush.msrb.mxu2 %v107_v29  ;;  %v143_v0 = vld [vmem:[#allocation2 + $0x238] sm:$0xff]  ;;  %v138_v1 = vld [vmem:[#allocation2 + $0x210] sm:$0xff]  ;;  %v496_v26 = vld [vmem:[#allocation5 + $0x3a0] sm:$0xff] }
  0x3d   :  { %272 = vmatmul.f32.vlgmr.msra.gmra.mxu2 %v1816_v31  ;;  %323 = vmatpush.msrb.mxu1 %v170_v33  ;;  %v139_v2 = vld [vmem:[#allocation2 + $0x218] sm:$0xff]  ;;  %v410_v3 = vld [vmem:[#allocation5 + $0xf0] sm:$0xff]  ;;  %v460_v33 = vld [vmem:[#allocation5 + $0x280] sm:$0xff] }
  0x3e   :  { %304 = vmatpush.msrb.mxu0 %v102_v32  ;;  %344 = vmatpush.msrb.mxu2 %v103_v34  ;;  %v442_v4 = vld [vmem:[#allocation5 + $0x1f0] sm:$0xff]  ;;  %v428_v32 = vld [vmem:[#allocation5 + $0x180] sm:$0xff] }
  0x3f   :  { %363 = vmatpush.msrb.mxu3 %v171_v35  ;;  %324 = vmatpush.msrb.mxu1 %v166_v38  ;;  %v474_v5 = vld [vmem:[#allocation5 + $0x2f0] sm:$0xff]  ;;  %v492_v34 = vld [vmem:[#allocation5 + $0x380] sm:$0xff] }
  0x40   :  { %305 = vmatpush.msrb.mxu0 %v98_v37  ;;  %292 = vmatmul.f32.vlgmr.msra.gmra.mxu3 %v1818_v36  ;;  %v506_v6 = vld [vmem:[#allocation5 + $0x3f0] sm:$0xff] }
  0x41   :  { %345 = vmatpush.msrb.mxu2 %v99_v39  ;;  %364 = vmatpush.msrb.mxu3 %v167_v40  ;;  %v406_v11 = vld [vmem:[#allocation5 + $0xd0] sm:$0xff]  ;;  %v392_v39 = vld [vmem:[#allocation5 + $0x60] sm:$0xff] }
  0x42   :  { %232 = vmatmul.f32.vlgmr.msra.gmra.mxu0 %v1816_v31  ;;  %325 = vmatpush.msrb.mxu1 %v162_v41  ;;  %v438_v12 = vld [vmem:[#allocation5 + $0x1d0] sm:$0xff]  ;;  %v424_v40 = vld [vmem:[#allocation5 + $0x160] sm:$0xff] }
  0x43   :  { %306 = vmatpush.msrb.mxu0 %v94_v42  ;;  %346 = vmatpush.msrb.mxu2 %v95_v43  ;;  %v470_v13 = vld [vmem:[#allocation5 + $0x2d0] sm:$0xff]  ;;  %v456_v41 = vld [vmem:[#allocation5 + $0x260] sm:$0xff] }
  0x44   :  { %365 = vmatpush.msrb.mxu3 %v163_v44  ;;  %252 = vmatmul.f32.vlgmr.msra.gmra.mxu1 %v1818_v36  ;;  %v502_v14 = vld [vmem:[#allocation5 + $0x3d0] sm:$0xff]  ;;  %v488_v42 = vld [vmem:[#allocation5 + $0x360] sm:$0xff] }
  0x45   :  { %307 = vmatpush.msrb.mxu0 %v90_v45  ;;  %326 = vmatpush.msrb.mxu1 %v158_v46  ;;  %v402_v19 = vld [vmem:[#allocation5 + $0xb0] sm:$0xff] }
  0x46   :  { %347 = vmatpush.msrb.mxu2 %v91_v47  ;;  %366 = vmatpush.msrb.mxu3 %v159_v48  ;;  %v434_v20 = vld [vmem:[#allocation5 + $0x1b0] sm:$0xff]  ;;  %v388_v47 = vld [vmem:[#allocation5 + $0x40] sm:$0xff] }
  0x47   :  { %308 = vmatpush.msrb.mxu0 %v86_v49  ;;  %327 = vmatpush.msrb.mxu1 %v154_v50  ;;  %v466_v21 = vld [vmem:[#allocation5 + $0x2b0] sm:$0xff]  ;;  %v420_v48 = vld [vmem:[#allocation5 + $0x140] sm:$0xff] }
  0x48   :  { %348 = vmatpush.msrb.mxu2 %v87_v51  ;;  %367 = vmatpush.msrb.mxu3 %v155_v52  ;;  %v498_v22 = vld [vmem:[#allocation5 + $0x3b0] sm:$0xff]  ;;  %v452_v49 = vld [vmem:[#allocation5 + $0x240] sm:$0xff] }
  0x49   :  { %309 = vmatpush.msrb.mxu0 %v82_v53  ;;  %328 = vmatpush.msrb.mxu1 %v150_v54  ;;  %v398_v27 = vld [vmem:[#allocation5 + $0x90] sm:$0xff]  ;;  %v484_v50 = vld [vmem:[#allocation5 + $0x340] sm:$0xff] }
  0x4a   :  { %349 = vmatpush.msrb.mxu2 %v83_v55  ;;  %368 = vmatpush.msrb.mxu3 %v151_v56  ;;  %v430_v28 = vld [vmem:[#allocation5 + $0x190] sm:$0xff]  ;;  %v384_v55 = vld [vmem:[#allocation5 + $0x20] sm:$0xff] }
  0x4b   :  { %310 = vmatpush.msrb.mxu0 %v78_v57  ;;  %329 = vmatpush.msrb.mxu1 %v146_v58  ;;  %v462_v29 = vld [vmem:[#allocation5 + $0x290] sm:$0xff]  ;;  %v416_v56 = vld [vmem:[#allocation5 + $0x120] sm:$0xff] }
  0x4c   :  { %350 = vmatpush.msrb.mxu2 %v79_v59  ;;  %369 = vmatpush.msrb.mxu3 %v147_v60  ;;  %v494_v30 = vld [vmem:[#allocation5 + $0x390] sm:$0xff]  ;;  %v448_v57 = vld [vmem:[#allocation5 + $0x220] sm:$0xff] }
  0x4d   :  { %311 = vmatpush.msrb.mxu0 %v74_v61  ;;  %330 = vmatpush.msrb.mxu1 %v142_v62  ;;  %v394_v35 = vld [vmem:[#allocation5 + $0x70] sm:$0xff]  ;;  %v480_v58 = vld [vmem:[#allocation5 + $0x320] sm:$0xff] }
  0x4e   :  { %351 = vmatpush.msrb.mxu2 %v75_v63  ;;  %370 = vmatpush.msrb.mxu3 %v143_v0  ;;  %v458_v37 = vld [vmem:[#allocation5 + $0x270] sm:$0xff]  ;;  %v380_v63 = vld [vmem:[#allocation5] sm:$0xff] }
  0x4f   :  { %312 = vmatmul.f32.vlgmr.msrb.gmra.mxu0 %v1816_v31  ;;  %352 = vmatmul.f32.vlgmr.msrb.gmra.mxu2 %v1816_v31  ;;  %v396_v31 = vld [vmem:[#allocation5 + $0x80] sm:$0xff]  ;;  %v490_v38 = vld [vmem:[#allocation5 + $0x370] sm:$0xff] }
  0x50   :  { %331 = vmatpush.msrb.mxu1 %v138_v1  ;;  %371 = vmatpush.msrb.mxu3 %v139_v2  ;;  %v390_v43 = vld [vmem:[#allocation5 + $0x50] sm:$0xff]  ;;  %v412_v0 = vld [vmem:[#allocation5 + $0x100] sm:$0xff]  ;;  %v411_v1 = vld [vmem:[#allocation5 + $0xf8] sm:$0xff] }
  0x51   :  { %332 = vmatmul.f32.vlgmr.msrb.gmra.mxu1 %v1818_v36  ;;  %372 = vmatmul.f32.vlgmr.msrb.gmra.mxu3 %v1818_v36  ;;  %v426_v36 = vld [vmem:[#allocation5 + $0x170] sm:$0xff]  ;;  %v443_v2 = vld [vmem:[#allocation5 + $0x1f8] sm:$0xff] }
  0x52   :  { %514 = vmatpush.msra.mxu0 %v410_v3  ;;  %534 = vmatpush.msra.mxu1 %v442_v4  ;;  %v422_v44 = vld [vmem:[#allocation5 + $0x150] sm:$0xff]  ;;  %v444_v3 = vld [vmem:[#allocation5 + $0x200] sm:$0xff]  ;;  %v409_v4 = vld [vmem:[#allocation5 + $0xe8] sm:$0xff] }
  0x53   :  { %554 = vmatpush.msra.mxu2 %v474_v5  ;;  %574 = vmatpush.msra.mxu3 %v506_v6  ;;  %v454_v45 = vld [vmem:[#allocation5 + $0x250] sm:$0xff]  ;;  %v441_v5 = vld [vmem:[#allocation5 + $0x1e8] sm:$0xff]  ;;  %v475_v6 = vld [vmem:[#allocation5 + $0x2f8] sm:$0xff] }
  0x54   :  { %515 = vmatpush.msra.mxu0 %v408_v7  ;;  %535 = vmatpush.msra.mxu1 %v440_v8  ;;  %v486_v46 = vld [vmem:[#allocation5 + $0x350] sm:$0xff]  ;;  %v407_v7 = vld [vmem:[#allocation5 + $0xd8] sm:$0xff] }
  0x55   :  { %555 = vmatpush.msra.mxu2 %v472_v9  ;;  %575 = vmatpush.msra.mxu3 %v504_v10  ;;  %v386_v51 = vld [vmem:[#allocation5 + $0x30] sm:$0xff]  ;;  %v439_v8 = vld [vmem:[#allocation5 + $0x1d8] sm:$0xff]  ;;  %v473_v9 = vld [vmem:[#allocation5 + $0x2e8] sm:$0xff] }
  0x56   :  { %516 = vmatpush.msra.mxu0 %v406_v11  ;;  %536 = vmatpush.msra.mxu1 %v438_v12  ;;  %v418_v52 = vld [vmem:[#allocation5 + $0x130] sm:$0xff]  ;;  %v405_v10 = vld [vmem:[#allocation5 + $0xc8] sm:$0xff]  ;;  %v403_v12 = vld [vmem:[#allocation5 + $0xb8] sm:$0xff] }
  0x57   :  { %556 = vmatpush.msra.mxu2 %v470_v13  ;;  %576 = vmatpush.msra.mxu3 %v502_v14  ;;  %v450_v53 = vld [vmem:[#allocation5 + $0x230] sm:$0xff]  ;;  %v437_v11 = vld [vmem:[#allocation5 + $0x1c8] sm:$0xff]  ;;  %v435_v13 = vld [vmem:[#allocation5 + $0x1b8] sm:$0xff] }
  0x58   :  { %517 = vmatpush.msra.mxu0 %v404_v15  ;;  %537 = vmatpush.msra.mxu1 %v436_v16  ;;  %v482_v54 = vld [vmem:[#allocation5 + $0x330] sm:$0xff]  ;;  %v401_v14 = vld [vmem:[#allocation5 + $0xa8] sm:$0xff]  ;;  %v399_v16 = vld [vmem:[#allocation5 + $0x98] sm:$0xff] }
  0x59   :  { %557 = vmatpush.msra.mxu2 %v468_v17  ;;  %577 = vmatpush.msra.mxu3 %v500_v18  ;;  %v382_v59 = vld [vmem:[#allocation5 + $0x10] sm:$0xff]  ;;  %v433_v15 = vld [vmem:[#allocation5 + $0x1a8] sm:$0xff]  ;;  %v431_v17 = vld [vmem:[#allocation5 + $0x198] sm:$0xff] }
  0x5a   :  { %518 = vmatpush.msra.mxu0 %v402_v19  ;;  %538 = vmatpush.msra.mxu1 %v434_v20  ;;  %v414_v60 = vld [vmem:[#allocation5 + $0x110] sm:$0xff]  ;;  %v397_v18 = vld [vmem:[#allocation5 + $0x88] sm:$0xff]  ;;  %v395_v19 = vld [vmem:[#allocation5 + $0x78] sm:$0xff] }
  0x5b   :  { %558 = vmatpush.msra.mxu2 %v466_v21  ;;  %578 = vmatpush.msra.mxu3 %v498_v22  ;;  %v446_v61 = vld [vmem:[#allocation5 + $0x210] sm:$0xff]  ;;  %v429_v20 = vld [vmem:[#allocation5 + $0x188] sm:$0xff]  ;;  %v471_v21 = vld [vmem:[#allocation5 + $0x2d8] sm:$0xff] }
  0x5c   :  { %519 = vmatpush.msra.mxu0 %v400_v23  ;;  %539 = vmatpush.msra.mxu1 %v432_v24  ;;  %v478_v62 = vld [vmem:[#allocation5 + $0x310] sm:$0xff]  ;;  %v476_v22 = vld [vmem:[#allocation5 + $0x300] sm:$0xff]  ;;  %v393_v23 = vld [vmem:[#allocation5 + $0x68] sm:$0xff] }
  0x5d   :  { %559 = vmatpush.msra.mxu2 %v464_v25  ;;  %579 = vmatpush.msra.mxu3 %v496_v26  ;;  %v427_v24 = vld [vmem:[#allocation5 + $0x178] sm:$0xff]  ;;  %v469_v25 = vld [vmem:[#allocation5 + $0x2c8] sm:$0xff] }
  0x5e   :  { %520 = vmatpush.msra.mxu0 %v398_v27  ;;  %540 = vmatpush.msra.mxu1 %v430_v28  ;;  %v507_v26 = vld [vmem:[#allocation5 + $0x3f8] sm:$0xff]  ;;  %v425_v28 = vld [vmem:[#allocation5 + $0x168] sm:$0xff] }
  0x5f   :  { %560 = vmatpush.msra.mxu2 %v462_v29  ;;  %580 = vmatpush.msra.mxu3 %v494_v30  ;;  %v391_v27 = vld [vmem:[#allocation5 + $0x58] sm:$0xff]  ;;  %v505_v30 = vld [vmem:[#allocation5 + $0x3e8] sm:$0xff] }
  0x60   :  { %521 = vmatpush.msra.mxu0 %v396_v31  ;;  %541 = vmatpush.msra.mxu1 %v428_v32  ;;  %v467_v29 = vld [vmem:[#allocation5 + $0x2b8] sm:$0xff]  ;;  %v389_v31 = vld [vmem:[#allocation5 + $0x48] sm:$0xff] }
  0x61   :  { %561 = vmatpush.msra.mxu2 %v460_v33  ;;  %581 = vmatpush.msra.mxu3 %v492_v34  ;;  %v423_v32 = vld [vmem:[#allocation5 + $0x158] sm:$0xff]  ;;  %v465_v33 = vld [vmem:[#allocation5 + $0x2a8] sm:$0xff] }
  0x62   :  { %522 = vmatpush.msra.mxu0 %v394_v35  ;;  %542 = vmatpush.msra.mxu1 %v426_v36  ;;  %v503_v34 = vld [vmem:[#allocation5 + $0x3d8] sm:$0xff]  ;;  %v421_v36 = vld [vmem:[#allocation5 + $0x148] sm:$0xff] }
  0x63   :  { %562 = vmatpush.msra.mxu2 %v458_v37  ;;  %582 = vmatpush.msra.mxu3 %v490_v38  ;;  %v387_v35 = vld [vmem:[#allocation5 + $0x38] sm:$0xff]  ;;  %v501_v38 = vld [vmem:[#allocation5 + $0x3c8] sm:$0xff] }
  0x64   :  { %523 = vmatpush.msra.mxu0 %v392_v39  ;;  %543 = vmatpush.msra.mxu1 %v424_v40  ;;  %v463_v37 = vld [vmem:[#allocation5 + $0x298] sm:$0xff]  ;;  %v385_v39 = vld [vmem:[#allocation5 + $0x28] sm:$0xff] }
  0x65   :  { %563 = vmatpush.msra.mxu2 %v456_v41  ;;  %583 = vmatpush.msra.mxu3 %v488_v42  ;;  %v419_v40 = vld [vmem:[#allocation5 + $0x138] sm:$0xff]  ;;  %v461_v41 = vld [vmem:[#allocation5 + $0x288] sm:$0xff] }
  0x66   :  { %524 = vmatpush.msra.mxu0 %v390_v43  ;;  %544 = vmatpush.msra.mxu1 %v422_v44  ;;  %v499_v42 = vld [vmem:[#allocation5 + $0x3b8] sm:$0xff]  ;;  %v417_v44 = vld [vmem:[#allocation5 + $0x128] sm:$0xff] }
  0x67   :  { %564 = vmatpush.msra.mxu2 %v454_v45  ;;  %584 = vmatpush.msra.mxu3 %v486_v46  ;;  %v383_v43 = vld [vmem:[#allocation5 + $0x18] sm:$0xff]  ;;  %v497_v46 = vld [vmem:[#allocation5 + $0x3a8] sm:$0xff] }
  0x68   :  { %525 = vmatpush.msra.mxu0 %v388_v47  ;;  %545 = vmatpush.msra.mxu1 %v420_v48  ;;  %v459_v45 = vld [vmem:[#allocation5 + $0x278] sm:$0xff]  ;;  %v381_v47 = vld [vmem:[#allocation5 + $0x8] sm:$0xff] }
  0x69   :  { %565 = vmatpush.msra.mxu2 %v452_v49  ;;  %585 = vmatpush.msra.mxu3 %v484_v50  ;;  %v415_v48 = vld [vmem:[#allocation5 + $0x118] sm:$0xff]  ;;  %v457_v49 = vld [vmem:[#allocation5 + $0x268] sm:$0xff] }
  0x6a   :  { %526 = vmatpush.msra.mxu0 %v386_v51  ;;  %546 = vmatpush.msra.mxu1 %v418_v52  ;;  %v495_v50 = vld [vmem:[#allocation5 + $0x398] sm:$0xff]  ;;  %v413_v51 = vld [vmem:[#allocation5 + $0x108] sm:$0xff] }
  0x6b   :  { %566 = vmatpush.msra.mxu2 %v450_v53  ;;  %586 = vmatpush.msra.mxu3 %v482_v54  ;;  %v455_v52 = vld [vmem:[#allocation5 + $0x258] sm:$0xff]  ;;  %v493_v53 = vld [vmem:[#allocation5 + $0x388] sm:$0xff] }
  0x6c   :  { %527 = vmatpush.msra.mxu0 %v384_v55  ;;  %547 = vmatpush.msra.mxu1 %v416_v56  ;;  %v453_v54 = vld [vmem:[#allocation5 + $0x248] sm:$0xff]  ;;  %v491_v55 = vld [vmem:[#allocation5 + $0x378] sm:$0xff] }
  0x6d   :  { %567 = vmatpush.msra.mxu2 %v448_v57  ;;  %587 = vmatpush.msra.mxu3 %v480_v58  ;;  %v451_v56 = vld [vmem:[#allocation5 + $0x238] sm:$0xff]  ;;  %v489_v57 = vld [vmem:[#allocation5 + $0x368] sm:$0xff] }
  0x6e   :  { %528 = vmatpush.msra.mxu0 %v382_v59  ;;  %548 = vmatpush.msra.mxu1 %v414_v60  ;;  %v449_v58 = vld [vmem:[#allocation5 + $0x228] sm:$0xff]  ;;  %v487_v59 = vld [vmem:[#allocation5 + $0x358] sm:$0xff] }
  0x6f   :  { %568 = vmatpush.msra.mxu2 %v446_v61  ;;  %588 = vmatpush.msra.mxu3 %v478_v62  ;;  %v447_v60 = vld [vmem:[#allocation5 + $0x218] sm:$0xff]  ;;  %v485_v61 = vld [vmem:[#allocation5 + $0x348] sm:$0xff] }
  0x70   :  { %529 = vmatpush.msra.mxu0 %v380_v63  ;;  %549 = vmatpush.msra.mxu1 %v412_v0  ;;  %v200_v62 = vld [vmem:[%s2520_s2] sm:$0xf]  ;;  %v445_v63 = vld [vmem:[#allocation5 + $0x208] sm:$0xff] }
  0x71   :  { %569 = vmatpush.msra.mxu2 %v444_v3  ;;  %589 = vmatpush.msra.mxu3 %v476_v22  ;;  %v483_v0 = vld [vmem:[#allocation5 + $0x338] sm:$0xff]  ;;  %v205_v22 = vperm.slane %v200_v62, 3 }
  0x72   :  { %594 = vmatpush.msrb.mxu0 %v411_v1  ;;  %614 = vmatpush.msrb.mxu1 %v443_v2  ;;  %v481_v1 = vld [vmem:[#allocation5 + $0x328] sm:$0xff]  ;;  %v202_v2 = vperm.slane %v200_v62, 0  ;;  %v479_v3 = vld [vmem:[#allocation5 + $0x318] sm:$0xff] }
  0x73   :  { %634 = vmatpush.msrb.mxu2 %v475_v6  ;;  %654 = vmatpush.msrb.mxu3 %v507_v26 }
  0x74   :  { %595 = vmatpush.msrb.mxu0 %v409_v4  ;;  %615 = vmatpush.msrb.mxu1 %v441_v5  ;;  %v203_v4 = vperm.slane %v200_v62, 1  ;;  %v477_v5 = vld [vmem:[#allocation5 + $0x308] sm:$0xff] }
  0x75   :  { %635 = vmatpush.msrb.mxu2 %v473_v9  ;;  %655 = vmatpush.msrb.mxu3 %v505_v30  ;;  %v689_v30 = vld [vmem:[%s2523_s5 + $0x68] sm:$0xff] }
  0x76   :  { %596 = vmatpush.msrb.mxu0 %v407_v7  ;;  %616 = vmatpush.msrb.mxu1 %v439_v8 }
  0x77   :  { %636 = vmatpush.msrb.mxu2 %v471_v21  ;;  %656 = vmatpush.msrb.mxu3 %v503_v34  ;;  %v686_v34 = vld [vmem:[%s2523_s5 + $0x50] sm:$0xff] }
  0x78   :  { %597 = vmatpush.msrb.mxu0 %v405_v10  ;;  %617 = vmatpush.msrb.mxu1 %v437_v11 }
  0x79   :  { %637 = vmatpush.msrb.mxu2 %v469_v25  ;;  %657 = vmatpush.msrb.mxu3 %v501_v38  ;;  %v684_v38 = vld [vmem:[%s2523_s5 + $0x40] sm:$0xff] }
  0x7a   :  { %598 = vmatpush.msrb.mxu0 %v403_v12  ;;  %618 = vmatpush.msrb.mxu1 %v435_v13 }
  0x7b   :  { %638 = vmatpush.msrb.mxu2 %v467_v29  ;;  %658 = vmatpush.msrb.mxu3 %v499_v42  ;;  %v690_v29 = vld [vmem:[%s2523_s5 + $0x70] sm:$0xff] }
  0x7c   :  { %599 = vmatpush.msrb.mxu0 %v401_v14  ;;  %619 = vmatpush.msrb.mxu1 %v433_v15  ;;  %v691_v15 = vld [vmem:[%s2523_s5 + $0x78] sm:$0xff]  ;;  %v682_v42 = vld [vmem:[%s2523_s5 + $0x30] sm:$0xff] }
  0x7d   :  { %639 = vmatpush.msrb.mxu2 %v465_v33  ;;  %659 = vmatpush.msrb.mxu3 %v497_v46  ;;  %v687_v33 = vld [vmem:[%s2523_s5 + $0x58] sm:$0xff]  ;;  %v680_v46 = vld [vmem:[%s2523_s5 + $0x20] sm:$0xff] }
  0x7e   :  { %600 = vmatpush.msrb.mxu0 %v399_v16  ;;  %620 = vmatpush.msrb.mxu1 %v431_v17  ;;  %v204_v17 = vperm.slane %v200_v62, 2  ;;  %v766_v62 = vld [vmem:[%s2525_s7 + $0x68] sm:$0xff] }
  0x7f   :  { %640 = vmatpush.msrb.mxu2 %v463_v37  ;;  %660 = vmatpush.msrb.mxu3 %v495_v50  ;;  %v705_v37 = vld [vmem:[%s2523_s5 + $0xe8] sm:$0xff]  ;;  %v678_v50 = vld [vmem:[%s2523_s5 + $0x10] sm:$0xff] }
  0x80   :  { %601 = vmatpush.msrb.mxu0 %v397_v18  ;;  %621 = vmatpush.msrb.mxu1 %v429_v20 }
  0x81   :  { %641 = vmatpush.msrb.mxu2 %v461_v41  ;;  %661 = vmatpush.msrb.mxu3 %v493_v53  ;;  %v703_v41 = vld [vmem:[%s2523_s5 + $0xd8] sm:$0xff]  ;;  %v697_v53 = vld [vmem:[%s2523_s5 + $0xa8] sm:$0xff] }
  0x82   :  { %602 = vmatpush.msrb.mxu0 %v395_v19  ;;  %622 = vmatpush.msrb.mxu1 %v427_v24 }
  0x83   :  { %642 = vmatpush.msrb.mxu2 %v459_v45  ;;  %662 = vmatpush.msrb.mxu3 %v491_v55  ;;  %v701_v45 = vld [vmem:[%s2523_s5 + $0xc8] sm:$0xff]  ;;  %v696_v55 = vld [vmem:[%s2523_s5 + $0xa0] sm:$0xff] }
  0x84   :  { %603 = vmatpush.msrb.mxu0 %v393_v23  ;;  %623 = vmatpush.msrb.mxu1 %v425_v28 }
  0x85   :  { %643 = vmatpush.msrb.mxu2 %v457_v49  ;;  %663 = vmatpush.msrb.mxu3 %v489_v57  ;;  %v699_v49 = vld [vmem:[%s2523_s5 + $0xb8] sm:$0xff]  ;;  %v694_v57 = vld [vmem:[%s2523_s5 + $0x90] sm:$0xff] }
  0x86   :  { %604 = vmatpush.msrb.mxu0 %v391_v27  ;;  %624 = vmatpush.msrb.mxu1 %v423_v32  ;;  %v707_v32 = vld [vmem:[%s2523_s5 + $0xf8] sm:$0xff] }
  0x87   :  { %644 = vmatpush.msrb.mxu2 %v455_v52  ;;  %664 = vmatpush.msrb.mxu3 %v487_v59  ;;  %v677_v52 = vld [vmem:[%s2523_s5 + $0x8] sm:$0xff]  ;;  %v692_v59 = vld [vmem:[%s2523_s5 + $0x80] sm:$0xff] }
  0x88   :  { %605 = vmatpush.msrb.mxu0 %v389_v31  ;;  %625 = vmatpush.msrb.mxu1 %v421_v36  ;;  %v688_v31 = vld [vmem:[%s2523_s5 + $0x60] sm:$0xff]  ;;  %v685_v36 = vld [vmem:[%s2523_s5 + $0x48] sm:$0xff] }
  0x89   :  { %645 = vmatpush.msrb.mxu2 %v453_v54  ;;  %665 = vmatpush.msrb.mxu3 %v485_v61  ;;  %v676_v54 = vld [vmem:[%s2523_s5] sm:$0xff]  ;;  %v767_v61 = vld [vmem:[%s2525_s7 + $0x70] sm:$0xff] }
  0x8a   :  { %606 = vmatpush.msrb.mxu0 %v387_v35  ;;  %626 = vmatpush.msrb.mxu1 %v419_v40  ;;  %v706_v35 = vld [vmem:[%s2523_s5 + $0xf0] sm:$0xff]  ;;  %v683_v40 = vld [vmem:[%s2523_s5 + $0x38] sm:$0xff] }
  0x8b   :  { %646 = vmatpush.msrb.mxu2 %v451_v56  ;;  %666 = vmatpush.msrb.mxu3 %v483_v0  ;;  %v695_v56 = vld [vmem:[%s2523_s5 + $0x98] sm:$0xff]  ;;  %v508_v0 = vld [vmem:[%s2522_s4] sm:$0x3] }
  0x8c   :  { %607 = vmatpush.msrb.mxu0 %v385_v39  ;;  %627 = vmatpush.msrb.mxu1 %v417_v44  ;;  %v704_v39 = vld [vmem:[%s2523_s5 + $0xe0] sm:$0xff]  ;;  %v681_v44 = vld [vmem:[%s2523_s5 + $0x28] sm:$0xff] }
  0x8d   :  { %647 = vmatpush.msrb.mxu2 %v449_v58  ;;  %667 = vmatpush.msrb.mxu3 %v481_v1  ;;  %v693_v58 = vld [vmem:[%s2523_s5 + $0x88] sm:$0xff]  ;;  %v764_v1 = vld [vmem:[%s2525_s7 + $0x58] sm:$0xff] }
  0x8e   :  { %608 = vmatpush.msrb.mxu0 %v383_v43  ;;  %628 = vmatpush.msrb.mxu1 %v415_v48  ;;  %v702_v43 = vld [vmem:[%s2523_s5 + $0xd0] sm:$0xff]  ;;  %v679_v48 = vld [vmem:[%s2523_s5 + $0x18] sm:$0xff] }
  0x8f   :  { %648 = vmatpush.msrb.mxu2 %v447_v60  ;;  %668 = vmatpush.msrb.mxu3 %v479_v3  ;;  %v768_v60 = vld [vmem:[%s2525_s7 + $0x78] sm:$0xff]  ;;  %v510_v3 = vperm.slane %v508_v0, 0 }
  0x90   :  { %609 = vmatpush.msrb.mxu0 %v381_v47  ;;  %629 = vmatpush.msrb.mxu1 %v413_v51  ;;  %v700_v47 = vld [vmem:[%s2523_s5 + $0xc0] sm:$0xff]  ;;  %v698_v51 = vld [vmem:[%s2523_s5 + $0xb0] sm:$0xff]  ;;  %s1741_s5 = smov 28  }
  0x91   :  { %649 = vmatpush.msrb.mxu2 %v445_v63  ;;  %669 = vmatpush.msrb.mxu3 %v477_v5  ;;  %v765_v63 = vld [vmem:[%s2525_s7 + $0x60] sm:$0xff]  ;;  %v762_v5 = vld [vmem:[%s2525_s7 + $0x48] sm:$0xff] }
  0xbf   :  { %v233_v6 = vpop.f32.mrf.mxu0 }
  0xc0   :  { %v234_v7 = vadd.f32 %v233_v6, %v202_v2  ;;  %v273_v8 = vpop.f32.mrf.mxu2 }
  0xc1   :  { %v253_v9 = vpop.f32.mrf.mxu1  ;;  %v274_v10 = vadd.f32 %v273_v8, %v203_v4  ;;  %v763_v4 = vld [vmem:[%s2525_s7 + $0x50] sm:$0xff]  ;;  %v761_v8 = vld [vmem:[%s2525_s7 + $0x40] sm:$0xff] }
  0xc2   :  { %v254_v11 = vadd.f32 %v253_v9, %v234_v7 }
  0xc3   :  { %v293_v12 = vpop.f32.mrf.mxu3 }
  0xc4   :  { %v376_v13 = vmax.f32 %v254_v11, 0.0  ;;  %v294_v14 = vadd.f32 %v293_v12, %v274_v10  ;;  %v760_v10 = vld [vmem:[%s2525_s7 + $0x38] sm:$0xff]  ;;  %v511_v12 = vperm.slane %v508_v0, 1 }
  0xc6   :  { %v377_v16 = vmax.f32 %v294_v14, 0.0  ;;  %530 = vmatmul.f32.vlgmr.msra.gmra.mxu0 %v376_v13 }
  0xc7   :  { %712 = vmatpush.msra.mxu0 %v691_v15 }
  0xc8   :  { %550 = vmatmul.f32.vlgmr.msra.gmra.mxu1 %v377_v16 }
  0xc9   :  { %713 = vmatpush.msra.mxu0 %v690_v29  ;;  %732 = vmatpush.msra.mxu1 %v707_v32  ;;  %v756_v29 = vld [vmem:[%s2525_s7 + $0x18] sm:$0xff]  ;;  %v753_v32 = vld [vmem:[%s2525_s7] sm:$0xff] }
  0xcb   :  { %714 = vmatpush.msra.mxu0 %v689_v30  ;;  %733 = vmatpush.msra.mxu1 %v706_v35  ;;  %v755_v30 = vld [vmem:[%s2525_s7 + $0x10] sm:$0xff] }
  0xcc   :  { %v313_v18 = vpop.f32.mrf.mxu0 }
  0xcd   :  { %v314_v19 = vadd.f32 %v313_v18, %v204_v17  ;;  %715 = vmatpush.msra.mxu0 %v688_v31  ;;  %734 = vmatpush.msra.mxu1 %v705_v37  ;;  %v754_v31 = vld [vmem:[%s2525_s7 + $0x8] sm:$0xff] }
  0xce   :  { %v333_v20 = vpop.f32.mrf.mxu1  ;;  %610 = vmatmul.f32.vlgmr.msrb.gmra.mxu0 %v376_v13 }
  0xcf   :  { %v334_v21 = vadd.f32 %v333_v20, %v314_v19  ;;  %716 = vmatpush.msra.mxu0 %v687_v33  ;;  %735 = vmatpush.msra.mxu1 %v704_v39  ;;  %v1638_v33 = vld [vmem:[%s2524_s6] ss:$0 sm:$0xff] }
  0xd0   :  { %630 = vmatmul.f32.vlgmr.msrb.gmra.mxu1 %v377_v16  ;;  %v1639_v39 = vld [vmem:[%s2526_s8] ss:$0 sm:$0xff] }
  0xd1   :  { %v378_v23 = vmax.f32 %v334_v21, 0.0  ;;  %717 = vmatpush.msra.mxu0 %v686_v34  ;;  %736 = vmatpush.msra.mxu1 %v703_v41 }
  0xd2   :  { %v353_v24 = vpop.f32.mrf.mxu2 }
  0xd3   :  { %v354_v25 = vadd.f32 %v353_v24, %v205_v22  ;;  %570 = vmatmul.f32.vlgmr.msra.gmra.mxu2 %v378_v23  ;;  %718 = vmatpush.msra.mxu0 %v685_v36 }
  0xd4   :  { %v373_v26 = vpop.f32.mrf.mxu3  ;;  %737 = vmatpush.msra.mxu1 %v702_v43  ;;  %773 = vmatpush.msra.mxu2 %v768_v60 }
  0xd5   :  { %v374_v27 = vadd.f32 %v373_v26, %v354_v25  ;;  %719 = vmatpush.msra.mxu0 %v684_v38  ;;  %v759_v26 = vld [vmem:[%s2525_s7 + $0x30] sm:$0xff] }
  0xd6   :  { %738 = vmatpush.msra.mxu1 %v701_v45  ;;  %774 = vmatpush.msra.mxu2 %v767_v61 }
  0xd7   :  { %v379_v28 = vmax.f32 %v374_v27, 0.0  ;;  %720 = vmatpush.msra.mxu0 %v683_v40  ;;  %v758_v27 = vld [vmem:[%s2525_s7 + $0x28] sm:$0xff] }
  0xd8   :  { %739 = vmatpush.msra.mxu1 %v700_v47  ;;  %775 = vmatpush.msra.mxu2 %v766_v62 }
  0xd9   :  { %590 = vmatmul.f32.vlgmr.msra.gmra.mxu3 %v379_v28  ;;  %721 = vmatpush.msra.mxu0 %v682_v42 }
  0xda   :  { %740 = vmatpush.msra.mxu1 %v699_v49  ;;  %776 = vmatpush.msra.mxu2 %v765_v63 }
  0xdb   :  { %650 = vmatmul.f32.vlgmr.msrb.gmra.mxu2 %v378_v23  ;;  %722 = vmatpush.msra.mxu0 %v681_v44 }
  0xdc   :  { %741 = vmatpush.msra.mxu1 %v698_v51  ;;  %777 = vmatpush.msra.mxu2 %v764_v1 }
  0xdd   :  { %723 = vmatpush.msra.mxu0 %v680_v46  ;;  %v1736_v46 = vmov 0.0  }
  0xde   :  { %742 = vmatpush.msra.mxu1 %v697_v53  ;;  %778 = vmatpush.msra.mxu2 %v763_v4 }
  0xdf   :  { %724 = vmatpush.msra.mxu0 %v679_v48 }
  0xe0   :  { %743 = vmatpush.msra.mxu1 %v696_v55  ;;  %779 = vmatpush.msra.mxu2 %v762_v5 }
  0xe1   :  { %670 = vmatmul.f32.vlgmr.msrb.gmra.mxu3 %v379_v28  ;;  %725 = vmatpush.msra.mxu0 %v678_v50  ;;  %v757_v28 = vld [vmem:[%s2525_s7 + $0x20] sm:$0xff] }
  0xe2   :  { %744 = vmatpush.msra.mxu1 %v695_v56  ;;  %780 = vmatpush.msra.mxu2 %v761_v8 }
  0xe3   :  { %726 = vmatpush.msra.mxu0 %v677_v52 }
  0xe4   :  { %745 = vmatpush.msra.mxu1 %v694_v57  ;;  %781 = vmatpush.msra.mxu2 %v760_v10 }
  0xe5   :  { %727 = vmatpush.msra.mxu0 %v676_v54 }
  0xe6   :  { %746 = vmatpush.msra.mxu1 %v693_v58  ;;  %782 = vmatpush.msra.mxu2 %v759_v26 }
  0xe8   :  { %747 = vmatpush.msra.mxu1 %v692_v59  ;;  %783 = vmatpush.msra.mxu2 %v758_v27 }
  0xea   :  { %784 = vmatpush.msra.mxu2 %v757_v28 }
  0xec   :  { %785 = vmatpush.msra.mxu2 %v756_v29 }
  0xee   :  { %786 = vmatpush.msra.mxu2 %v755_v30 }
  0xf0   :  { %787 = vmatpush.msra.mxu2 %v754_v31 }
  0xf2   :  { %788 = vmatpush.msra.mxu2 %v753_v32 }
 0x143   :  { %v531_v2 = vpop.f32.mrf.mxu0 }
 0x144   :  { %v532_v7 = vadd.f32 %v531_v2, %v510_v3 }
 0x145   :  { %v551_v6 = vpop.f32.mrf.mxu1 }
 0x146   :  { %v552_v11 = vadd.f32 %v551_v6, %v532_v7 }
 0x14b   :  { %v611_v13 = vpop.f32.mrf.mxu0 }
 0x14c   :  { %v612_v16 = vadd.f32 %v611_v13, %v511_v12 }
 0x14d   :  { %v631_v18 = vpop.f32.mrf.mxu1 }
 0x14e   :  { %v632_v21 = vadd.f32 %v631_v18, %v612_v16 }
 0x156   :  { %v571_v9 = vpop.f32.mrf.mxu2 }
 0x157   :  { %v572_v14 = vadd.f32 %v571_v9, %v552_v11 }
 0x15c   :  { %v591_v15 = vpop.f32.mrf.mxu3 }
 0x15d   :  { %v592_v17 = vadd.f32 %v591_v15, %v572_v14 }
 0x15e   :  { %v651_v20 = vpop.f32.mrf.mxu2 }
 0x15f   :  { %v674_v19 = vmax.f32 %v592_v17, 0.0  ;;  %v652_v22 = vadd.f32 %v651_v20, %v632_v21 }
 0x161   :  { %728 = vmatmul.f32.vlgmr.msra.gmra.mxu0 %v674_v19 }
 0x164   :  { %v671_v23 = vpop.f32.mrf.mxu3 }
 0x165   :  { %v672_v24 = vadd.f32 %v671_v23, %v652_v22 }
 0x167   :  { %v675_v25 = vmax.f32 %v672_v24, 0.0 }
 0x169   :  { %748 = vmatmul.f32.vlgmr.msra.gmra.mxu1 %v675_v25 }
 0x1de   :  { %v729_v34 = vpop.f32.mrf.mxu0 }
 0x1df   :  { %v730_v35 = vadd.f32 %v1638_v33, %v729_v34  ;;  %v809_v34 = vld [vmem:[%s2527_s9 + $0x78] sm:$0xff] }
 0x1e0   :  { %1120 = vmatpush.msra.mxu3 %v809_v34 }
 0x1e6   :  { %v749_v36 = vpop.f32.mrf.mxu1 }
 0x1e7   :  { %v750_v37 = vadd.f32 %v749_v36, %v730_v35  ;;  %v808_v35 = vld [vmem:[%s2527_s9 + $0x70] sm:$0xff] }
 0x1e8   :  { %1121 = vmatpush.msra.mxu3 %v808_v35 }
 0x1e9   :  { %v752_v38 = vmax.f32 %v750_v37, 0.0 }
 0x1eb   :  { %789 = vmatmul.f32.vlgmr.msra.gmra.mxu2 %v752_v38 }
 0x26e   :  { %v790_v40 = vpop.f32.mrf.mxu2 }
 0x26f   :  { %v791_v41 = vadd.f32 %v1639_v39, %v790_v40 }
 0x271   :  { %v1984_v42 = vmax.f32 %v791_v41, 0.0 }
 0x273   :  { %vm906_vm0 = vcmp.ge.f32.partialorder %v1984_v42, -0.6  ;;  %vm907_vm1 = vcmp.lt.f32.partialorder %v1984_v42, -0.2  ;;  %vm911_vm2 = vcmp.ge.f32.partialorder %v1984_v42, -0.2 }
 0x274   :  { %vm908_vm3 = vmand %vm906_vm0, %vm907_vm1  ;;  %vm912_vm4 = vcmp.lt.f32.partialorder %v1984_v42, 0.2  ;;  %vm916_vm5 = vcmp.ge.f32.partialorder %v1984_v42, 0.2  ;;  %vm917_vm6 = vcmp.lt.f32.partialorder %v1984_v42, 0.6 }
 0x275   :  { %vm913_vm7 = vmand %vm911_vm2, %vm912_vm4  ;;  %vm921_vm8 = vcmp.ge.f32.partialorder %v1984_v42, 0.6  ;;  %vm922_vm9 = vcmp.lt.f32.partialorder %v1984_v42, 1.0  ;;  %v1586_v43 = vadd.f32 0.6, %v1984_v42  ;;  %v986_v45 = vsub.f32 1.0, %v1984_v42 }
 0x276   :  { %vm918_vm10 = vmand %vm916_vm5, %vm917_vm6  ;;  %v1996_v44 = vsub.f32 0.2, %v1984_v42  ;;  %v1575_v47 = vsel %vm908_vm3, 1.0, %v1736_v46  ;;  %v1576_v48 = vsel %vm913_vm7, 1.0, %v1736_v46  ;;  %v2002_v49 = vsub.f32 -0.2, %v1984_v42 }
 0x277   :  { %vm923_vm11 = vmand %vm921_vm8, %vm922_vm9  ;;  %v1587_v50 = vadd.f32 0.2, %v1984_v42  ;;  %v1577_v51 = vsel %vm918_vm10, 1.0, %v1736_v46  ;;  %v970_v53 = vmul.f32 2.4999995, %v1586_v43  ;;  %vm897_vm12 = vcmp.lt.f32.partialorder %v1984_v42, -1.0 }
 0x278   :  { %v1578_v52 = vsel %vm923_vm11, 1.0, %v1736_v46  ;;  %v973_v54 = vmul.f32 2.4999995, %v1996_v44  ;;  %v979_v56 = vsub.f32 0.6, %v1984_v42  ;;  %vm901_vm13 = vcmp.ge.f32.partialorder %v1984_v42, -1.0 }
 0x279   :  { %v977_v55 = vmul.f32 2.4999995, %v1587_v50  ;;  %v2010_v57 = vadd.f32 -0.2, %v1984_v42  ;;  %v971_v58 = vmul.f32 %v1575_v47, %v970_v53  ;;  %v987_v60 = vmul.f32 2.4999995, %v986_v45 }
 0x27a   :  { %v974_v59 = vmul.f32 %v1576_v48, %v973_v54  ;;  %v2013_v61 = vadd.f32 -0.6, %v1984_v42  ;;  %v966_v62 = vmul.f32 2.4999995, %v2002_v49  ;;  %v980_v0 = vmul.f32 2.4999995, %v979_v56 }
 0x27b   :  { %v978_v63 = vmul.f32 %v1576_v48, %v977_v55  ;;  %v984_v1 = vmul.f32 2.4999995, %v2010_v57  ;;  %v988_v3 = vmul.f32 %v1578_v52, %v987_v60  ;;  %v1031_v4 = vmul.f32 1.2499998, %v1586_v43  ;;  %v841_v53 = vld [vmem:[%s2527_s9 + $0x178] sm:$0xff] }
 0x27c   :  { %v2017_v2 = vadd.f32 %v974_v59, %v971_v58  ;;  %v981_v5 = vmul.f32 %v1577_v51, %v980_v0  ;;  %v2021_v7 = vmul.f32 1.2499998, %v1996_v44  ;;  %v991_v8 = vmul.f32 2.4999995, %v2013_v61  ;;  %v806_v59 = vld [vmem:[%s2527_s9 + $0x60] sm:$0xff]  ;;  %1160 = vmatpush.msrb.mxu1 %v841_v53 }
 0x27d   :  { %v985_v6 = vmul.f32 %v1577_v51, %v984_v1  ;;  %v1033_v10 = vmul.f32 1.2499998, %v979_v56  ;;  %v1036_v11 = vmul.f32 1.2499998, %v1587_v50  ;;  %v1038_v14 = vmul.f32 1.2499998, %v986_v45 }
 0x27e   :  { %v1032_v9 = vmul.f32 %v1031_v4, %v2017_v2  ;;  %v982_v12 = vadd.f32 %v981_v5, %v978_v63  ;;  %v1073_v15 = vmul.f32 0.83333313, %v979_v56  ;;  %v1076_v16 = vmul.f32 0.83333313, %v1586_v43  ;;  %v805_v1 = vld [vmem:[%s2527_s9 + $0x58] sm:$0xff] }
 0x27f   :  { %v2026_v13 = vadd.f32 %v988_v3, %v985_v6  ;;  %v1078_v17 = vmul.f32 0.83333313, %v986_v45  ;;  %v2028_v18 = vmul.f32 %v1575_v47, %v966_v62  ;;  %vm886_vm14 = vcmp.ge.f32.partialorder %v1984_v42, -2.2  ;;  %v807_v47 = vld [vmem:[%s2527_s9 + $0x68] sm:$0xff] }
 0x280   :  { %v1034_v19 = vmul.f32 %v1033_v10, %v982_v12  ;;  %v1037_v20 = vmul.f32 %v1036_v11, %v982_v12  ;;  %v1081_v22 = vmul.f32 0.83333313, %v1587_v50  ;;  %v2032_v23 = vmul.f32 %v1578_v52, %v991_v8  ;;  %1122 = vmatpush.msra.mxu3 %v807_v47  ;;  %v836_v47 = vld [vmem:[%s2527_s9 + $0x150] sm:$0xff] }
 0x281   :  { %v1039_v21 = vmul.f32 %v1038_v14, %v2026_v13  ;;  %vm887_vm15 = vcmp.lt.f32.partialorder %v1984_v42, -1.8  ;;  %vm891_vm0 = vcmp.ge.f32.partialorder %v1984_v42, -1.8  ;;  %vm892_vm1 = vcmp.lt.f32.partialorder %v1984_v42, -1.4 }
 0x282   :  { %v1035_v24 = vadd.f32 %v1034_v19, %v1032_v9  ;;  %vm888_vm2 = vmand %vm886_vm14, %vm887_vm15  ;;  %vm896_vm3 = vcmp.ge.f32.partialorder %v1984_v42, -1.4  ;;  %vm902_vm4 = vcmp.lt.f32.partialorder %v1984_v42, -0.6  ;;  %v1582_v27 = vadd.f32 2.2, %v1984_v42  ;;  %1123 = vmatpush.msra.mxu3 %v806_v59 }
 0x283   :  { %v1040_v25 = vadd.f32 %v1039_v21, %v1037_v20  ;;  %v1571_v26 = vsel %vm888_vm2, 1.0, %v1736_v46  ;;  %vm893_vm5 = vmand %vm891_vm0, %vm892_vm1  ;;  %v944_v28 = vsub.f32 -1.4, %v1984_v42  ;;  %v951_v29 = vsub.f32 -1.0, %v1984_v42  ;;  %v838_v21 = vld [vmem:[%s2527_s9 + $0x160] sm:$0xff] }
 0x284   :  { %v1077_v30 = vmul.f32 %v1076_v16, %v1035_v24  ;;  %v2045_v33 = vmul.f32 %v1073_v15, %v1035_v24  ;;  %vm898_vm6 = vmand %vm896_vm3, %vm897_vm12  ;;  %v1572_v36 = vsel %vm893_vm5, 1.0, %v1736_v46  ;;  %v942_v38 = vmul.f32 2.4999995, %v1582_v27  ;;  %1124 = vmatpush.msra.mxu3 %v805_v1 }
 0x285   :  { %v1079_v31 = vmul.f32 %v1078_v17, %v1040_v25  ;;  %v2043_v32 = vmul.f32 %v1081_v22, %v1040_v25  ;;  %v1573_v37 = vsel %vm898_vm6, 1.0, %v1736_v46  ;;  %vm903_vm7 = vmand %vm901_vm13, %vm902_vm4  ;;  %v945_v39 = vmul.f32 2.4999995, %v944_v28  ;;  %v804_v17 = vld [vmem:[%s2527_s9 + $0x50] sm:$0xff]  ;;  %v803_v25 = vld [vmem:[%s2527_s9 + $0x48] sm:$0xff] }
 0x286   :  { %v1574_v41 = vsel %vm903_vm7, 1.0, %v1736_v46  ;;  %v1583_v43 = vadd.f32 1.8, %v1984_v42  ;;  %v952_v45 = vmul.f32 2.4999995, %v951_v29  ;;  %v943_v48 = vmul.f32 %v1571_v26, %v942_v38  ;;  %1125 = vmatpush.msra.mxu3 %v804_v17  ;;  %v802_v38 = vld [vmem:[%s2527_s9 + $0x40] sm:$0xff] }
 0x287   :  { %v1080_v40 = vadd.f32 %v1079_v31, %v1077_v30  ;;  %v946_v50 = vmul.f32 %v1572_v36, %v945_v39  ;;  %v2067_v51 = vadd.f32 1.4, %v1984_v42  ;;  %v958_v52 = vsub.f32 -0.6, %v1984_v42  ;;  %v837_v30 = vld [vmem:[%s2527_s9 + $0x158] sm:$0xff]  ;;  %v855_v17 = vld [vmem:[%s2527_s9 + $0x1e8] sm:$0xff] }
 0x288   :  { %v949_v54 = vmul.f32 2.4999995, %v1583_v43  ;;  %v953_v55 = vmul.f32 %v1573_v37, %v952_v45  ;;  %v2075_v56 = vadd.f32 1.0, %v1984_v42  ;;  %v1011_v58 = vmul.f32 1.2499998, %v1582_v27  ;;  %v825_v31 = vld [vmem:[%s2527_s9 + $0xf8] sm:$0xff]  ;;  %1126 = vmatpush.msra.mxu3 %v803_v25 }
 0x289   :  { %1105 = vrot.lane.b32.xlu1 %v1080_v40, %s1737_s0  ;;  %v2082_v60 = vmul.f32 %v2021_v7, %v2017_v2  ;;  %v947_v62 = vadd.f32 %v946_v50, %v943_v48  ;;  %v956_v63 = vmul.f32 2.4999995, %v2067_v51  ;;  %v959_v0 = vmul.f32 2.4999995, %v958_v52  ;;  %v840_v2 = vld [vmem:[%s2527_s9 + $0x170] sm:$0xff]  ;;  %v839_v7 = vld [vmem:[%s2527_s9 + $0x168] sm:$0xff]  ;;  %1140 = vmatpush.msrb.mxu0 %v825_v31 }
 0x28a   :  { %v950_v3 = vmul.f32 %v1572_v36, %v949_v54  ;;  %v963_v4 = vmul.f32 2.4999995, %v2075_v56  ;;  %v1013_v5 = vmul.f32 1.2499998, %v951_v29  ;;  %v1016_v6 = vmul.f32 1.2499998, %v1583_v43  ;;  %1161 = vmatpush.msrb.mxu1 %v840_v2  ;;  %1127 = vmatpush.msra.mxu3 %v802_v38 }
 0x28b   :  { %v957_v8 = vmul.f32 %v1573_v37, %v956_v63  ;;  %v960_v9 = vmul.f32 %v1574_v41, %v959_v0  ;;  %v1012_v10 = vmul.f32 %v1011_v58, %v947_v62  ;;  %v1018_v11 = vmul.f32 1.2499998, %v958_v52  ;;  %v801_v39 = vld [vmem:[%s2527_s9 + $0x38] sm:$0xff]  ;;  %v824_v62 = vld [vmem:[%s2527_s9 + $0xf0] sm:$0xff]  ;;  %v835_v63 = vld [vmem:[%s2527_s9 + $0x148] sm:$0xff] }
 0x28c   :  { %v954_v12 = vadd.f32 %v953_v55, %v950_v3  ;;  %v964_v14 = vmul.f32 %v1574_v41, %v963_v4  ;;  %v1021_v15 = vmul.f32 1.2499998, %v2067_v51  ;;  %v1056_v16 = vmul.f32 0.83333313, %v1582_v27  ;;  %1162 = vmatpush.msrb.mxu1 %v839_v7  ;;  %v857_v40 = vld [vmem:[%s2527_s9 + $0x1f8] sm:$0xff]  ;;  %1128 = vmatpush.msra.mxu3 %v801_v39  ;;  %v799_v2 = vld [vmem:[%s2527_s9 + $0x28] sm:$0xff] }
 0x28d   :  { %v961_v19 = vadd.f32 %v960_v9, %v957_v8  ;;  %v1058_v20 = vmul.f32 0.83333313, %v958_v52  ;;  %vm926_vm8 = vcmp.ge.f32.partialorder %v1984_v42, 1.0  ;;  %vm927_vm9 = vcmp.lt.f32.partialorder %v1984_v42, 1.4  ;;  %1180 = vmatpush.msrb.mxu2 %v857_v40  ;;  %1141 = vmatpush.msrb.mxu0 %v824_v62  ;;  %v823_v7 = vld [vmem:[%s2527_s9 + $0xe8] sm:$0xff] }
 0x28e   :  { %v1014_v22 = vmul.f32 %v1013_v5, %v954_v12  ;;  %v1017_v24 = vmul.f32 %v1016_v6, %v954_v12  ;;  %vm928_vm10 = vmand %vm926_vm8, %vm927_vm9  ;;  %vm931_vm11 = vcmp.ge.f32.partialorder %v1984_v42, 1.4  ;;  %vm932_vm12 = vcmp.lt.f32.partialorder %v1984_v42, 1.8  ;;  %1163 = vmatpush.msrb.mxu1 %v838_v21  ;;  %v800_v5 = vld [vmem:[%s2527_s9 + $0x30] sm:$0xff]  ;;  %v834_v12 = vld [vmem:[%s2527_s9 + $0x140] sm:$0xff] }
 0x28f   :  { %v1019_v26 = vmul.f32 %v1018_v11, %v961_v19  ;;  %v1022_v27 = vmul.f32 %v1021_v15, %v961_v19  ;;  %v1061_v28 = vmul.f32 0.83333313, %v1583_v43  ;;  %v1579_v29 = vsel %vm928_vm10, 1.0, %v1736_v46  ;;  %vm933_vm13 = vmand %vm931_vm11, %vm932_vm12  ;;  %v856_v6 = vld [vmem:[%s2527_s9 + $0x1f0] sm:$0xff]  ;;  %v822_v19 = vld [vmem:[%s2527_s9 + $0xe0] sm:$0xff]  ;;  %1129 = vmatpush.msra.mxu3 %v800_v5  ;;  %1142 = vmatpush.msrb.mxu0 %v823_v7 }
 0x290   :  { %v1015_v34 = vadd.f32 %v1014_v22, %v1012_v10  ;;  %v968_v35 = vadd.f32 %v2028_v18, %v964_v14  ;;  %v2118_v36 = vsub.f32 1.4, %v1984_v42  ;;  %v1590_v37 = vadd.f32 -1.0, %v1984_v42  ;;  %1164 = vmatpush.msrb.mxu1 %v837_v30  ;;  %1181 = vmatpush.msrb.mxu2 %v856_v6  ;;  %v797_v40 = vld [vmem:[%s2527_s9 + $0x18] sm:$0xff]  ;;  %v830_v62 = vld [vmem:[%s2527_s9 + $0x120] sm:$0xff] }
 0x291   :  { %v1020_v18 = vadd.f32 %v1019_v26, %v1017_v24  ;;  %v2131_v41 = vsel %vm933_vm13, 1.0, %v1736_v46  ;;  %v2134_v43 = vsub.f32 1.8, %v1984_v42  ;;  %v1023_v45 = vmul.f32 1.2499998, %v2002_v49  ;;  %1130 = vmatpush.msra.mxu3 %v799_v2  ;;  %1143 = vmatpush.msrb.mxu0 %v822_v19  ;;  %v829_v5 = vld [vmem:[%s2527_s9 + $0x118] sm:$0xff] }
 0x292   :  { %v1057_v48 = vmul.f32 %v1056_v16, %v1015_v34  ;;  %v994_v50 = vmul.f32 2.4999995, %v2118_v36  ;;  %v998_v52 = vmul.f32 2.4999995, %v1590_v37  ;;  %v1026_v53 = vmul.f32 1.2499998, %v2075_v56  ;;  %1165 = vmatpush.msrb.mxu1 %v836_v47  ;;  %1182 = vmatpush.msrb.mxu2 %v855_v17 }
 0x293   :  { %v1041_v54 = vmul.f32 1.2499998, %v2010_v57  ;;  %v1059_v55 = vmul.f32 %v1058_v20, %v1020_v18  ;;  %v2143_v58 = vmul.f32 %v1061_v28, %v1020_v18  ;;  %v1001_v59 = vmul.f32 2.4999995, %v2134_v43  ;;  %v798_v28 = vld [vmem:[%s2527_s9 + $0x20] sm:$0xff]  ;;  %v832_v34 = vld [vmem:[%s2527_s9 + $0x130] sm:$0xff] }
 0x294   :  { %v995_v0 = vmul.f32 %v1579_v29, %v994_v50  ;;  %v999_v1 = vmul.f32 %v1579_v29, %v998_v52  ;;  %v1024_v3 = vmul.f32 %v1023_v45, %v968_v35  ;;  %v1027_v4 = vmul.f32 %v1026_v53, %v968_v35  ;;  %1166 = vmatpush.msrb.mxu1 %v835_v63  ;;  %v854_v29 = vld [vmem:[%s2527_s9 + $0x1e0] sm:$0xff]  ;;  %v853_v18 = vld [vmem:[%s2527_s9 + $0x1d8] sm:$0xff]  ;;  %v864_v19 = vld [vmem:[%s2527_s9 + $0x230] sm:$0xff] }
 0x295   :  { %v1042_v8 = vmul.f32 %v1041_v54, %v2026_v13  ;;  %v1060_v9 = vadd.f32 %v1059_v55, %v1057_v48  ;;  %v1002_v10 = vmul.f32 %v2131_v41, %v1001_v59  ;;  %v1043_v11 = vmul.f32 1.2499998, %v2118_v36  ;;  %1131 = vmatpush.msra.mxu3 %v798_v28  ;;  %1183 = vmatpush.msrb.mxu2 %v854_v29  ;;  %v852_v54 = vld [vmem:[%s2527_s9 + $0x1d0] sm:$0xff]  ;;  %v849_v17 = vld [vmem:[%s2527_s9 + $0x1b8] sm:$0xff] }
 0x296   :  { %v996_v13 = vadd.f32 %v995_v0, %v2032_v23  ;;  %v2171_v14 = vadd.f32 %v1024_v3, %v1022_v27  ;;  %v1030_v15 = vadd.f32 %v2082_v60, %v1027_v4  ;;  %v1046_v16 = vmul.f32 1.2499998, %v2013_v61  ;;  %v833_v23 = vld [vmem:[%s2527_s9 + $0x138] sm:$0xff]  ;;  %1167 = vmatpush.msrb.mxu1 %v834_v12  ;;  %v795_v0 = vld [vmem:[%s2527_s9 + $0x8] sm:$0xff]  ;;  %v818_v4 = vld [vmem:[%s2527_s9 + $0xc0] sm:$0xff] }
 0x297   :  { %1097 = vrot.lane.b32.xlu0 %v1060_v9, %s1737_s0  ;;  %v1003_v20 = vadd.f32 %v1002_v10, %v999_v1  ;;  %v1048_v60 = vmul.f32 1.2499998, %v2134_v43  ;;  %v1051_v21 = vmul.f32 1.2499998, %v1590_v37  ;;  %v1066_v22 = vmul.f32 0.83333313, %v2067_v51  ;;  %1132 = vmatpush.msra.mxu3 %v797_v40 }
 0x298   :  { %v1591_v24 = vadd.f32 -1.4, %v1984_v42  ;;  %v1044_v25 = vmul.f32 %v1043_v11, %v996_v13  ;;  %v1047_v26 = vmul.f32 %v1046_v16, %v996_v13  ;;  %v1068_v27 = vmul.f32 0.83333313, %v1996_v44  ;;  %v821_v44 = vld [vmem:[%s2527_s9 + $0xd8] sm:$0xff]  ;;  %1168 = vmatpush.msrb.mxu1 %v833_v23  ;;  %1184 = vmatpush.msrb.mxu2 %v853_v18  ;;  %v851_v1 = vld [vmem:[%s2527_s9 + $0x1c8] sm:$0xff] }
 0x299   :  { %v1049_v30 = vmul.f32 %v1048_v60, %v1003_v20  ;;  %v2195_v31 = vmul.f32 %v1051_v21, %v1003_v20  ;;  %v1067_v51 = vmul.f32 %v1066_v22, %v2171_v14  ;;  %v1086_v38 = vmul.f32 0.83333313, %v2010_v57  ;;  %v820_v57 = vld [vmem:[%s2527_s9 + $0xd0] sm:$0xff]  ;;  %1144 = vmatpush.msrb.mxu0 %v821_v44  ;;  %v794_v9 = vld [vmem:[%s2527_s9] sm:$0xff]  ;;  %v865_v12 = vld [vmem:[%s2527_s9 + $0x238] sm:$0xff] }
 0x29a   :  { %v1045_v35 = vadd.f32 %v1044_v25, %v1042_v8  ;;  %v1069_v37 = vmul.f32 %v1068_v27, %v1030_v15  ;;  %v1088_v39 = vmul.f32 0.83333313, %v2134_v43  ;;  %v1091_v47 = vmul.f32 0.83333313, %v2013_v61  ;;  %v831_v43 = vld [vmem:[%s2527_s9 + $0x128] sm:$0xff]  ;;  %1169 = vmatpush.msrb.mxu1 %v832_v34  ;;  %v796_v61 = vld [vmem:[%s2527_s9 + $0x10] sm:$0xff]  ;;  %1185 = vmatpush.msrb.mxu2 %v852_v54 }
 0x29b   :  { %v1050_v45 = vadd.f32 %v1049_v30, %v1047_v26  ;;  %v1071_v48 = vmul.f32 0.83333313, %v2075_v56  ;;  %v1005_v50 = vmul.f32 2.4999995, %v1591_v24  ;;  %v819_v56 = vld [vmem:[%s2527_s9 + $0xc8] sm:$0xff]  ;;  %1145 = vmatpush.msrb.mxu0 %v820_v57  ;;  %1133 = vmatpush.msra.mxu3 %v796_v61  ;;  %v816_v20 = vld [vmem:[%s2527_s9 + $0xb0] sm:$0xff] }
 0x29c   :  { %v1070_v52 = vadd.f32 %v1069_v37, %v1067_v51  ;;  %v1087_v53 = vmul.f32 %v1086_v38, %v1045_v35  ;;  %vm936_vm14 = vcmp.ge.f32.partialorder %v1984_v42, 1.8  ;;  %1170 = vmatpush.msrb.mxu1 %v831_v43  ;;  %vm937_vm15 = vcmp.lt.f32.partialorder %v1984_v42, 2.2  ;;  %1186 = vmatpush.msrb.mxu2 %v851_v1  ;;  %v848_v22 = vld [vmem:[%s2527_s9 + $0x1b0] sm:$0xff]  ;;  %v863_v24 = vld [vmem:[%s2527_s9 + $0x228] sm:$0xff] }
 0x29d   :  { %v1089_v55 = vmul.f32 %v1088_v39, %v1050_v45  ;;  %v2226_v59 = vmul.f32 %v1091_v47, %v1050_v45  ;;  %v1072_v63 = vmul.f32 %v1071_v48, %v1030_v15  ;;  %v1007_v8 = vsub.f32 2.2, %v1984_v42  ;;  %1146 = vmatpush.msrb.mxu0 %v819_v56  ;;  %vm938_vm0 = vmand %vm936_vm14, %vm937_vm15  ;;  %1134 = vmatpush.msra.mxu3 %v795_v0  ;;  %v815_v34 = vld [vmem:[%s2527_s9 + $0xa8] sm:$0xff]  ;;  %v862_v37 = vld [vmem:[%s2527_s9 + $0x220] sm:$0xff] }
 0x29e   :  { %1171 = vmatpush.msrb.mxu1 %v830_v62  ;;  %v1063_v10 = vmul.f32 0.83333313, %v2002_v49  ;;  %v1083_v11 = vmul.f32 0.83333313, %v2118_v36  ;;  %v1006_v2 = vmul.f32 %v2131_v41, %v1005_v50  ;;  %v1581_v13 = vsel %vm938_vm0, 1.0, %v1736_v46  ;;  %v817_v49 = vld [vmem:[%s2527_s9 + $0xb8] sm:$0xff] }
 0x29f   :  { %v1090_v3 = vadd.f32 %v1089_v55, %v1087_v53  ;;  %v2249_v6 = vadd.f32 %v2045_v33, %v1072_v63  ;;  %v850_v33 = vld [vmem:[%s2527_s9 + $0x1c0] sm:$0xff]  ;;  %v1008_v15 = vmul.f32 2.4999995, %v1007_v8  ;;  %1147 = vmatpush.msrb.mxu0 %v818_v4  ;;  %v828_v36 = vld [vmem:[%s2527_s9 + $0x110] sm:$0xff]  ;;  %1135 = vmatpush.msra.mxu3 %v794_v9  ;;  %v1053_v26 = vmul.f32 1.2499998, %v1007_v8 }
 0x2a0   :  { %1172 = vmatpush.msrb.mxu1 %v829_v5  ;;  %v1064_v41 = vmul.f32 %v1063_v10, %v2171_v14  ;;  %v1084_v16 = vmul.f32 %v1083_v11, %v1045_v35  ;;  %1187 = vmatpush.msrb.mxu2 %v850_v33  ;;  %v827_v14 = vld [vmem:[%s2527_s9 + $0x108] sm:$0xff]  ;;  %v1093_v27 = vmul.f32 0.83333313, %v1007_v8  ;;  %v1570_v30 = vmul.f32 -1.442695, %v1984_v42  ;;  %v826_v35 = vld [vmem:[%s2527_s9 + $0x100] sm:$0xff] }
 0x2a1   :  { %v1633_v7 = vpack.i.bf16 %v1070_v52, %v1090_v3  ;;  %v1009_v23 = vmul.f32 %v1581_v13, %v1008_v15  ;;  %1208 = vmatpush.msrb.mxu3 %v865_v12  ;;  %1148 = vmatpush.msrb.mxu0 %v817_v49  ;;  %v814_v38 = vld [vmem:[%s2527_s9 + $0xa0] sm:$0xff]  ;;  %v861_v40 = vld [vmem:[%s2527_s9 + $0x218] sm:$0xff]  ;;  %v860_v47 = vld [vmem:[%s2527_s9 + $0x210] sm:$0xff]  ;;  %vm1112_vm1 = vcmask 523264  }
 0x2a2   :  { %v2288_v60 = vadd.f32 %v1064_v41, %v2143_v58  ;;  %v2291_v21 = vadd.f32 %v1084_v16, %v2043_v32  ;;  %1173 = vmatpush.msrb.mxu1 %v828_v36  ;;  %1188 = vmatpush.msrb.mxu2 %v849_v17  ;;  %1640 = vpow2.f32 %v1570_v30  ;;  %v846_v39 = vld [vmem:[%s2527_s9 + $0x1a0] sm:$0xff]  ;;  %v813_v18 = vld [vmem:[%s2527_s9 + $0x98] sm:$0xff]  ;;  %v812_v57 = vld [vmem:[%s2527_s9 + $0x90] sm:$0xff] }
 0x2a3   :  { %1634 = vrot.lane.b32.xlu0 %v1633_v7, %s1737_s0  ;;  %v1010_v25 = vadd.f32 %v1009_v23, %v1006_v2  ;;  %1209 = vmatpush.msrb.mxu3 %v864_v19  ;;  %v845_v45 = vld [vmem:[%s2527_s9 + $0x198] sm:$0xff]  ;;  %v844_v48 = vld [vmem:[%s2527_s9 + $0x190] sm:$0xff]  ;;  %v859_v50 = vld [vmem:[%s2527_s9 + $0x208] sm:$0xff] }
 0x2a4   :  { %1149 = vmatpush.msrb.mxu0 %v816_v20  ;;  %1174 = vmatpush.msrb.mxu1 %v827_v14  ;;  %v811_v61 = vld [vmem:[%s2527_s9 + $0x88] sm:$0xff]  ;;  %v858_v55 = vld [vmem:[%s2527_s9 + $0x200] sm:$0xff] }
 0x2a5   :  { %1189 = vmatpush.msrb.mxu2 %v848_v22  ;;  %1210 = vmatpush.msrb.mxu3 %v863_v24  ;;  %v1054_v32 = vmul.f32 %v1053_v26, %v1010_v25  ;;  %v843_v54 = vld [vmem:[%s2527_s9 + $0x188] sm:$0xff]  ;;  %v842_v56 = vld [vmem:[%s2527_s9 + $0x180] sm:$0xff] }
 0x2a6   :  { %1150 = vmatpush.msrb.mxu0 %v815_v34  ;;  %1175 = vmatpush.msrb.mxu1 %v826_v35 }
 0x2a7   :  { %v1055_v58 = vadd.f32 %v1054_v32, %v2195_v31  ;;  %v847_v31 = vld [vmem:[%s2527_s9 + $0x1a8] sm:$0xff]  ;;  %1211 = vmatpush.msrb.mxu3 %v862_v37 }
 0x2a8   :  { %v1641_v51 = vpop.eup %1640  ;;  %1190 = vmatpush.msrb.mxu2 %v847_v31  ;;  %1151 = vmatpush.msrb.mxu0 %v814_v38 }
 0x2a9   :  { %v1094_v28 = vmul.f32 %v1093_v27, %v1055_v58  ;;  %v869_v44 = vadd.f32 1.0, %v1641_v51  ;;  %1212 = vmatpush.msrb.mxu3 %v861_v40 }
 0x2aa   :  { %1191 = vmatpush.msrb.mxu2 %v846_v39  ;;  %1152 = vmatpush.msrb.mxu0 %v813_v18 }
 0x2ab   :  { %v2301_v29 = vadd.f32 %v1094_v28, %v2226_v59  ;;  %1642 = vrcp.f32 %v869_v44  ;;  %1213 = vmatpush.msrb.mxu3 %v860_v47  ;;  %v810_v59 = vld [vmem:[%s2527_s9 + $0x80] sm:$0xff]  ;;  %v881_v3 = vand.u32 2147483648, %v869_v44  ;;  %vm875_vm3 = vweird.f32 %v869_v44  ;;  %s1738_s9 = smov 8  }
 0x2ac   :  { %1192 = vmatpush.msrb.mxu2 %v845_v45  ;;  %1153 = vmatpush.msrb.mxu0 %v812_v57  ;;  %v879_v4 = vand.u32 2147483647, %v869_v44 }
 0x2ad   :  { %1214 = vmatpush.msrb.mxu3 %v859_v50  ;;  %v882_v8 = vor.u32 1.1754944e-38, %v881_v3 }
 0x2ae   :  { %1193 = vmatpush.msrb.mxu2 %v844_v48  ;;  %1154 = vmatpush.msrb.mxu0 %v811_v61  ;;  %vm880_vm5 = vcmp.eq.f32.partialorder %v879_v4, 8.507059e+37 }
 0x2af   :  { %1215 = vmatpush.msrb.mxu3 %v858_v55 }
 0x2b0   :  { %1194 = vmatpush.msrb.mxu2 %v843_v54  ;;  %1155 = vmatpush.msrb.mxu0 %v810_v59 }
 0x2b1   :  { %v1643_v43 = vpop.eup %1642 }
 0x2b2   :  { %v871_v52 = vmul.f32 %v1643_v43, %v869_v44  ;;  %1195 = vmatpush.msrb.mxu2 %v842_v56  ;;  %vm876_vm2 = vweird.f32 %v1643_v43 }
 0x2b3   :  { %vm877_vm4 = vmor %vm875_vm3, %vm876_vm2 }
 0x2b4   :  { %v872_v53 = vsub.f32 1.0, %v871_v52 }
 0x2b6   :  { %v873_v63 = vmul.f32 %v1643_v43, %v872_v53 }
 0x2b8   :  { %v874_v1 = vadd.f32 %v1643_v43, %v873_v63 }
 0x2ba   :  { %v878_v5 = vsel %vm877_vm4, %v1643_v43, %v874_v1 }
 0x2bb   :  { %v883_v9 = vsel %vm880_vm5, %v882_v8, %v878_v5 }
 0x2bc   :  { %v885_v10 = vmul.f32 %v883_v9, %v1984_v42 }
 0x2fb   :  { %v1106_v62 = vpop.permute.xlu1 %1105 }
 0x2fc   :  { %v1115_v0 = vsel %vm1112_vm1, %v2249_v6, %v1106_v62 }
 0x2fd   :  { %1176 = vmatmul.f32.vlgmr.msrb.gmra.mxu1 %v1115_v0 }
 0x309   :  { %v1098_v11 = vpop.permute.xlu0 %1097 }
 0x30a   :  { %v1113_v2 = vsel %vm1112_vm1, %v885_v10, %v1098_v11 }
 0x30b   :  { %1136 = vmatmul.f32.vlgmr.msra.gmra.mxu3 %v1113_v2 }
 0x313   :  { %1592 = vmatmul.msk.f32.vlgmr.msrb.gmra.mxu3 %vm1112_vm1, %v2301_v29 }
 0x315   :  { %v1635_v6 = vpop.permute.xlu0 %1634 }
 0x316   :  { %v1637_v7 = vunpack.i.h.bf16 %v1635_v6  ;;  %v1636_v33 = vunpack.i.l.bf16 %v1635_v6 }
 0x318   :  { %v1114_v12 = vsel %vm1112_vm1, %v2288_v60, %v1637_v7  ;;  %v1116_v13 = vsel %vm1112_vm1, %v2291_v21, %v1636_v33 }
 0x319   :  { %1156 = vmatmul.f32.vlgmr.msrb.gmra.mxu0 %v1114_v12  ;;  %1196 = vmatmul.f32.vlgmr.msrb.gmra.mxu2 %v1116_v13 }
 0x37a   :  { %v1177_v36 = vpop.f32.mrf.mxu1 }
 0x38e   :  { %v1137_v15 = vpop.f32.mrf.mxu3 }
 0x396   :  { %v1157_v42 = vpop.f32.mrf.mxu0  ;;  %v1217_v19 = vpop.f32.mrf.mxu3 }
 0x397   :  { %v1158_v49 = vadd.f32 %v1157_v42, %v1137_v15 }
 0x399   :  { %v1178_v41 = vadd.f32 %v1177_v36, %v1158_v49 }
 0x39c   :  { %v1197_v16 = vpop.f32.mrf.mxu2 }
 0x39d   :  { %v1198_v17 = vadd.f32 %v1197_v16, %v1178_v41 }
 0x39f   :  { %v2368_v23 = vadd.f32 %v1217_v19, %v1198_v17 }
 0x3a1   :  { %vm1260_vm6 = vcmp.ge.f32.partialorder %v2368_v23, -1.0  ;;  %vm1261_vm7 = vcmp.lt.f32.partialorder %v2368_v23, -0.6  ;;  %vm1265_vm8 = vcmp.ge.f32.partialorder %v2368_v23, -0.6  ;;  %v1608_v20 = vadd.f32 1.0, %v2368_v23 }
 0x3a2   :  { %vm1262_vm9 = vmand %vm1260_vm6, %vm1261_vm7  ;;  %vm1266_vm10 = vcmp.lt.f32.partialorder %v2368_v23, -0.2  ;;  %vm1270_vm11 = vcmp.ge.f32.partialorder %v2368_v23, -0.2  ;;  %vm1271_vm12 = vcmp.lt.f32.partialorder %v2368_v23, 0.2 }
 0x3a3   :  { %v2378_v14 = vsel %vm1262_vm9, 1.0, %v1736_v46  ;;  %vm1267_vm13 = vmand %vm1265_vm8, %vm1266_vm10  ;;  %vm1275_vm14 = vcmp.ge.f32.partialorder %v2368_v23, 0.2  ;;  %vm1276_vm15 = vcmp.lt.f32.partialorder %v2368_v23, 0.6  ;;  %vm1256_vm1 = vcmp.lt.f32.partialorder %v2368_v23, -1.0 }
 0x3a4   :  { %v1598_v60 = vsel %vm1267_vm13, 1.0, %v1736_v46  ;;  %vm1272_vm0 = vmand %vm1270_vm11, %vm1271_vm12  ;;  %v1322_v21 = vmul.f32 2.4999995, %v1608_v20  ;;  %v2384_v22 = vsub.f32 -0.2, %v2368_v23  ;;  %v1310_v32 = vsub.f32 -1.0, %v2368_v23 }
 0x3a5   :  { %v1599_v24 = vsel %vm1272_vm0, 1.0, %v1736_v46  ;;  %vm1277_vm2 = vmand %vm1275_vm14, %vm1276_vm15  ;;  %v2389_v25 = vadd.f32 0.6, %v2368_v23  ;;  %v2392_v26 = vsub.f32 0.2, %v2368_v23  ;;  %vm1281_vm7 = vcmp.lt.f32.partialorder %v2368_v23, 1.0 }
 0x3a6   :  { %v2396_v58 = vsel %vm1277_vm2, 1.0, %v1736_v46  ;;  %v1323_v27 = vmul.f32 %v2378_v14, %v1322_v21  ;;  %v1325_v28 = vmul.f32 2.4999995, %v2384_v22  ;;  %v2401_v29 = vadd.f32 0.2, %v2368_v23 }
 0x3a7   :  { %v1329_v30 = vmul.f32 2.4999995, %v2389_v25  ;;  %v1332_v51 = vmul.f32 2.4999995, %v2392_v26  ;;  %v1338_v44 = vsub.f32 0.6, %v2368_v23 }
 0x3a8   :  { %v1326_v34 = vmul.f32 %v1598_v60, %v1325_v28  ;;  %v1336_v35 = vmul.f32 2.4999995, %v2401_v29  ;;  %v1385_v31 = vmul.f32 1.2499998, %v1608_v20  ;;  %v1387_v37 = vmul.f32 1.2499998, %v2392_v26 }
 0x3a9   :  { %v1330_v38 = vmul.f32 %v1598_v60, %v1329_v30  ;;  %v1333_v39 = vmul.f32 %v1599_v24, %v1332_v51  ;;  %v1339_v40 = vmul.f32 2.4999995, %v1338_v44  ;;  %v1390_v18 = vmul.f32 1.2499998, %v2389_v25 }
 0x3aa   :  { %v1327_v45 = vadd.f32 %v1326_v34, %v1323_v27  ;;  %v1337_v47 = vmul.f32 %v1599_v24, %v1336_v35  ;;  %v1392_v57 = vmul.f32 1.2499998, %v1338_v44  ;;  %v1430_v43 = vmul.f32 0.83333313, %v1608_v20 }
 0x3ab   :  { %v1334_v48 = vadd.f32 %v1333_v39, %v1330_v38  ;;  %v1340_v50 = vmul.f32 %v2396_v58, %v1339_v40  ;;  %v1432_v52 = vmul.f32 0.83333313, %v1338_v44  ;;  %vm1250_vm3 = vcmp.ge.f32.partialorder %v2368_v23, -1.8 }
 0x3ac   :  { %v1386_v53 = vmul.f32 %v1385_v31, %v1327_v45  ;;  %vm1251_vm4 = vcmp.lt.f32.partialorder %v2368_v23, -1.4  ;;  %vm1255_vm5 = vcmp.ge.f32.partialorder %v2368_v23, -1.4  ;;  %v1303_v61 = vsub.f32 -1.4, %v2368_v23 }
 0x3ad   :  { %v2414_v54 = vadd.f32 %v1340_v50, %v1337_v47  ;;  %v1388_v55 = vmul.f32 %v1387_v37, %v1334_v48  ;;  %v1391_v59 = vmul.f32 %v1390_v18, %v1334_v48  ;;  %vm1252_vm6 = vmand %vm1250_vm3, %vm1251_vm4  ;;  %v1606_v56 = vadd.f32 1.8, %v2368_v23 }
 0x3ae   :  { %v1595_v62 = vsel %vm1252_vm6, 1.0, %v1736_v46  ;;  %vm1257_vm8 = vmand %vm1255_vm5, %vm1256_vm1  ;;  %v1304_v63 = vmul.f32 2.4999995, %v1303_v61  ;;  %v1311_v0 = vmul.f32 2.4999995, %v1310_v32  ;;  %vm1285_vm9 = vcmp.ge.f32.partialorder %v2368_v23, 1.0 }
 0x3af   :  { %v2424_v1 = vadd.f32 %v1388_v55, %v1386_v53  ;;  %v1393_v3 = vmul.f32 %v1392_v57, %v2414_v54  ;;  %v1596_v4 = vsel %vm1257_vm8, 1.0, %v1736_v46  ;;  %v1308_v5 = vmul.f32 2.4999995, %v1606_v56 }
 0x3b0   :  { %v1312_v8 = vmul.f32 %v1596_v4, %v1311_v0  ;;  %v2429_v9 = vadd.f32 1.4, %v2368_v23  ;;  %v1317_v10 = vsub.f32 -0.6, %v2368_v23  ;;  %v1375_v11 = vmul.f32 1.2499998, %v1606_v56 }
 0x3b1   :  { %v2432_v2 = vadd.f32 %v1393_v3, %v1391_v59  ;;  %v1431_v6 = vmul.f32 %v1430_v43, %v2424_v1  ;;  %v1309_v7 = vmul.f32 %v1595_v62, %v1308_v5  ;;  %v1382_v33 = vmul.f32 1.2499998, %v2384_v22 }
 0x3b2   :  { %v1315_v12 = vmul.f32 2.4999995, %v2429_v9  ;;  %v1318_v13 = vmul.f32 2.4999995, %v1317_v10  ;;  %v1377_v15 = vmul.f32 1.2499998, %v1317_v10  ;;  %v1305_v42 = vmul.f32 %v1595_v62, %v1304_v63 }
 0x3b3   :  { %v1433_v49 = vmul.f32 %v1432_v52, %v2432_v2  ;;  %v1313_v36 = vadd.f32 %v1312_v8, %v1309_v7  ;;  %v1380_v41 = vmul.f32 1.2499998, %v2429_v9  ;;  %v1383_v16 = vmul.f32 %v1382_v33, %v1327_v45 }
 0x3b4   :  { %v1316_v17 = vmul.f32 %v1596_v4, %v1315_v12  ;;  %v1319_v19 = vmul.f32 %v2378_v14, %v1318_v13  ;;  %v1420_v20 = vmul.f32 0.83333313, %v1606_v56  ;;  %v1422_v60 = vmul.f32 0.83333313, %v2384_v22 }
 0x3b5   :  { %v1434_v21 = vadd.f32 %v1433_v49, %v1431_v6  ;;  %v1376_v24 = vmul.f32 %v1375_v11, %v1313_v36  ;;  %vm1245_vm10 = vcmp.ge.f32.partialorder %v2368_v23, -2.2  ;;  %vm1246_vm11 = vcmp.lt.f32.partialorder %v2368_v23, -1.8 }
 0x3b6   :  { %v1320_v27 = vadd.f32 %v1319_v19, %v1316_v17  ;;  %vm1247_vm12 = vmand %vm1245_vm10, %vm1246_vm11  ;;  %v1605_v28 = vadd.f32 2.2, %v2368_v23  ;;  %v1372_v30 = vmul.f32 1.2499998, %v1310_v32  ;;  %v1417_v51 = vmul.f32 0.83333313, %v1317_v10 }
 0x3b7   :  { %1468 = vrot.lane.b32.xlu0 %v1434_v21, %s1735_s30  ;;  %v1594_v14 = vsel %vm1247_vm12, 1.0, %v1736_v46  ;;  %vm1280_vm13 = vcmp.ge.f32.partialorder %v2368_v23, 0.6  ;;  %vm1286_vm14 = vcmp.lt.f32.partialorder %v2368_v23, 1.4  ;;  %v2451_v22 = vsub.f32 1.0, %v2368_v23 }
 0x3b8   :  { %v1378_v44 = vmul.f32 %v1377_v15, %v1320_v27  ;;  %v1381_v34 = vmul.f32 %v1380_v41, %v1320_v27  ;;  %v1301_v35 = vmul.f32 2.4999995, %v1605_v28  ;;  %v1370_v31 = vmul.f32 1.2499998, %v1605_v28  ;;  %vm1282_vm15 = vmand %vm1280_vm13, %vm1281_vm7  ;;  %s1739_s30 = smov 4  }
 0x3b9   :  { %v1415_v32 = vmul.f32 0.83333313, %v1605_v28  ;;  %v1601_v37 = vsel %vm1282_vm15, 1.0, %v1736_v46  ;;  %vm1287_vm0 = vmand %vm1285_vm9, %vm1286_vm14  ;;  %vm1290_vm1 = vcmp.ge.f32.partialorder %v2368_v23, 1.4  ;;  %v1373_v45 = vmul.f32 %v1372_v30, %v1313_v36 }
 0x3ba   :  { %v1379_v38 = vadd.f32 %v1378_v44, %v1376_v24  ;;  %v1384_v39 = vadd.f32 %v1383_v16, %v1381_v34  ;;  %v1302_v40 = vmul.f32 %v1594_v14, %v1301_v35  ;;  %v1602_v18 = vsel %vm1287_vm0, 1.0, %v1736_v46 }
 0x3bb   :  { %vm1291_vm2 = vcmp.lt.f32.partialorder %v2368_v23, 1.8  ;;  %v1611_v47 = vadd.f32 -0.2, %v2368_v23  ;;  %v1346_v57 = vmul.f32 2.4999995, %v2451_v22 }
 0x3bc   :  { %v1421_v43 = vmul.f32 %v1420_v20, %v1379_v38  ;;  %v1423_v48 = vmul.f32 %v1422_v60, %v1384_v39  ;;  %v1306_v50 = vadd.f32 %v1305_v42, %v1302_v40  ;;  %v1418_v52 = vmul.f32 %v1417_v51, %v1379_v38  ;;  %vm1292_vm3 = vmand %vm1290_vm1, %vm1291_vm2 }
 0x3bd   :  { %v2464_v53 = vsel %vm1292_vm3, 1.0, %v1736_v46  ;;  %v1343_v61 = vmul.f32 2.4999995, %v1611_v47  ;;  %v1347_v55 = vmul.f32 %v1601_v37, %v1346_v57  ;;  %v2467_v59 = vadd.f32 -0.6, %v2368_v23 }
 0x3be   :  { %v1424_v56 = vadd.f32 %v1423_v48, %v1421_v43  ;;  %v1371_v62 = vmul.f32 %v1370_v31, %v1306_v50  ;;  %v1352_v63 = vsub.f32 1.4, %v2368_v23  ;;  %v2471_v0 = vadd.f32 -1.0, %v2368_v23 }
 0x3bf   :  { %v1344_v3 = vmul.f32 %v2396_v58, %v1343_v61  ;;  %v1350_v4 = vmul.f32 2.4999995, %v2467_v59  ;;  %v1359_v5 = vsub.f32 1.8, %v2368_v23  ;;  %v1400_v8 = vmul.f32 1.2499998, %v1611_v47 }
 0x3c0   :  { %1460 = vrot.lane.b32.xlu2 %v1424_v56, %s1738_s9  ;;  %v1374_v10 = vadd.f32 %v1373_v45, %v1371_v62  ;;  %v1353_v11 = vmul.f32 2.4999995, %v1352_v63  ;;  %v1357_v6 = vmul.f32 2.4999995, %v2471_v0  ;;  %v1402_v7 = vmul.f32 1.2499998, %v1352_v63 }
 0x3c1   :  { %v1348_v33 = vadd.f32 %v1347_v55, %v1344_v3  ;;  %v1351_v12 = vmul.f32 %v1601_v37, %v1350_v4  ;;  %v1360_v13 = vmul.f32 2.4999995, %v1359_v5  ;;  %v1405_v15 = vmul.f32 1.2499998, %v2467_v59 }
 0x3c2   :  { %v1416_v42 = vmul.f32 %v1415_v32, %v1374_v10  ;;  %v1354_v49 = vmul.f32 %v1602_v18, %v1353_v11  ;;  %v1358_v58 = vmul.f32 %v1602_v18, %v1357_v6  ;;  %v1407_v36 = vmul.f32 1.2499998, %v1359_v5 }
 0x3c3   :  { %v1361_v41 = vmul.f32 %v2464_v53, %v1360_v13  ;;  %v1401_v16 = vmul.f32 %v1400_v8, %v1348_v33  ;;  %v1445_v17 = vmul.f32 0.83333313, %v1611_v47  ;;  %v1447_v19 = vmul.f32 0.83333313, %v1359_v5 }
 0x3c4   :  { %v1419_v20 = vadd.f32 %v1418_v52, %v1416_v42  ;;  %v1355_v60 = vadd.f32 %v1354_v49, %v1351_v12  ;;  %v1425_v21 = vmul.f32 0.83333313, %v2429_v9  ;;  %v1427_v24 = vmul.f32 0.83333313, %v2392_v26  ;;  %v1222_v49 = vld [vmem:[%s2528_s10 + $0x10] sm:$0xff] }
 0x3c5   :  { %v1362_v27 = vadd.f32 %v1361_v41, %v1358_v58  ;;  %v1395_v28 = vmul.f32 1.2499998, %v2401_v29  ;;  %v1397_v30 = vmul.f32 1.2499998, %v2451_v22  ;;  %v1435_v51 = vmul.f32 0.83333313, %v2389_v25 }
 0x3c6   :  { %1456 = vrot.lane.b32.xlu1 %v1419_v20, %s1739_s30  ;;  %v1403_v14 = vmul.f32 %v1402_v7, %v1355_v60  ;;  %v1406_v44 = vmul.f32 %v1405_v15, %v1355_v60  ;;  %v1426_v34 = vmul.f32 %v1425_v21, %v1384_v39  ;;  %v1428_v35 = vmul.f32 %v1427_v24, %v2424_v1  ;;  %v1224_v15 = vld [vmem:[%s2528_s10 + $0x20] sm:$0xf]  ;;  %v1221_v58 = vld [vmem:[%s2528_s10 + $0x8] sm:$0xff] }
 0x3c7   :  { %v1408_v31 = vmul.f32 %v1407_v36, %v1362_v27  ;;  %v1396_v32 = vmul.f32 %v1395_v28, %v2414_v54  ;;  %v1398_v9 = vmul.f32 %v1397_v30, %v1348_v33  ;;  %v1436_v26 = vmul.f32 %v1435_v51, %v2432_v2 }
 0x3c8   :  { %v1404_v37 = vadd.f32 %v1403_v14, %v1401_v16  ;;  %v1429_v38 = vadd.f32 %v1428_v35, %v1426_v34  ;;  %v1437_v40 = vmul.f32 0.83333313, %v2451_v22  ;;  %v1440_v18 = vmul.f32 0.83333313, %v2401_v29  ;;  %v1220_v16 = vld [vmem:[%s2528_s10] sm:$0xff] }
 0x3c9   :  { %v1409_v25 = vadd.f32 %v1408_v31, %v1406_v44  ;;  %v1399_v45 = vadd.f32 %v1398_v9, %v1396_v32  ;;  %v1442_v47 = vmul.f32 0.83333313, %v1352_v63  ;;  %vm1295_vm4 = vcmp.ge.f32.partialorder %v2368_v23, 1.8 }
 0x3ca   :  { %v1446_v39 = vmul.f32 %v1445_v17, %v1404_v37  ;;  %1464 = vrot.lane.b32.xlu2 %v1429_v38, %s1740_s20  ;;  %vm1296_vm5 = vcmp.lt.f32.partialorder %v2368_v23, 2.2  ;;  %v1614_v54 = vadd.f32 -1.4, %v2368_v23  ;;  %v1366_v1 = vsub.f32 2.2, %v2368_v23 }
 0x3cb   :  { %v1448_v2 = vmul.f32 %v1447_v19, %v1409_v25  ;;  %v1438_v57 = vmul.f32 %v1437_v40, %v1399_v45  ;;  %v1441_v43 = vmul.f32 %v1440_v18, %v1399_v45  ;;  %vm1297_vm6 = vmand %vm1295_vm4, %vm1296_vm5  ;;  %v1443_v22 = vmul.f32 %v1442_v47, %v1404_v37 }
 0x3cc   :  { %v1604_v29 = vsel %vm1297_vm6, 1.0, %v1736_v46  ;;  %v1364_v48 = vmul.f32 2.4999995, %v1614_v54  ;;  %v1367_v50 = vmul.f32 2.4999995, %v1366_v1  ;;  %vm1507_vm7 = vcmask 1043456  }
 0x3cd   :  { %v1449_v52 = vadd.f32 %v1448_v2, %v1446_v39  ;;  %v1439_v61 = vadd.f32 %v1438_v57, %v1436_v26  ;;  %v1410_v62 = vmul.f32 1.2499998, %v2471_v0  ;;  %v1444_v63 = vadd.f32 %v1443_v22, %v1441_v43  ;;  %1615 = vmatpush.msk.msra.mxu3 %vm1507_vm7, %v1224_v15 }
 0x3ce   :  { %v1365_v55 = vmul.f32 %v2464_v53, %v1364_v48  ;;  %v1368_v56 = vmul.f32 %v1604_v29, %v1367_v50  ;;  %v1412_v5 = vmul.f32 1.2499998, %v1366_v1  ;;  %v1450_v8 = vmul.f32 0.83333313, %v2467_v59  ;;  %v1223_v59 = vld [vmem:[%s2528_s10 + $0x18] sm:$0xff]  ;;  %s1744_s10 = smov [#allocation7]  }
 0x3cf   :  { %1480 = vrot.lane.b32.xlu0 %v1449_v52, %s1741_s5  ;;  %1472 = vrot.lane.b32.xlu1 %v1439_v61, %s1742_s21  ;;  %v1411_v4 = vmul.f32 %v1410_v62, %v1362_v27  ;;  %v1452_v6 = vmul.f32 0.83333313, %v1366_v1  ;;  %v1593_v0 = vmul.f32 -1.442695, %v2368_v23  ;;  %vm1487_vm12 = vcmask 31744   ;;  %s1557_s4 = sshll.u32 %s1744_s10, 4  ;;  %s1558_s4 = int_to_ptr.vmem [resolvable:$true] %s1557_s4 }
 0x3d0   :  { %v1369_v3 = vadd.f32 %v1368_v56, %v1365_v55  ;;  %v1451_v11 = vmul.f32 %v1450_v8, %v1409_v25  ;;  %1523 = vmatpush.msra.mxu3 %v1223_v59  ;;  %vm1489_vm13 = vcmask 64512   ;;  %vm1491_vm14 = vcmask 97280  }
 0x3d1   :  { %1644 = vpow2.f32 %v1593_v0  ;;  %vm1493_vm15 = vcmask 130048   ;;  %vm1495_vm0 = vcmask 162816   ;;  %vm1497_vm1 = vcmask 195584  }
 0x3d2   :  { %1476 = vrot.lane.b32.xlu2 %v1444_v63, %s1743_s22  ;;  %v1413_v46 = vmul.f32 %v1412_v5, %v1369_v3  ;;  %1524 = vmatpush.msra.mxu3 %v1222_v49  ;;  %vm1499_vm2 = vcmask 228352   ;;  %vm1501_vm3 = vcmask 261120   ;;  %vm1503_vm4 = vcmask 293888  }
 0x3d4   :  { %v1414_v10 = vadd.f32 %v1413_v46, %v1411_v4  ;;  %1525 = vmatpush.msra.mxu3 %v1221_v58 }
 0x3d6   :  { %v1453_v53 = vmul.f32 %v1452_v6, %v1414_v10  ;;  %1526 = vmatpush.msra.mxu3 %v1220_v16 }
 0x3d7   :  { %v1645_v33 = vpop.eup %1644 }
 0x3d8   :  { %v1454_v7 = vadd.f32 %v1453_v53, %v1451_v11  ;;  %v1228_v12 = vadd.f32 1.0, %v1645_v33 }
 0x3da   :  { %1484 = vrot.lane.b32.xlu1 %v1454_v7, %s1732_s26  ;;  %1646 = vrcp.f32 %v1228_v12  ;;  %v1240_v19 = vand.u32 2147483648, %v1228_v12  ;;  %vm1234_vm9 = vweird.f32 %v1228_v12  ;;  %v1238_v20 = vand.u32 2147483647, %v1228_v12 }
 0x3dc   :  { %v1241_v24 = vor.u32 1.1754944e-38, %v1240_v19  ;;  %vm1239_vm11 = vcmp.eq.f32.partialorder %v1238_v20, 8.507059e+37 }
 0x3e0   :  { %v1647_v13 = vpop.eup %1646 }
 0x3e1   :  { %v1230_v42 = vmul.f32 %v1647_v13, %v1228_v12  ;;  %vm1235_vm8 = vweird.f32 %v1647_v13 }
 0x3e2   :  { %vm1236_vm10 = vmor %vm1234_vm9, %vm1235_vm8  ;;  %vm1550_vm8 = vcmask 123904  }
 0x3e3   :  { %v1231_v36 = vsub.f32 1.0, %v1230_v42 }
 0x3e5   :  { %v1232_v41 = vmul.f32 %v1647_v13, %v1231_v36 }
 0x3e7   :  { %v1233_v17 = vadd.f32 %v1647_v13, %v1232_v41 }
 0x3e9   :  { %v1237_v21 = vsel %vm1236_vm10, %v1647_v13, %v1233_v17 }
 0x3ea   :  { %v1242_v27 = vsel %vm1239_vm11, %v1241_v24, %v1237_v21 }
 0x3eb   :  { %v1244_v30 = vmul.f32 %v1242_v27, %v2368_v23 }
 0x41a   :  { %v1461_v60 = vpop.permute.xlu2 %1460 }
 0x424   :  { %v1465_v14 = vpop.permute.xlu2 %1464 }
 0x429   :  { %v1469_v34 = vpop.permute.xlu0 %1468 }
 0x42c   :  { %v1477_v26 = vpop.permute.xlu2 %1476 }
 0x438   :  { %v1457_v28 = vpop.permute.xlu1 %1456 }
 0x439   :  { %v1488_v51 = vsel %vm1487_vm12, %v1244_v30, %v1457_v28 }
 0x43a   :  { %v1490_v44 = vsel %vm1489_vm13, %v1488_v51, %v1461_v60 }
 0x43b   :  { %v1492_v31 = vsel %vm1491_vm14, %v1490_v44, %v1465_v14 }
 0x43c   :  { %v1494_v32 = vsel %vm1493_vm15, %v1492_v31, %v1469_v34 }
 0x441   :  { %v1473_v35 = vpop.permute.xlu1 %1472  ;;  %v1481_v38 = vpop.permute.xlu0 %1480 }
 0x442   :  { %v1496_v9 = vsel %vm1495_vm0, %v1494_v32, %v1473_v35 }
 0x443   :  { %v1498_v37 = vsel %vm1497_vm1, %v1496_v9, %v1477_v26 }
 0x444   :  { %v1500_v40 = vsel %vm1499_vm2, %v1498_v37, %v1481_v38 }
 0x44c   :  { %v1485_v23 = vpop.permute.xlu1 %1484 }
 0x44d   :  { %v1502_v18 = vsel %vm1501_vm3, %v1500_v40, %v1485_v23 }
 0x44e   :  { %1616 = vmatmul.msk.f32.vlgmr.msra.gmra.mxu3 %vm1503_vm4, %v1502_v18 }
 0x4d1   :  { %v1528_v25 = vpop.f32.mrf.mxu3 }
 0x4d2   :  { %v1617_v45 = vmul.f32 -1.442695, %v1528_v25 }
 0x4d4   :  { %1648 = vpow2.f32 %v1617_v45 }
 0x4da   :  { %v1649_v47 = vpop.eup %1648 }
 0x4db   :  { %v1534_v39 = vadd.f32 1.0, %v1649_v47 }
 0x4dd   :  { %1650 = vrcp.f32 %v1534_v39  ;;  %v1546_v57 = vand.u32 2147483648, %v1534_v39  ;;  %v1544_v22 = vand.u32 2147483647, %v1534_v39  ;;  %vm1540_vm6 = vweird.f32 %v1534_v39 }
 0x4df   :  { %v1547_v48 = vor.u32 1.1754944e-38, %v1546_v57  ;;  %vm1545_vm9 = vcmp.eq.f32.partialorder %v1544_v22, 8.507059e+37 }
 0x4e3   :  { %v1651_v54 = vpop.eup %1650 }
 0x4e4   :  { %v1536_v1 = vmul.f32 %v1651_v54, %v1534_v39  ;;  %vm1541_vm5 = vweird.f32 %v1651_v54 }
 0x4e5   :  { %vm1542_vm7 = vmor %vm1540_vm6, %vm1541_vm5 }
 0x4e6   :  { %v1537_v2 = vsub.f32 1.0, %v1536_v1 }
 0x4e8   :  { %v1538_v43 = vmul.f32 %v1651_v54, %v1537_v2 }
 0x4ea   :  { %v1539_v29 = vadd.f32 %v1651_v54, %v1538_v43 }
 0x4ec   :  { %v1543_v50 = vsel %vm1542_vm7, %v1651_v54, %v1539_v29 }
 0x4ed   :  { %v1548_v52 = vsel %vm1545_vm9, %v1547_v48, %v1543_v50 }
 0x4ee   :  { %1551 = vst.msk [vmem:[#allocation7] sm:$0x3] %vm1550_vm8, %v1548_v52 }
 0x4ef   :  { %1562 = dma.vmem_to_hbm [thread:$0]  %s1558_s4, 32, %s1560_s3, [#allocation4]  }
 0x4f0   :  { %1728 = dma.done.wait [#allocation4], 32  }
 0x4f1   :  { %1729 = vsyncadd [#allocation4], 4294967264 }
 0x4f2   :  { %1567 = vsyncpa [#allocation3], 1 }
 0x4f3   :  { %1568 = vsyncpa [#allocation6], 1 }
 0x4f4   :  { %1569 = vsyncpa [#allocation4], 1 }

</bundles_post_ra>
